<compile_context>
chip_gen: v7x
topology: tpu7x:2x2x1
jax: 0.10.0
libtpu: 0.0.40
codegen_flags: <defaults>
</compile_context>

<pallas_src>
import functools

import jax
import jax.numpy as jnp
from jax.experimental import pallas as pl
from jax.experimental.pallas import tpu as pltpu


# 32 MiB scoped VMEM: large enough for tm=1024..2048 (double-buffered (tm,8) f32
# input, (tm,512) f32 output, ~2.5 MB double-buffered bf16 weights, activation
# live set), small enough for v7x's 64 MiB physical VMEM per TensorCore, and it
# explicitly lifts v5e's 16 MiB scoped default.
_VMEM_LIMIT_BYTES = 32 * 1024 * 1024


def _round_up(n, m):
    return ((n + m - 1) // m) * m


def _choose_tm(M, tm, *, min_steps=8, min_tm=64):
    """Row-tile selection: as large as requested, but keep >= min_steps grid steps
    so that on v7x (grid axis split across 2 TensorCores) each core still gets
    several pipelined steps and the input/weight/output DMAs are hidden."""
    cap = max(min_tm, _round_up(pl.cdiv(M, min_steps), 8))
    return min(tm, cap)


# ---------------------------------------------------------------------------
# Pallas kernel: fused per-point MLP (VPU layer 1 + 6 bf16 MXU layers) + softmax
# ---------------------------------------------------------------------------
def _pointsampler_kernel(
    x_ref,
    w1_ref, b1_ref,
    w2_ref, b2_ref,
    w3_ref, b3_ref,
    w4_ref, b4_ref,
    w5_ref, b5_ref,
    w6_ref, b6_ref,
    w7_ref, b7_ref,
    o_ref,
):
    x = x_ref[...]                                    # (TM, 8) f32

    # ---- layer 1 (3 -> 64) on the VPU -----------------------------------
    # Only 3 of the 8 zero-padded K columns are non-zero, so a K=8 MXU pass
    # wastes the 256-deep systolic array; 3 broadcast-FMAs are exact and sit
    # in VALU slack next to the fat MXU layers below.
    w1 = w1_ref[...].astype(jnp.float32)              # (8, 64)
    y = x[:, 0:1] * w1[0:1, :]
    y = y + x[:, 1:2] * w1[1:2, :]
    y = y + x[:, 2:3] * w1[2:3, :]
    y = jnp.maximum(y + b1_ref[...], 0.0)             # (TM, 64) f32
    h = y.astype(jnp.bfloat16)

    def fc_relu(h_bf16, w_ref, b_ref):
        # bf16 x bf16 MXU matmul with f32 accumulation; bias + ReLU in f32.
        z = jnp.dot(h_bf16, w_ref[...], preferred_element_type=jnp.float32)
        z = jnp.maximum(z + b_ref[...], 0.0)
        return z.astype(jnp.bfloat16)                 # next layer's MXU input

    h = fc_relu(h, w2_ref, b2_ref)   # (TM, 256)
    h = fc_relu(h, w3_ref, b3_ref)   # (TM, 512)
    h = fc_relu(h, w4_ref, b4_ref)   # (TM, 512)
    h = fc_relu(h, w5_ref, b5_ref)   # (TM, 256)
    h = fc_relu(h, w6_ref, b6_ref)   # (TM, 128)

    # final conv (no BN, no ReLU): logits over npoint, softmax in f32
    logits = jnp.dot(h, w7_ref[...], preferred_element_type=jnp.float32)
    logits = logits + b7_ref[...]                     # (TM, npoint)

    m = jnp.max(logits, axis=-1, keepdims=True)
    e = jnp.exp(logits - m)
    denom = jnp.sum(e, axis=-1, keepdims=True)
    # exact reciprocal (EUP + Newton step): properly normalized probabilities;
    # negligible cost next to the 6 MXU layers.
    o_ref[...] = (e * pl.reciprocal(denom)).astype(o_ref.dtype)


# ---------------------------------------------------------------------------
# pallas_call wrapper
# ---------------------------------------------------------------------------
def pointsampler_forward(x_flat, params, *, npoint, tm=1024, out_dtype=jnp.float32):
    """x_flat: (M, K) f32 with M = B*N (any M; padded internally to a tile multiple).

    params: 7 tuples (w bf16 (Cin, Cout), b f32 (1, Cout)) with BN pre-folded.
    out_dtype: float32 by default; bfloat16 is a valid lever on v6e if the
               consumer tolerates it (halves output HBM writes).
    """
    M, K = x_flat.shape
    assert tm % 8 == 0, f"tm={tm} must be a multiple of 8"

    tm_eff = _choose_tm(M, tm)
    m_pad = _round_up(M, tm_eff)
    if m_pad != M:
        # zero rows -> logits == bias -> finite softmax; sliced off below.
        x_flat = jnp.pad(x_flat, ((0, m_pad - M), (0, 0)))

    def resident_spec(arr):
        # Constant block index -> weights/biases stay resident in VMEM across
        # the whole grid (default double-buffering, ~1.25 MB extra, is fine).
        return pl.BlockSpec(arr.shape, lambda i: (0, 0))

    in_specs = [pl.BlockSpec((tm_eff, K), lambda i: (i, 0))]
    operands = [x_flat]
    for w, b in params:
        in_specs += [resident_spec(w), resident_spec(b)]
        operands += [w, b]

    call = pl.pallas_call(
        _pointsampler_kernel,
        out_shape=jax.ShapeDtypeStruct((m_pad, npoint), out_dtype),
        grid_spec=pltpu.PrefetchScalarGridSpec(
            num_scalar_prefetch=0,
            grid=(m_pad // tm_eff,),
            in_specs=in_specs,
            out_specs=pl.BlockSpec((tm_eff, npoint), lambda i: (i, 0)),
        ),
        compiler_params=pltpu.CompilerParams(
            dimension_semantics=("parallel",),
            vmem_limit_bytes=_VMEM_LIMIT_BYTES,
        ),
    )
    out = call(*operands)
    return out[:M] if m_pad != M else out


# ---------------------------------------------------------------------------
# Parameter construction (deterministic) + BN folding (glue, plain JAX)
# ---------------------------------------------------------------------------
def make_params(key, npoint):
    """Torch-equivalent f32 parameters with inference-mode BN folded into the convs."""
    c1, c2, c3, c4 = 3, 64, 256, 512
    cs1, cs2, cs3, cs4 = c4, 512, 256, 128
    dims = [(c1, c2), (c2, c3), (c3, c4), (cs1, cs2), (cs2, cs3), (cs3, cs4), (cs4, npoint)]
    has_bn = [True, True, True, True, True, True, False]

    eps = 1e-5
    params = []
    for (cin, cout), bn in zip(dims, has_bn):
        key, kw, kb, kg, kbeta, km, kv = jax.random.split(key, 7)
        # conv1d(k=1) weight (torch shape (cout, cin, 1)) stored transposed as (cin, cout)
        w = (jax.random.normal(kw, (cin, cout), dtype=jnp.float32)
             * (1.0 / jnp.sqrt(jnp.float32(cin))))
        b = jax.random.normal(kb, (cout,), dtype=jnp.float32) * 0.05
        if bn:
            gamma = 1.0 + 0.1 * jax.random.normal(kg, (cout,), dtype=jnp.float32)
            beta = 0.1 * jax.random.normal(kbeta, (cout,), dtype=jnp.float32)
            rmean = 0.1 * jax.random.normal(km, (cout,), dtype=jnp.float32)
            rvar = jax.random.uniform(kv, (cout,), dtype=jnp.float32,
                                      minval=0.5, maxval=1.5)
            scale = gamma / jnp.sqrt(rvar + eps)
            w_eff = w * scale[None, :]
            b_eff = (b - rmean) * scale + beta
        else:
            w_eff, b_eff = w, b
        params.append((w_eff, b_eff.reshape(1, cout)))
    return params


def prepare_for_kernel(point_xyz, params, *, k_pad=8):
    """(B, N, 3) points + f32 params -> (B*N, k_pad) f32 input, bf16-weight params."""
    B, N, D = point_xyz.shape
    x_flat = point_xyz.reshape(B * N, D)
    x_flat = jnp.pad(x_flat, ((0, 0), (0, k_pad - D)))           # zero-pad K: 3 -> 8

    kparams = []
    for idx, (w, b) in enumerate(params):
        if idx == 0:
            w = jnp.pad(w, ((0, k_pad - w.shape[0]), (0, 0)))    # (3, 64) -> (8, 64)
        kparams.append((w.astype(jnp.bfloat16), b))              # bf16 weights, f32 biases
    return x_flat, kparams


if __name__ == "__main__":
    NPOINT = 512            # module default
    B, N, D = 2, 256, 3     # small point cloud; M = B*N = 512
    # tm is auto-capped so the grid keeps >= 8 steps (here tm_eff=64, grid=8);
    # at production M the default tm=1024 is used as-is.
    key = jax.random.PRNGKey(0)
    key, kx = jax.random.split(key)
    point_xyz = jax.random.normal(kx, (B, N, D), dtype=jnp.float32)

    params = make_params(key, NPOINT)

    # (B, N, 3) -> (B*N, 8): torch's transpose(2,1) + 1x1 convs become per-point matmuls
    x_flat, kparams = prepare_for_kernel(point_xyz, params)

    fwd = functools.partial(pointsampler_forward, npoint=NPOINT)
    out_flat = fwd(x_flat, kparams)
    result = out_flat.reshape(B, N, NPOINT)   # matches torch output (B, N, npoint)
    result = jax.block_until_ready(result)

    # sanity: softmax rows sum to ~1 (bf16 matmuls, exact reciprocal) and are finite
    row_sums = jnp.sum(result, axis=-1)
    assert result.shape == (B, N, NPOINT)
    assert bool(jnp.all(jnp.isfinite(result)))
    assert bool(jnp.allclose(row_sums, 1.0, atol=5e-3))

    print("KERNEL_OK")
</pallas_src>

<mosaic_0001>
module attributes {stable_mosaic.version = 11 : i64} {
  func.func @_pointsampler_kernel(%arg0: i32, %arg1: memref<64x8xf32, #tpu.memory_space<vmem>>, %arg2: memref<8x64xbf16, #tpu.memory_space<vmem>>, %arg3: memref<1x64xf32, #tpu.memory_space<vmem>>, %arg4: memref<64x256xbf16, #tpu.memory_space<vmem>>, %arg5: memref<1x256xf32, #tpu.memory_space<vmem>>, %arg6: memref<256x512xbf16, #tpu.memory_space<vmem>>, %arg7: memref<1x512xf32, #tpu.memory_space<vmem>>, %arg8: memref<512x512xbf16, #tpu.memory_space<vmem>>, %arg9: memref<1x512xf32, #tpu.memory_space<vmem>>, %arg10: memref<512x256xbf16, #tpu.memory_space<vmem>>, %arg11: memref<1x256xf32, #tpu.memory_space<vmem>>, %arg12: memref<256x128xbf16, #tpu.memory_space<vmem>>, %arg13: memref<1x128xf32, #tpu.memory_space<vmem>>, %arg14: memref<128x512xbf16, #tpu.memory_space<vmem>>, %arg15: memref<1x512xf32, #tpu.memory_space<vmem>>, %arg16: memref<64x512xf32, #tpu.memory_space<vmem>>) attributes {dimension_semantics = [#tpu.dimension_semantics<parallel>], iteration_bounds = array<i64: 8>, scalar_prefetch = 0 : i64, scratch_operands = 0 : i64, tpu.core_type = #tpu.core_type<tc>, window_params = [{transform_indices = @transform_0, window_bounds = array<i64: 64, 8>}, {pipeline_mode = #tpu.pipeline_mode<synchronous>, transform_indices = @transform_1, window_bounds = array<i64: 8, 64>}, {pipeline_mode = #tpu.pipeline_mode<synchronous>, transform_indices = @transform_2, window_bounds = array<i64: 1, 64>}, {pipeline_mode = #tpu.pipeline_mode<synchronous>, transform_indices = @transform_3, window_bounds = array<i64: 64, 256>}, {pipeline_mode = #tpu.pipeline_mode<synchronous>, transform_indices = @transform_4, window_bounds = array<i64: 1, 256>}, {pipeline_mode = #tpu.pipeline_mode<synchronous>, transform_indices = @transform_5, window_bounds = array<i64: 256, 512>}, {pipeline_mode = #tpu.pipeline_mode<synchronous>, transform_indices = @transform_6, window_bounds = array<i64: 1, 512>}, {pipeline_mode = #tpu.pipeline_mode<synchronous>, transform_indices = @transform_7, window_bounds = array<i64: 512, 512>}, {pipeline_mode = #tpu.pipeline_mode<synchronous>, transform_indices = @transform_8, window_bounds = array<i64: 1, 512>}, {pipeline_mode = #tpu.pipeline_mode<synchronous>, transform_indices = @transform_9, window_bounds = array<i64: 512, 256>}, {pipeline_mode = #tpu.pipeline_mode<synchronous>, transform_indices = @transform_10, window_bounds = array<i64: 1, 256>}, {pipeline_mode = #tpu.pipeline_mode<synchronous>, transform_indices = @transform_11, window_bounds = array<i64: 256, 128>}, {pipeline_mode = #tpu.pipeline_mode<synchronous>, transform_indices = @transform_12, window_bounds = array<i64: 1, 128>}, {pipeline_mode = #tpu.pipeline_mode<synchronous>, transform_indices = @transform_13, window_bounds = array<i64: 128, 512>}, {pipeline_mode = #tpu.pipeline_mode<synchronous>, transform_indices = @transform_14, window_bounds = array<i64: 1, 512>}, {transform_indices = @transform_15, window_bounds = array<i64: 64, 512>}]} {
    %c0 = arith.constant 0 : index
    %c0_0 = arith.constant 0 : index
    %0 = vector.load %arg1[%c0, %c0_0] : memref<64x8xf32, #tpu.memory_space<vmem>>, vector<64x8xf32>
    %c0_1 = arith.constant 0 : index
    %c0_2 = arith.constant 0 : index
    %1 = vector.load %arg2[%c0_1, %c0_2] : memref<8x64xbf16, #tpu.memory_space<vmem>>, vector<8x64xbf16>
    %2 = arith.extf %1 : vector<8x64xbf16> to vector<8x64xf32>
    %3 = vector.extract_strided_slice %0 {offsets = [0, 0], sizes = [64, 1], strides = [1, 1]} : vector<64x8xf32> to vector<64x1xf32>
    %4 = vector.extract_strided_slice %2 {offsets = [0, 0], sizes = [1, 64], strides = [1, 1]} : vector<8x64xf32> to vector<1x64xf32>
    %5 = vector.broadcast %3 : vector<64x1xf32> to vector<64x64xf32>
    %6 = vector.broadcast %4 : vector<1x64xf32> to vector<64x64xf32>
    %7 = arith.mulf %5, %6 : vector<64x64xf32>
    %8 = vector.extract_strided_slice %0 {offsets = [0, 1], sizes = [64, 1], strides = [1, 1]} : vector<64x8xf32> to vector<64x1xf32>
    %9 = vector.extract_strided_slice %2 {offsets = [1, 0], sizes = [1, 64], strides = [1, 1]} : vector<8x64xf32> to vector<1x64xf32>
    %10 = vector.broadcast %8 : vector<64x1xf32> to vector<64x64xf32>
    %11 = vector.broadcast %9 : vector<1x64xf32> to vector<64x64xf32>
    %12 = arith.mulf %10, %11 : vector<64x64xf32>
    %13 = arith.addf %7, %12 : vector<64x64xf32>
    %14 = vector.extract_strided_slice %0 {offsets = [0, 2], sizes = [64, 1], strides = [1, 1]} : vector<64x8xf32> to vector<64x1xf32>
    %15 = vector.extract_strided_slice %2 {offsets = [2, 0], sizes = [1, 64], strides = [1, 1]} : vector<8x64xf32> to vector<1x64xf32>
    %16 = vector.broadcast %14 : vector<64x1xf32> to vector<64x64xf32>
    %17 = vector.broadcast %15 : vector<1x64xf32> to vector<64x64xf32>
    %18 = arith.mulf %16, %17 : vector<64x64xf32>
    %19 = arith.addf %13, %18 : vector<64x64xf32>
    %c0_3 = arith.constant 0 : index
    %c0_4 = arith.constant 0 : index
    %20 = vector.load %arg3[%c0_3, %c0_4] : memref<1x64xf32, #tpu.memory_space<vmem>>, vector<1x64xf32>
    %21 = vector.broadcast %20 : vector<1x64xf32> to vector<64x64xf32>
    %22 = arith.addf %19, %21 : vector<64x64xf32>
    %cst = arith.constant 0.000000e+00 : f32
    %23 = vector.broadcast %cst : f32 to vector<64x64xf32>
    %24 = arith.maximumf %22, %23 : vector<64x64xf32>
    %25 = arith.truncf %24 : vector<64x64xf32> to vector<64x64xbf16>
    %c0_5 = arith.constant 0 : index
    %c0_6 = arith.constant 0 : index
    %26 = vector.load %arg4[%c0_5, %c0_6] : memref<64x256xbf16, #tpu.memory_space<vmem>>, vector<64x256xbf16>
    %cst_7 = arith.constant dense<0.000000e+00> : vector<64x256xf32>
    %27 = tpu.matmul %25, %26, %cst_7 {dimension_numbers = #tpu.dot_dimension_numbers<[1], [0], [0], [1], [0, 0, 1, 1], [], []>} : vector<64x64xbf16>, vector<64x256xbf16>, vector<64x256xf32> -> vector<64x256xf32>
    %c0_8 = arith.constant 0 : index
    %c0_9 = arith.constant 0 : index
    %28 = vector.load %arg5[%c0_8, %c0_9] : memref<1x256xf32, #tpu.memory_space<vmem>>, vector<1x256xf32>
    %29 = vector.broadcast %28 : vector<1x256xf32> to vector<64x256xf32>
    %30 = arith.addf %27, %29 : vector<64x256xf32>
    %cst_10 = arith.constant 0.000000e+00 : f32
    %31 = vector.broadcast %cst_10 : f32 to vector<64x256xf32>
    %32 = arith.maximumf %30, %31 : vector<64x256xf32>
    %33 = arith.truncf %32 : vector<64x256xf32> to vector<64x256xbf16>
    %c0_11 = arith.constant 0 : index
    %c0_12 = arith.constant 0 : index
    %34 = vector.load %arg6[%c0_11, %c0_12] : memref<256x512xbf16, #tpu.memory_space<vmem>>, vector<256x512xbf16>
    %cst_13 = arith.constant dense<0.000000e+00> : vector<64x512xf32>
    %35 = tpu.matmul %33, %34, %cst_13 {dimension_numbers = #tpu.dot_dimension_numbers<[1], [0], [0], [1], [0, 0, 1, 1], [], []>} : vector<64x256xbf16>, vector<256x512xbf16>, vector<64x512xf32> -> vector<64x512xf32>
    %c0_14 = arith.constant 0 : index
    %c0_15 = arith.constant 0 : index
    %36 = vector.load %arg7[%c0_14, %c0_15] : memref<1x512xf32, #tpu.memory_space<vmem>>, vector<1x512xf32>
    %37 = vector.broadcast %36 : vector<1x512xf32> to vector<64x512xf32>
    %38 = arith.addf %35, %37 : vector<64x512xf32>
    %cst_16 = arith.constant 0.000000e+00 : f32
    %39 = vector.broadcast %cst_16 : f32 to vector<64x512xf32>
    %40 = arith.maximumf %38, %39 : vector<64x512xf32>
    %41 = arith.truncf %40 : vector<64x512xf32> to vector<64x512xbf16>
    %c0_17 = arith.constant 0 : index
    %c0_18 = arith.constant 0 : index
    %42 = vector.load %arg8[%c0_17, %c0_18] : memref<512x512xbf16, #tpu.memory_space<vmem>>, vector<512x512xbf16>
    %cst_19 = arith.constant dense<0.000000e+00> : vector<64x512xf32>
    %43 = tpu.matmul %41, %42, %cst_19 {dimension_numbers = #tpu.dot_dimension_numbers<[1], [0], [0], [1], [0, 0, 1, 1], [], []>} : vector<64x512xbf16>, vector<512x512xbf16>, vector<64x512xf32> -> vector<64x512xf32>
    %c0_20 = arith.constant 0 : index
    %c0_21 = arith.constant 0 : index
    %44 = vector.load %arg9[%c0_20, %c0_21] : memref<1x512xf32, #tpu.memory_space<vmem>>, vector<1x512xf32>
    %45 = vector.broadcast %44 : vector<1x512xf32> to vector<64x512xf32>
    %46 = arith.addf %43, %45 : vector<64x512xf32>
    %cst_22 = arith.constant 0.000000e+00 : f32
    %47 = vector.broadcast %cst_22 : f32 to vector<64x512xf32>
    %48 = arith.maximumf %46, %47 : vector<64x512xf32>
    %49 = arith.truncf %48 : vector<64x512xf32> to vector<64x512xbf16>
    %c0_23 = arith.constant 0 : index
    %c0_24 = arith.constant 0 : index
    %50 = vector.load %arg10[%c0_23, %c0_24] : memref<512x256xbf16, #tpu.memory_space<vmem>>, vector<512x256xbf16>
    %cst_25 = arith.constant dense<0.000000e+00> : vector<64x256xf32>
    %51 = tpu.matmul %49, %50, %cst_25 {dimension_numbers = #tpu.dot_dimension_numbers<[1], [0], [0], [1], [0, 0, 1, 1], [], []>} : vector<64x512xbf16>, vector<512x256xbf16>, vector<64x256xf32> -> vector<64x256xf32>
    %c0_26 = arith.constant 0 : index
    %c0_27 = arith.constant 0 : index
    %52 = vector.load %arg11[%c0_26, %c0_27] : memref<1x256xf32, #tpu.memory_space<vmem>>, vector<1x256xf32>
    %53 = vector.broadcast %52 : vector<1x256xf32> to vector<64x256xf32>
    %54 = arith.addf %51, %53 : vector<64x256xf32>
    %cst_28 = arith.constant 0.000000e+00 : f32
    %55 = vector.broadcast %cst_28 : f32 to vector<64x256xf32>
    %56 = arith.maximumf %54, %55 : vector<64x256xf32>
    %57 = arith.truncf %56 : vector<64x256xf32> to vector<64x256xbf16>
    %c0_29 = arith.constant 0 : index
    %c0_30 = arith.constant 0 : index
    %58 = vector.load %arg12[%c0_29, %c0_30] : memref<256x128xbf16, #tpu.memory_space<vmem>>, vector<256x128xbf16>
    %cst_31 = arith.constant dense<0.000000e+00> : vector<64x128xf32>
    %59 = tpu.matmul %57, %58, %cst_31 {dimension_numbers = #tpu.dot_dimension_numbers<[1], [0], [0], [1], [0, 0, 1, 1], [], []>} : vector<64x256xbf16>, vector<256x128xbf16>, vector<64x128xf32> -> vector<64x128xf32>
    %c0_32 = arith.constant 0 : index
    %c0_33 = arith.constant 0 : index
    %60 = vector.load %arg13[%c0_32, %c0_33] : memref<1x128xf32, #tpu.memory_space<vmem>>, vector<1x128xf32>
    %61 = vector.broadcast %60 : vector<1x128xf32> to vector<64x128xf32>
    %62 = arith.addf %59, %61 : vector<64x128xf32>
    %cst_34 = arith.constant 0.000000e+00 : f32
    %63 = vector.broadcast %cst_34 : f32 to vector<64x128xf32>
    %64 = arith.maximumf %62, %63 : vector<64x128xf32>
    %65 = arith.truncf %64 : vector<64x128xf32> to vector<64x128xbf16>
    %c0_35 = arith.constant 0 : index
    %c0_36 = arith.constant 0 : index
    %66 = vector.load %arg14[%c0_35, %c0_36] : memref<128x512xbf16, #tpu.memory_space<vmem>>, vector<128x512xbf16>
    %cst_37 = arith.constant dense<0.000000e+00> : vector<64x512xf32>
    %67 = tpu.matmul %65, %66, %cst_37 {dimension_numbers = #tpu.dot_dimension_numbers<[1], [0], [0], [1], [0, 0, 1, 1], [], []>} : vector<64x128xbf16>, vector<128x512xbf16>, vector<64x512xf32> -> vector<64x512xf32>
    %c0_38 = arith.constant 0 : index
    %c0_39 = arith.constant 0 : index
    %68 = vector.load %arg15[%c0_38, %c0_39] : memref<1x512xf32, #tpu.memory_space<vmem>>, vector<1x512xf32>
    %69 = vector.broadcast %68 : vector<1x512xf32> to vector<64x512xf32>
    %70 = arith.addf %67, %69 : vector<64x512xf32>
    %cst_40 = arith.constant dense<0xFF800000> : vector<64xf32>
    %71 = vector.multi_reduction <maximumf>, %70, %cst_40 [1] : vector<64x512xf32> to vector<64xf32>
    %72 = vector.shape_cast %71 : vector<64xf32> to vector<64x1xf32>
    %73 = vector.broadcast %72 : vector<64x1xf32> to vector<64x512xf32>
    %74 = arith.subf %70, %73 : vector<64x512xf32>
    %75 = math.exp %74 : vector<64x512xf32>
    %cst_41 = arith.constant dense<0.000000e+00> : vector<64xf32>
    %76 = vector.multi_reduction <add>, %75, %cst_41 [1] : vector<64x512xf32> to vector<64xf32>
    %77 = vector.shape_cast %76 : vector<64xf32> to vector<64x1xf32>
    %78 = tpu.reciprocal %77 : vector<64x1xf32> -> vector<64x1xf32>
    %79 = vector.broadcast %78 : vector<64x1xf32> to vector<64x512xf32>
    %80 = arith.mulf %75, %79 : vector<64x512xf32>
    %c0_42 = arith.constant 0 : index
    %c0_43 = arith.constant 0 : index
    %81 = vector.load %arg16[%c0_42, %c0_43] : memref<64x512xf32, #tpu.memory_space<vmem>>, vector<64x512xf32>
    tpu.vector_store %arg16[%c0_42, %c0_43], %80 {strides = array<i32>} : memref<64x512xf32, #tpu.memory_space<vmem>>, vector<64x512xf32>,
    return
  }
  func.func @transform_0(%arg0: i32) -> (i32, i32) {
    %c0_i32 = arith.constant 0 : i32
    %c0_i32_0 = arith.constant 0 : i32
    return %arg0, %c0_i32 : i32, i32
  }
  func.func @transform_1(%arg0: i32) -> (i32, i32) {
    %c0_i32 = arith.constant 0 : i32
    %c0_i32_0 = arith.constant 0 : i32
    %c0_i32_1 = arith.constant 0 : i32
    return %c0_i32, %c0_i32_0 : i32, i32
  }
  func.func @transform_2(%arg0: i32) -> (i32, i32) {
    %c0_i32 = arith.constant 0 : i32
    %c0_i32_0 = arith.constant 0 : i32
    %c0_i32_1 = arith.constant 0 : i32
    return %c0_i32, %c0_i32_0 : i32, i32
  }
  func.func @transform_3(%arg0: i32) -> (i32, i32) {
    %c0_i32 = arith.constant 0 : i32
    %c0_i32_0 = arith.constant 0 : i32
    %c0_i32_1 = arith.constant 0 : i32
    return %c0_i32, %c0_i32_0 : i32, i32
  }
  func.func @transform_4(%arg0: i32) -> (i32, i32) {
    %c0_i32 = arith.constant 0 : i32
    %c0_i32_0 = arith.constant 0 : i32
    %c0_i32_1 = arith.constant 0 : i32
    return %c0_i32, %c0_i32_0 : i32, i32
  }
  func.func @transform_5(%arg0: i32) -> (i32, i32) {
    %c0_i32 = arith.constant 0 : i32
    %c0_i32_0 = arith.constant 0 : i32
    %c0_i32_1 = arith.constant 0 : i32
    return %c0_i32, %c0_i32_0 : i32, i32
  }
  func.func @transform_6(%arg0: i32) -> (i32, i32) {
    %c0_i32 = arith.constant 0 : i32
    %c0_i32_0 = arith.constant 0 : i32
    %c0_i32_1 = arith.constant 0 : i32
    return %c0_i32, %c0_i32_0 : i32, i32
  }
  func.func @transform_7(%arg0: i32) -> (i32, i32) {
    %c0_i32 = arith.constant 0 : i32
    %c0_i32_0 = arith.constant 0 : i32
    %c0_i32_1 = arith.constant 0 : i32
    return %c0_i32, %c0_i32_0 : i32, i32
  }
  func.func @transform_8(%arg0: i32) -> (i32, i32) {
    %c0_i32 = arith.constant 0 : i32
    %c0_i32_0 = arith.constant 0 : i32
    %c0_i32_1 = arith.constant 0 : i32
    return %c0_i32, %c0_i32_0 : i32, i32
  }
  func.func @transform_9(%arg0: i32) -> (i32, i32) {
    %c0_i32 = arith.constant 0 : i32
    %c0_i32_0 = arith.constant 0 : i32
    %c0_i32_1 = arith.constant 0 : i32
    return %c0_i32, %c0_i32_0 : i32, i32
  }
  func.func @transform_10(%arg0: i32) -> (i32, i32) {
    %c0_i32 = arith.constant 0 : i32
    %c0_i32_0 = arith.constant 0 : i32
    %c0_i32_1 = arith.constant 0 : i32
    return %c0_i32, %c0_i32_0 : i32, i32
  }
  func.func @transform_11(%arg0: i32) -> (i32, i32) {
    %c0_i32 = arith.constant 0 : i32
    %c0_i32_0 = arith.constant 0 : i32
    %c0_i32_1 = arith.constant 0 : i32
    return %c0_i32, %c0_i32_0 : i32, i32
  }
  func.func @transform_12(%arg0: i32) -> (i32, i32) {
    %c0_i32 = arith.constant 0 : i32
    %c0_i32_0 = arith.constant 0 : i32
    %c0_i32_1 = arith.constant 0 : i32
    return %c0_i32, %c0_i32_0 : i32, i32
  }
  func.func @transform_13(%arg0: i32) -> (i32, i32) {
    %c0_i32 = arith.constant 0 : i32
    %c0_i32_0 = arith.constant 0 : i32
    %c0_i32_1 = arith.constant 0 : i32
    return %c0_i32, %c0_i32_0 : i32, i32
  }
  func.func @transform_14(%arg0: i32) -> (i32, i32) {
    %c0_i32 = arith.constant 0 : i32
    %c0_i32_0 = arith.constant 0 : i32
    %c0_i32_1 = arith.constant 0 : i32
    return %c0_i32, %c0_i32_0 : i32, i32
  }
  func.func @transform_15(%arg0: i32) -> (i32, i32) {
    %c0_i32 = arith.constant 0 : i32
    %c0_i32_0 = arith.constant 0 : i32
    return %arg0, %c0_i32 : i32, i32
  }
}

</mosaic_0001>

<bundles_post_ra>
// kernel: tpu_custom_call.1
= control target key start
LH: loop header
LB: loop body
LE: loop exit
PB: predicated region body
PF: predicated region fallthrough
CT: control target
= control target key end

     0   :  { %s6713_s0 = inlined_call_operand.vmem [shape: f32[512,8], index: 0, kind: input, shape index: {}]   ;;  %s6714_s1 = inlined_call_operand.vmem [shape: bf16[8,64], index: 1, kind: input, shape index: {}]   ;;  %s6715_s2 = inlined_call_operand.vmem [shape: f32[1,64], index: 2, kind: input, shape index: {}]   ;;  %s6716_s3 = inlined_call_operand.hbm [shape: bf16[64,256], index: 3, kind: input, shape index: {}]   ;;  %s6717_s4 = inlined_call_operand.vmem [shape: f32[1,256], index: 4, kind: input, shape index: {}]   ;;  %s6718_s5 = inlined_call_operand.vmem [shape: bf16[256,512], index: 5, kind: input, shape index: {}]   ;;  %s6719_s6 = inlined_call_operand.vmem [shape: f32[1,512], index: 6, kind: input, shape index: {}]   ;;  %s6720_s7 = inlined_call_operand.hbm [shape: bf16[512,512], index: 7, kind: input, shape index: {}]   ;;  %s6721_s8 = inlined_call_operand.vmem [shape: f32[1,512], index: 8, kind: input, shape index: {}]   ;;  %s6722_s9 = inlined_call_operand.hbm [shape: bf16[512,256], index: 9, kind: input, shape index: {}]   ;;  %s6723_s10 = inlined_call_operand.vmem [shape: f32[1,256], index: 10, kind: input, shape index: {}]   ;;  %s6724_s11 = inlined_call_operand.hbm [shape: bf16[256,128], index: 11, kind: input, shape index: {}]   ;;  %s6725_s12 = inlined_call_operand.vmem [shape: f32[1,128], index: 12, kind: input, shape index: {}]   ;;  %s6726_s13 = inlined_call_operand.hbm [shape: bf16[128,512], index: 13, kind: input, shape index: {}]   ;;  %s6727_s14 = inlined_call_operand.vmem [shape: f32[1,512], index: 14, kind: input, shape index: {}]   ;;  %s6728_s15 = inlined_call_operand.hbm [shape: f32[512,512], index: 15, kind: output, shape index: {}]  }
   0x1   :  { %6745 = sst [smem:[#allocation24_spill]] %s6720_s7 }
   0x2   :  { %6746 = sst [smem:[#allocation25_spill]] %s6724_s11 }
   0x3   :  { %6747 = sst [smem:[#allocation26_spill]] %s6725_s12 }
   0x4   :  { %6748 = sst [smem:[#allocation27_spill]] %s6727_s14 }
   0x5   :  { %6749 = sst [smem:[#allocation28_spill]] %s6728_s15 }
   0x6   :  { %20 = vsyncpa [#allocation3], 0 }
   0x7   :  { %21 = vsyncpa [#allocation6], 0 }
   0x8   :  { %22 = vsyncpa [#allocation9], 0 }
   0x9   :  { %23 = vsyncpa [#allocation4], 0 }
   0xa   :  { %25 = vsyncpa [#allocation4 + $0x1], 0  ;;  %s5626_s18 = smov 0   ;;  %s5628_s19 = smov 0  }
   0xb   :  { %s5630_s20 = smov 0   ;;  %s5632_s21 = smov 0  }
   0xc LB: > { %6750 = sst [smem:[#allocation16_spill]] %s5515_s18  ;;  %s5647_s22 = sadd.s32 4294967295, %s5527_s21   ;;  %s5527_s21 = sphi %s5632_s21, %s6784_s21   ;;  %s5523_s20 = sphi %s5630_s20, %s6787_s20   ;;  %s5519_s19 = sphi %s5628_s19, %s6786_s19   ;;  %s5515_s18 = sphi %s5626_s18, %s6785_s18  }
   0xd   : > { %6751 = sst [smem:[#allocation17_spill]] %s5519_s19  ;;  %s4176_s23 = sadd.s32 4294967294, %s5527_s21  }
   0xe   : > { %6752 = sst [smem:[#allocation18_spill]] %s5523_s20  ;;  %s5651_s24 = sadd.s32 1, %s5527_s21  }
   0xf   : > { %6753 = sst [smem:[#allocation19_spill]] %s5527_s21  ;;  %s358_s25 = sadd.s32 1, %s5523_s20 }
  0x10   : > { %6754 = sst [smem:[#allocation20_spill]] %s5651_s24  ;;  %s355_s26 = ssub.s32 %s5527_s21, %s5651_s24 }
  0x11   : > { %p368_p0 = scmp.ne.s32.totalorder %s5523_s20, %s5519_s19  ;;  %p356_p1 = scmp.eq.s32.totalorder %s355_s26, 0 }
  0x12   : > { %p369_p2 = scmp.eq.s32.totalorder %s5647_s22, 7  ;;  %p374_p3 = scmp.ne.s32.totalorder %s5519_s19, %s5515_s18 }
  0x13   : > { %p375_p4 = scmp.eq.s32.totalorder %s4176_s23, 7  ;;  %p4177_p7 = scmp.ge.s32.totalorder %s5527_s21, 1 }
  0x14   : > { %s5662_s27 = scalar_select %p356_p1, %s5523_s20, %s358_s25  }
  0x15   : > { %p5664_p5 = por %p369_p2, %p368_p0  ;;  %p5668_p6 = por %p375_p4, %p374_p3 }
  0x16   : > { %6755 = sst [smem:[#allocation21_spill]] %s5662_s27  ;;  %p382_p8 = scmp.lt.s32.totalorder %s5527_s21, 9 }
  0x17   : > { %s6756_s28 = scalar_select %p5664_p5, 1, 0 }
  0x18   : > { %s6758_s29 = scalar_select %p5668_p6, 1, 0 }
  0x19   : > { %6757 = sst [smem:[#allocation22_spill]] %s6756_s28  ;;  %p6735_p9 = scmp.eq.s32.totalorder %s5647_s22, 0 }
  0x1a   : > { %6759 = sst [smem:[#allocation23_spill]] %s6758_s29  ;;  %p5675_p10 = pnand %p4177_p7, %p382_p8 }
  0x1b   : > { %s5529_s16 = smov [#allocation5]   ;;  %s5530_s25 = smov [#allocation8]  }
  0x1c   : > { %s6760_s30 = scalar_select %p5675_p10, 1, 0 }
  0x1d   : > { %s422_s17 = sshll.u32 %s5529_s16, 4  ;;  %p4677_p11 = pneg %p5675_p10  ;;  %s423_s17 = int_to_ptr.vmem [resolvable:$true] %s422_s17 }
  0x1e   : > { %s454_s26 = sshll.u32 %s5530_s25, 4  ;;  %s6762_s7 = sld [smem:[#allocation24_spill]]  ;;  %s5687_s26 = int_to_ptr.vmem [resolvable:$true] %s454_s26 }
  0x1f   : > { %p5683_p12 = pnand %p6735_p9, %p4677_p11 }
  0x21   : > { %p5697_p0 = pneg %p5683_p12 }
  0x24   : > { %s5313_s24 = scalar_lea.hbm %s6762_s7, 16384 }
  0x25   : > { %p5314_p13 = scmp.ne.s32.totalorder %s6762_s7, %s5313_s24  ;;  %p5320_p3 = scmp.lt.u32.totalorder %s5313_s24, %s6762_s7 }
  0x27   : > { %p5316_p1 = pnand %p5697_p0, %p5314_p13 }
  0x29   : > { %p5317_p2 = pneg %p5316_p1 }
  0x2b   : > { %p5322_p4 = pnand %p5320_p3, %p5317_p2 }
  0x2d   : > { %5325 = shalt.err (!%p5322_p4)
}
  0x2e   : > { %s5326_s20 = scalar_lea.vmem %s423_s17, 16384  ;;  %p5334_p9 = scmp.lt.s32.totalorder %s423_s17, %s423_s17 }
  0x2f   : > { %p5327_p7 = scmp.ne.s32.totalorder %s423_s17, %s5326_s20  ;;  %p5335_p6 = scmp.lt.s32.totalorder %s5326_s20, %s5326_s20 }
  0x31   : > { %p5329_p8 = pnand %p5327_p7, %p5697_p0  ;;  %p5336_p5 = por %p5335_p6, %p5334_p9 }
  0x33   : > { %p5330_p11 = pneg %p5329_p8 }
  0x35   : > { %p5337_p10 = pnand %p5336_p5, %p5330_p11 }
  0x37   : > { %5340 = shalt.err (!%p5337_p10)
}
  0x38   : > { %s6743_s18 = smov 256   ;;  %s6744_s27 = smov 16  }
  0x39   : > { %4683 = dma.hbm_to_vmem [thread:$0]  (!%p5683_p12), %s6762_s7, 16384, %s423_s17, [#allocation6], %s6743_s18, %s6743_s18, %s6744_s27  }
  0x3a   : > { %s6764_s11 = sld [smem:[#allocation25_spill]] }
  0x40   : > { %s5341_s15 = scalar_lea.hbm %s6764_s11, 2048 }
  0x41   : > { %p5342_p5 = scmp.ne.s32.totalorder %s6764_s11, %s5341_s15  ;;  %p5348_p10 = scmp.lt.u32.totalorder %s5341_s15, %s6764_s11 }
  0x43   : > { %p5344_p6 = pnand %p5342_p5, %p5697_p0 }
  0x45   : > { %p5345_p9 = pneg %p5344_p6 }
  0x47   : > { %p5350_p13 = pnand %p5348_p10, %p5345_p9 }
  0x49   : > { %5353 = shalt.err (!%p5350_p13)
}
  0x4a   : > { %s5354_s17 = scalar_lea.vmem %s5687_s26, 2048  ;;  %p5362_p4 = scmp.lt.s32.totalorder %s5687_s26, %s5687_s26 }
  0x4b   : > { %p5355_p1 = scmp.ne.s32.totalorder %s5687_s26, %s5354_s17  ;;  %p5363_p7 = scmp.lt.s32.totalorder %s5354_s17, %s5354_s17 }
  0x4d   : > { %p5357_p2 = pnand %p5355_p1, %p5697_p0  ;;  %p5364_p8 = por %p5363_p7, %p5362_p4 }
  0x4f   : > { %p5358_p3 = pneg %p5357_p2 }
  0x51   : > { %p5365_p11 = pnand %p5364_p8, %p5358_p3 }
  0x53   : > { %5368 = shalt.err (!%p5365_p11)
}
  0x54   : > { %s5533_s28 = smov 64   ;;  %s5534_s14 = smov 4  }
  0x55   : > { %4689 = dma.hbm_to_vmem [thread:$0]  (!%p5683_p12), %s6764_s11, 2048, %s5687_s26, [#allocation9], %s5533_s28, %s5533_s28, %s5534_s14  }
  0x56   : > { %s5535_s21 = smov [#allocation2]   ;;  %s5369_s20 = scalar_lea.hbm %s6716_s3, 1024 }
  0x57   : > { %s400_s24 = sshll.u32 %s5535_s21, 4  ;;  %p5370_p5 = scmp.ne.s32.totalorder %s6716_s3, %s5369_s20  ;;  %s401_s24 = int_to_ptr.vmem [resolvable:$true] %s400_s24 }
  0x58   : > { %p5376_p10 = scmp.lt.u32.totalorder %s5369_s20, %s6716_s3 }
  0x59   : > { %p5372_p6 = pnand %p5370_p5, %p5697_p0 }
  0x5b   : > { %p5373_p9 = pneg %p5372_p6 }
  0x5d   : > { %p5378_p13 = pnand %p5376_p10, %p5373_p9 }
  0x5f   : > { %5381 = shalt.err (!%p5378_p13)
}
  0x60   : > { %s5382_s26 = scalar_lea.vmem %s401_s24, 1024  ;;  %p5390_p4 = scmp.lt.s32.totalorder %s401_s24, %s401_s24 }
  0x61   : > { %p5383_p1 = scmp.ne.s32.totalorder %s401_s24, %s5382_s26  ;;  %p5391_p7 = scmp.lt.s32.totalorder %s5382_s26, %s5382_s26 }
  0x63   : > { %p5385_p2 = pnand %p5383_p1, %p5697_p0  ;;  %p5392_p8 = por %p5391_p7, %p5390_p4 }
  0x65   : > { %p5386_p3 = pneg %p5385_p2 }
  0x67   : > { %p5393_p11 = pnand %p5392_p8, %p5386_p3 }
  0x69   : > { %5396 = shalt.err (!%p5393_p11)
}
  0x6a   : > { %s5536_s18 = smov 128   ;;  %s5537_s28 = smov 8  }
  0x6b   : > { %4680 = dma.hbm_to_vmem [thread:$0]  (!%p5683_p12), %s6716_s3, 1024, %s401_s24, [#allocation3], %s5536_s18, %s5536_s18, %s5537_s28  }
  0x6c   : > { %s5538_s14 = smov [#allocation7]   ;;  %s5539_s19 = smov [#allocation10]  }
  0x6d   : > { %s438_s15 = sshll.u32 %s5538_s14, 4  ;;  %s470_s21 = sshll.u32 %s5539_s19, 4  ;;  %s439_s15 = int_to_ptr.vmem [resolvable:$true] %s438_s15  ;;  %s471_s21 = int_to_ptr.vmem [resolvable:$true] %s470_s21 }
  0x6e   : > { %s5397_s20 = scalar_lea.hbm %s6722_s9, 8192 }
  0x6f   : > { %p5398_p5 = scmp.ne.s32.totalorder %s6722_s9, %s5397_s20  ;;  %p5404_p10 = scmp.lt.u32.totalorder %s5397_s20, %s6722_s9 }
  0x71   : > { %p5400_p6 = pnand %p5398_p5, %p5697_p0 }
  0x73   : > { %p5401_p9 = pneg %p5400_p6 }
  0x75   : > { %p5406_p13 = pnand %p5404_p10, %p5401_p9 }
  0x77   : > { %5409 = shalt.err (!%p5406_p13)
}
  0x78   : > { %s5410_s24 = scalar_lea.vmem %s439_s15, 8192  ;;  %p5418_p4 = scmp.lt.s32.totalorder %s439_s15, %s439_s15 }
  0x79   : > { %p5411_p1 = scmp.ne.s32.totalorder %s439_s15, %s5410_s24  ;;  %p5419_p7 = scmp.lt.s32.totalorder %s5410_s24, %s5410_s24 }
  0x7b   : > { %p5413_p2 = pnand %p5411_p1, %p5697_p0  ;;  %p5420_p8 = por %p5419_p7, %p5418_p4 }
  0x7d   : > { %p5414_p3 = pneg %p5413_p2 }
  0x7f   : > { %p5421_p11 = pnand %p5420_p8, %p5414_p3 }
  0x81   : > { %5424 = shalt.err (!%p5421_p11)
}
  0x82   : > { %4686 = dma.hbm_to_vmem [thread:$0]  (!%p5683_p12), %s6722_s9, 8192, %s439_s15, [#allocation6], %s5536_s18, %s5536_s18, %s5537_s28  }
  0x83   : > { %s5425_s14 = scalar_lea.hbm %s6726_s13, 4096 }
  0x84   : > { %p5426_p5 = scmp.ne.s32.totalorder %s6726_s13, %s5425_s14  ;;  %p5432_p10 = scmp.lt.u32.totalorder %s5425_s14, %s6726_s13 }
  0x86   : > { %p5428_p6 = pnand %p5426_p5, %p5697_p0 }
  0x88   : > { %p5429_p9 = pneg %p5428_p6 }
  0x8a   : > { %p5434_p13 = pnand %p5432_p10, %p5429_p9 }
  0x8c   : > { %5437 = shalt.err (!%p5434_p13)
}
  0x8d   : > { %s5438_s17 = scalar_lea.vmem %s471_s21, 4096  ;;  %p5446_p4 = scmp.lt.s32.totalorder %s471_s21, %s471_s21 }
  0x8e   : > { %p5439_p1 = scmp.ne.s32.totalorder %s471_s21, %s5438_s17  ;;  %p5447_p7 = scmp.lt.s32.totalorder %s5438_s17, %s5438_s17 }
  0x90   : > { %p5441_p2 = pnand %p5439_p1, %p5697_p0  ;;  %p5448_p8 = por %p5447_p7, %p5446_p4 }
  0x92   : > { %p5442_p3 = pneg %p5441_p2 }
  0x94   : > { %p5449_p11 = pnand %p5448_p8, %p5442_p3 }
  0x96   : > { %5452 = shalt.err (!%p5449_p11)
}
  0x97   : > { %s6765_s18 = smov 16   ;;  %s6766_s28 = smov 256  }
  0x98   : > { %4692 = dma.hbm_to_vmem [thread:$0]  (!%p5683_p12), %s6726_s13, 4096, %s471_s21, [#allocation9], %s6766_s28, %s6766_s28, %s6765_s18  }
  0x99   : > { %p6767_p5 = scmp.ne.s32.totalorder %s6760_s30, 0 }
  0x9a   : > { %p6768_p0 = scmp.eq.s32.totalorder (!%p6767_p5), %s5647_s22, 0 }
  0x9b   : > { %498 = sbr.rel (%p6767_p5) target bundleno = 2177 (0x881), region = 80 }
  0xa2   : > { %5498 = dma.done.wait (%p6768_p0), [#allocation3], 1024   ;;  %p6769_p6 = pmov %p6768_p0 }
  0xa3   : > { %p6770_p9 = pmov %p6768_p0 }
  0xa4   : > { %5500 = vsyncadd (%p6769_p6), [#allocation3], 4294966272 }
  0xa5   : > { %5502 = dma.done.wait (%p6770_p9), [#allocation6], 24576   ;;  %p6771_p10 = pmov %p6768_p0 }
  0xa6   : > { %p6772_p13 = pmov %p6768_p0 }
  0xa7   : > { %5504 = vsyncadd (%p6771_p10), [#allocation6], 4294942720 }
  0xa8   : > { %5506 = dma.done.wait (%p6772_p13), [#allocation9], 6144   ;;  %p6773_p12 = pmov %p6768_p0 }
  0xa9   : > { %s4191_s30 = sshll.u32 %s5647_s22, 3  ;;  %v5540_v0 = vmov 1   ;;  %v5541_v1 = vmov 0   ;;  %v4773_v4 = vld [vmem:[#allocation2 + $0x4] ss:$8 sps:$4 sm:$0xff]   ;;  %v5542_v8 = vmov 2   ;;  %v620_v39 = vlaneseq }
  0xaa   : > { %5508 = vsyncadd (%p6773_p12), [#allocation9], 4294961152  ;;  %4757 = vset.pattern.permute.xlu1 %v5540_v0  ;;  %4756 = vset.pattern.permute.xlu0 %v5541_v1  ;;  %p563_p1 = scmp.lt.s32.totalorder %s4191_s30, 63  ;;  %v4775_v5 = vld [vmem:[#allocation2] ss:$8 sps:$4 sm:$0xff]   ;;  %vm823_vm0 = vcmask 523264  }
  0xab   : > { %868 = vmatprep.mubr.bf16.mxu0 %v5541_v1  ;;  %836 = vmatprep.subr.bf16.mxu0 %v4773_v4  ;;  %v4776_v6 = vld [vmem:[#allocation2 + $0x14] ss:$8 sps:$4 sm:$0xff]   ;;  %v4778_v7 = vld [vmem:[#allocation2 + $0x10] ss:$8 sps:$4 sm:$0xff]   ;;  %v4779_v11 = vld [vmem:[#allocation2 + $0x24] ss:$8 sps:$4 sm:$0xff]  }
  0xac   : > { %s6789_s30 = smov (!%p563_p1, %s4191_s30), 63  ;;  %837 = vmatpush1.bf16.msra.mxu0 %v4775_v5  ;;  %v4781_v12 = vld [vmem:[#allocation2 + $0x20] ss:$8 sps:$4 sm:$0xff]   ;;  %v4782_v13 = vld [vmem:[#allocation2 + $0x34] ss:$8 sps:$4 sm:$0xff]   ;;  %v5901_v42 = vshrl.u32 %v620_v39, 7 }
  0xad   : > { %s4192_s23 = sshll.u32 %s6789_s30, 3  ;;  %838 = vmatprep.subr.bf16.mxu0 %v4776_v6  ;;  %v4784_v14 = vld [vmem:[#allocation2 + $0x30] ss:$8 sps:$4 sm:$0xff]   ;;  %v4785_v19 = vld [vmem:[%s6718_s5 + $0x4] ss:$16 sps:$4 sm:$0xff]   ;;  %s6774_s17 = sld [smem:[#allocation26_spill]] }
  0xae   : > { %s5817_s24 = scalar_lea.vmem %s6713_s0, %s4192_s23  ;;  %v4789_v20 = vld [vmem:[%s6718_s5 + $0xc] ss:$16 sps:$4 sm:$0xff]   ;;  %v4790_v21 = vld [vmem:[%s6718_s5] ss:$16 sps:$4 sm:$0xff]   ;;  %v4791_v22 = vld [vmem:[%s6718_s5 + $0x24] ss:$16 sps:$4 sm:$0xff]   ;;  %1339 = vmatprep.subr.bf16.mxu1 %v4785_v19 }
  0xaf   : > { %v570_v2 = vld [vmem:[%s5817_s24] sm:$0xff]  ;;  %v571_v3 = vld [vmem:[%s5817_s24 + $0x8] sm:$0xff]  ;;  %v572_v9 = vld [vmem:[%s5817_s24 + $0x10] sm:$0xff]  ;;  %1340 = vmatpush1.bf16.msra.mxu1 %v4790_v21  ;;  %v5925_v51 = vsub.s32 1, %v5901_v42  ;;  %v5928_v52 = vsub.s32 0, %v5901_v42  ;;  %v5931_v55 = vsub.s32 2, %v5901_v42 }
  0xb0   : > { %633 = vperm.xlu1 %4757, %v570_v2   ;;  %582 = vperm.xlu0 %4756, %v570_v2   ;;  %v573_v10 = vld [vmem:[%s5817_s24 + $0x18] sm:$0xff]  ;;  %v574_v15 = vld [vmem:[%s5817_s24 + $0x20] sm:$0xff]  ;;  %v575_v16 = vld [vmem:[%s5817_s24 + $0x28] sm:$0xff]  ;;  %s6775_s15 = sld [smem:[#allocation27_spill]]  ;;  %s6776_s26 = sld [smem:[#allocation17_spill]] }
  0xb1   : > { %839 = vmatpush1.bf16.msra.mxu0 %v4778_v7  ;;  %v577_v17 = vld [vmem:[%s5817_s24 + $0x38] sm:$0xff]  ;;  %v576_v18 = vld [vmem:[%s5817_s24 + $0x30] sm:$0xff]  ;;  %1341 = vmatprep.subr.bf16.mxu1 %v4791_v22  ;;  %v578_v47 = vld [vmem:[%s6714_s1] sm:$0xf]  ;;  %s4518_s21 = sshll.u32 %s5647_s22, 12  ;;  %s6777_s7 = sld [smem:[#allocation22_spill]] }
  0xb2   : > { %840 = vmatprep.subr.bf16.mxu0 %v4779_v11  ;;  %v4796_v23 = vld [vmem:[%s6718_s5 + $0x20] ss:$16 sps:$4 sm:$0xff]   ;;  %v4797_v24 = vld [vmem:[%s6718_s5 + $0x44] ss:$16 sps:$4 sm:$0xff]   ;;  %v579_v50 = vunpack.c.l.bf16 %v578_v47  ;;  %v4795_v19 = vld [vmem:[%s6718_s5 + $0x2c] ss:$16 sps:$4 sm:$0xff]  }
  0xb3   : > { %1342 = vmatpush1.bf16.msra.mxu1 %v4796_v23  ;;  %v4802_v25 = vld [vmem:[%s6718_s5 + $0x40] ss:$16 sps:$4 sm:$0xff]   ;;  %v4803_v26 = vld [vmem:[%s6718_s5 + $0x64] ss:$16 sps:$4 sm:$0xff]   ;;  %s6778_s12 = sld [smem:[#allocation28_spill]]  ;;  %s5543_s29 = smov [#allocation11]  }
  0xb4   : > { %637 = vperm.xlu1 %4757, %v571_v3   ;;  %587 = vperm.xlu0 %4756, %v571_v3   ;;  %v4808_v27 = vld [vmem:[%s6718_s5 + $0x60] ss:$16 sps:$4 sm:$0xff]   ;;  %v4809_v28 = vld [vmem:[%s6718_s5 + $0x84] ss:$16 sps:$4 sm:$0xff]   ;;  %v5934_v56 = vrot.slane %v579_v50, %v5925_v51  ;;  %v5937_v57 = vrot.slane %v579_v50, %v5928_v52  ;;  %v5940_v60 = vrot.slane %v579_v50, %v5931_v55  ;;  %v4817_v50 = vld [vmem:[%s6718_s5 + $0xa8] ss:$16 sps:$4 sm:$0xff]  }
  0xb5   : > { %841 = vmatpush1.bf16.msra.mxu0 %v4781_v12  ;;  %1343 = vmatprep.subr.bf16.mxu1 %v4797_v24  ;;  %v4814_v29 = vld [vmem:[%s6718_s5 + $0x80] ss:$16 sps:$4 sm:$0xff]   ;;  %v4815_v30 = vld [vmem:[%s6718_s5 + $0xa4] ss:$16 sps:$4 sm:$0xff]   ;;  %v4793_v24 = vld [vmem:[%s6718_s5 + $0x28] ss:$16 sps:$4 sm:$0xff]  }
  0xb6   : > { %842 = vmatprep.subr.bf16.mxu0 %v4782_v13  ;;  %v4820_v31 = vld [vmem:[%s6718_s5 + $0xa0] ss:$16 sps:$4 sm:$0xff]   ;;  %v4821_v32 = vld [vmem:[%s6718_s5 + $0xc4] ss:$16 sps:$4 sm:$0xff]   ;;  %s559_s30 = sand.u32 1, %s6776_s26   ;;  %s5457_s25 = sshll.u32 %s5543_s29, 4  ;;  %s5458_s25 = int_to_ptr.vmem [resolvable:$false] %s5457_s25 }
  0xb7   : > { %1344 = vmatpush1.bf16.msra.mxu1 %v4802_v25  ;;  %v4826_v33 = vld [vmem:[%s6718_s5 + $0xc0] ss:$16 sps:$4 sm:$0xff]   ;;  %v4827_v34 = vld [vmem:[%s6718_s5 + $0xe4] ss:$16 sps:$4 sm:$0xff]   ;;  %v4801_v25 = vld [vmem:[%s6718_s5 + $0x4c] ss:$16 sps:$4 sm:$0xff]  }
  0xb8   : > { %4759 = vset.pattern.permute.xlu1 %v5542_v8  ;;  %4758 = vset.pattern.permute.xlu0 %v5542_v8  ;;  %v4832_v35 = vld [vmem:[%s6718_s5 + $0xe0] ss:$16 sps:$4 sm:$0xff]   ;;  %v4833_v36 = vld [vmem:[%s6718_s5 + $0x104] ss:$16 sps:$4 sm:$0xff]   ;;  %s4190_s23 = sshll.u32 %s559_s30, 8  ;;  %s6672_s22 = scalar_lea.sflag [#allocation4], %s559_s30 }
  0xb9   : > { %689 = vperm.xlu1 %4759, %v571_v3   ;;  %685 = vperm.xlu0 %4758, %v570_v2   ;;  %v4838_v37 = vld [vmem:[%s6718_s5 + $0x100] ss:$16 sps:$4 sm:$0xff]   ;;  %v4839_v38 = vld [vmem:[%s6718_s5 + $0x124] ss:$16 sps:$4 sm:$0xff]   ;;  %s6599_s16 = scalar_lea.vmem [#allocation11], %s4190_s23  ;;  %s6658_s14 = scalar_lea.hbm %s6778_s12, %s4518_s21 }
  0xba   : > { %843 = vmatpush1.bf16.msra.mxu0 %v4784_v14  ;;  %1345 = vmatprep.subr.bf16.mxu1 %v4803_v26  ;;  %v4844_v40 = vld [vmem:[%s6718_s5 + $0x120] ss:$16 sps:$4 sm:$0xff]   ;;  %v4845_v41 = vld [vmem:[%s6718_s5 + $0x144] ss:$16 sps:$4 sm:$0xff]   ;;  %s4064_s24 = sshll.u32 %s6599_s16, 4  ;;  %p6779_p3 = scmp.ne.s32.totalorder %s6777_s7, 0  ;;  %s6660_s24 = int_to_ptr.vmem [resolvable:$true] %s4064_s24 }
  0xbb   : > { %1412 = vmatprep.subr.bf16.mxu0 %v4789_v20  ;;  %1346 = vmatpush1.bf16.msra.mxu1 %v4808_v27  ;;  %v4850_v43 = vld [vmem:[%s6718_s5 + $0x140] ss:$16 sps:$4 sm:$0xff]   ;;  %v4851_v44 = vld [vmem:[%s6718_s5 + $0x164] ss:$16 sps:$4 sm:$0xff]   ;;  %s5453_s19 = scalar_lea.vmem %s6660_s24, 4096  ;;  %s5459_s20 = scalar_lea.vmem %s5458_s25, 8192 }
  0xbc   : > { %1347 = vmatprep.subr.bf16.mxu1 %v4809_v28  ;;  %v4856_v45 = vld [vmem:[%s6718_s5 + $0x160] ss:$16 sps:$4 sm:$0xff]   ;;  %v4857_v46 = vld [vmem:[%s6718_s5 + $0x184] ss:$16 sps:$4 sm:$0xff]   ;;  %p5454_p2 = scmp.ne.s32.totalorder %s6660_s24, %s5453_s19  ;;  %p5460_p8 = scmp.lt.s32.totalorder %s6660_s24, %s5458_s25 }
  0xbd   : > { %4760 = vset.pattern.permute.xlu1 %v5541_v1  ;;  %4761 = vset.pattern.permute.xlu0 %v5541_v1  ;;  %v4862_v48 = vld [vmem:[%s6718_s5 + $0x180] ss:$16 sps:$4 sm:$0xff]   ;;  %v4863_v49 = vld [vmem:[%s6718_s5 + $0x1a4] ss:$16 sps:$4 sm:$0xff]   ;;  %p5461_p11 = scmp.lt.s32.totalorder %s5459_s20, %s5453_s19 }
  0xbe   : > { %592 = vperm.xlu1 %4760, %v572_v9   ;;  %597 = vperm.xlu0 %4761, %v573_v10   ;;  %p5455_p4 = pnand %p5454_p2, %p6779_p3 }
  0xbf   : > { %1348 = vmatpush1.bf16.msra.mxu1 %v4814_v29  ;;  %p5462_p5 = por %p5461_p11, %p5460_p8 }
  0xc0   : > { %1349 = vmatprep.subr.bf16.mxu1 %v4815_v30  ;;  %p5456_p7 = pneg %p5455_p4 }
  0xc2   : > { %4762 = vset.pattern.permute.xlu1 %v5540_v0  ;;  %4763 = vset.pattern.permute.xlu0 %v5542_v8  ;;  %p5463_p0 = pnand %p5462_p5, %p5456_p7 }
  0xc3   : > { %641 = vperm.xlu1 %4762, %v572_v9   ;;  %693 = vperm.xlu0 %4763, %v572_v9  }
  0xc4   : > { %1350 = vmatpush1.bf16.msra.mxu1 %v4820_v31  ;;  %v4799_v31 = vld [vmem:[%s6718_s5 + $0x48] ss:$16 sps:$4 sm:$0xff]  }
  0xc5   : > { %1351 = vmatprep.subr.bf16.mxu1 %v4821_v32  ;;  %v4807_v32 = vld [vmem:[%s6718_s5 + $0x6c] ss:$16 sps:$4 sm:$0xff]  }
  0xc7   : > { %645 = vperm.xlu1 %4762, %v573_v10   ;;  %701 = vperm.xlu0 %4763, %v574_v15  }
  0xc8   : > { %1352 = vmatpush1.bf16.msra.mxu1 %v4826_v33 }
  0xc9   : > { %1353 = vmatprep.subr.bf16.mxu1 %v4827_v34 }
  0xcb   : > { %4764 = vset.pattern.permute.xlu1 %v5542_v8  ;;  %4767 = vset.pattern.permute.xlu0 %v5541_v1 }
  0xcc   : > { %697 = vperm.xlu1 %4764, %v573_v10   ;;  %607 = vperm.xlu0 %4767, %v575_v16  }
  0xcd   : > { %1354 = vmatpush1.bf16.msra.mxu1 %v4832_v35 }
  0xce   : > { %1355 = vmatprep.subr.bf16.mxu1 %v4833_v36 }
  0xd0   : > { %4765 = vset.pattern.permute.xlu1 %v5541_v1  ;;  %617 = vperm.xlu0 %4767, %v577_v17  }
  0xd1   : > { %602 = vperm.xlu1 %4765, %v574_v15   ;;  %1356 = vmatpush1.bf16.msra.mxu1 %v4838_v37  ;;  %v4805_v37 = vld [vmem:[%s6718_s5 + $0x68] ss:$16 sps:$4 sm:$0xff]  }
  0xd2   : > { %1357 = vmatprep.subr.bf16.mxu1 %v4839_v38  ;;  %v4813_v38 = vld [vmem:[%s6718_s5 + $0x8c] ss:$16 sps:$4 sm:$0xff]  }
  0xd4   : > { %4771 = vset.pattern.permute.xlu0 %v5542_v8 }
  0xd5   : > { %4766 = vset.pattern.permute.xlu1 %v5540_v0  ;;  %709 = vperm.xlu0 %4771, %v576_v18  }
  0xd6   : > { %649 = vperm.xlu1 %4766, %v574_v15   ;;  %1358 = vmatpush1.bf16.msra.mxu1 %v4844_v40 }
  0xd7   : > { %1359 = vmatprep.subr.bf16.mxu1 %v4845_v41 }
  0xda   : > { %653 = vperm.xlu1 %4766, %v575_v16   ;;  %1360 = vmatpush1.bf16.msra.mxu1 %v4850_v43 }
  0xdb   : > { %1361 = vmatprep.subr.bf16.mxu1 %v4851_v44  ;;  %v4811_v44 = vld [vmem:[%s6718_s5 + $0x88] ss:$16 sps:$4 sm:$0xff]  }
  0xde   : > { %4768 = vset.pattern.permute.xlu1 %v5542_v8  ;;  %1362 = vmatpush1.bf16.msra.mxu1 %v4856_v45  ;;  %v4819_v45 = vld [vmem:[%s6718_s5 + $0xac] ss:$16 sps:$4 sm:$0xff]  }
  0xdf   : > { %705 = vperm.xlu1 %4768, %v575_v16   ;;  %1363 = vmatprep.subr.bf16.mxu1 %v4857_v46 }
  0xe2   : > { %1364 = vmatpush1.bf16.msra.mxu1 %v4862_v48 }
  0xe3   : > { %4769 = vset.pattern.permute.xlu1 %v5541_v1  ;;  %1365 = vmatprep.subr.bf16.mxu1 %v4863_v49 }
  0xe4   : > { %612 = vperm.xlu1 %4769, %v576_v18  }
  0xe8   : > { %4770 = vset.pattern.permute.xlu1 %v5540_v0 }
  0xe9   : > { %657 = vperm.xlu1 %4770, %v576_v18  }
  0xed   : > { %661 = vperm.xlu1 %4770, %v577_v17  }
  0xf1   : > { %4772 = vset.pattern.permute.xlu1 %v5542_v8  ;;  %v5951_v8 = vld [vmem:[%s6715_s2] ss:$0 sm:$0xff] }
  0xf2   : > { %713 = vperm.xlu1 %4772, %v577_v17   ;;  %v4787_v17 = vld [vmem:[%s6718_s5 + $0x8] ss:$16 sps:$4 sm:$0xff]  }
 0x12f   : > { %v634_v53 = vpop.permute.xlu1 %633  ;;  %v583_v54 = vpop.permute.xlu0 %582 }
 0x130   : > { %v668_v61 = vmul.f32 %v5934_v56, %v634_v53  ;;  %v624_v62 = vmul.f32 %v5937_v57, %v583_v54  ;;  %v4825_v54 = vld [vmem:[%s6718_s5 + $0xcc] ss:$16 sps:$4 sm:$0xff]  }
 0x132   : > { %v676_v4 = vadd.f32 %v668_v61, %v624_v62  ;;  %v4823_v62 = vld [vmem:[%s6718_s5 + $0xc8] ss:$16 sps:$4 sm:$0xff]  }
 0x133   : > { %v638_v58 = vpop.permute.xlu1 %637  ;;  %v588_v59 = vpop.permute.xlu0 %587 }
 0x134   : > { %v669_v63 = vmul.f32 %v5934_v56, %v638_v58  ;;  %v625_v0 = vmul.f32 %v5937_v57, %v588_v59 }
 0x136   : > { %v677_v5 = vadd.f32 %v669_v63, %v625_v0 }
 0x138   : > { %v690_v2 = vpop.permute.xlu1 %689  ;;  %v686_v3 = vpop.permute.xlu0 %685 }
 0x139   : > { %v721_v6 = vmul.f32 %v5940_v60, %v690_v2  ;;  %v720_v7 = vmul.f32 %v5940_v60, %v686_v3  ;;  %v4831_v3 = vld [vmem:[%s6718_s5 + $0xec] ss:$16 sps:$4 sm:$0xff]  }
 0x13b   : > { %v729_v9 = vadd.f32 %v721_v6, %v677_v5  ;;  %v728_v10 = vadd.f32 %v720_v7, %v676_v4  ;;  %v4829_v6 = vld [vmem:[%s6718_s5 + $0xe8] ss:$16 sps:$4 sm:$0xff]  }
 0x13d   : > { %v744_v11 = vadd.f32 %v5951_v8, %v729_v9  ;;  %v743_v12 = vadd.f32 %v5951_v8, %v728_v10  ;;  %v593_v13 = vpop.permute.xlu1 %592  ;;  %v598_v14 = vpop.permute.xlu0 %597  ;;  %v4837_v9 = vld [vmem:[%s6718_s5 + $0x10c] ss:$16 sps:$4 sm:$0xff]  }
 0x13e   : > { %v626_v23 = vmul.f32 %v5937_v57, %v593_v13  ;;  %v627_v29 = vmul.f32 %v5937_v57, %v598_v14  ;;  %v4835_v13 = vld [vmem:[%s6718_s5 + $0x108] ss:$16 sps:$4 sm:$0xff]  }
 0x13f   : > { %v752_v15 = vmax.f32 %v744_v11, 0.0  ;;  %v751_v16 = vmax.f32 %v743_v12, 0.0 }
 0x141   : > { %v759_v18 = vpack.c.bf16 %v752_v15, %v751_v16  ;;  %v4843_v16 = vld [vmem:[%s6718_s5 + $0x12c] ss:$16 sps:$4 sm:$0xff]  }
 0x142   : > { %v642_v20 = vpop.permute.xlu1 %641  ;;  %v694_v22 = vpop.permute.xlu0 %693 }
 0x143   : > { %v670_v21 = vmul.f32 %v5934_v56, %v642_v20  ;;  %4202 = vmatmul.mubr.msk.bf16.vlgmr.msra.gmra.mrb[0].mxu0 %vm823_vm0, %v759_v18  ;;  %v722_v27 = vmul.f32 %v5940_v60, %v694_v22  ;;  %v4841_v20 = vld [vmem:[%s6718_s5 + $0x128] ss:$16 sps:$4 sm:$0xff]  }
 0x144   : > { %878 = vmatprep.mubr.bf16.mxu0 %v5541_v1  ;;  %1413 = vmatpush1.bf16.msra.mxu0 %v4787_v17 }
 0x145   : > { %1414 = vmatprep.subr.bf16.mxu0 %v4795_v19  ;;  %v678_v26 = vadd.f32 %v670_v21, %v626_v23  ;;  %v4849_v23 = vld [vmem:[%s6718_s5 + $0x14c] ss:$16 sps:$4 sm:$0xff]  }
 0x146   : > { %v646_v28 = vpop.permute.xlu1 %645  ;;  %v702_v48 = vpop.permute.xlu0 %701 }
 0x147   : > { %v671_v30 = vmul.f32 %v5934_v56, %v646_v28  ;;  %v730_v33 = vadd.f32 %v722_v27, %v678_v26  ;;  %v724_v0 = vmul.f32 %v5940_v60, %v702_v48  ;;  %v4847_v26 = vld [vmem:[%s6718_s5 + $0x148] ss:$16 sps:$4 sm:$0xff]  }
 0x148   : > { %1415 = vmatpush1.bf16.msra.mxu0 %v4793_v24 }
 0x149   : > { %1416 = vmatprep.subr.bf16.mxu0 %v4801_v25  ;;  %v679_v35 = vadd.f32 %v671_v30, %v627_v29  ;;  %v745_v39 = vadd.f32 %v5951_v8, %v730_v33  ;;  %v4855_v29 = vld [vmem:[%s6718_s5 + $0x16c] ss:$16 sps:$4 sm:$0xff]  }
 0x14b   : > { %v698_v34 = vpop.permute.xlu1 %697  ;;  %v753_v46 = vmax.f32 %v745_v39, 0.0  ;;  %v608_v61 = vpop.permute.xlu0 %607  ;;  %v4859_v39 = vld [vmem:[%s6718_s5 + $0x188] ss:$16 sps:$4 sm:$0xff]  }
 0x14c   : > { %v723_v36 = vmul.f32 %v5940_v60, %v698_v34  ;;  %1417 = vmatpush1.bf16.msra.mxu0 %v4799_v31  ;;  %v629_v5 = vmul.f32 %v5937_v57, %v608_v61  ;;  %v4853_v34 = vld [vmem:[%s6718_s5 + $0x168] ss:$16 sps:$4 sm:$0xff]  }
 0x14d   : > { %1418 = vmatprep.subr.bf16.mxu0 %v4807_v32  ;;  %v4877_v61 = vld [vmem:[%s6718_s5 + $0x1e8] ss:$16 sps:$4 sm:$0xff]  }
 0x14e   : > { %v731_v40 = vadd.f32 %v723_v36, %v679_v35  ;;  %v4861_v35 = vld [vmem:[%s6718_s5 + $0x18c] ss:$16 sps:$4 sm:$0xff]  }
 0x14f   : > { %v618_v19 = vpop.permute.xlu0 %617 }
 0x150   : > { %v746_v41 = vadd.f32 %v5951_v8, %v731_v40  ;;  %v603_v43 = vpop.permute.xlu1 %602  ;;  %1419 = vmatpush1.bf16.msra.mxu0 %v4805_v37  ;;  %v631_v37 = vmul.f32 %v5937_v57, %v618_v19 }
 0x151   : > { %1420 = vmatprep.subr.bf16.mxu0 %v4813_v38  ;;  %v628_v59 = vmul.f32 %v5937_v57, %v603_v43 }
 0x152   : > { %v754_v47 = vmax.f32 %v746_v41, 0.0  ;;  %v4867_v41 = vld [vmem:[%s6718_s5 + $0x1ac] ss:$16 sps:$4 sm:$0xff]  }
 0x154   : > { %v760_v49 = vpack.c.bf16 %v754_v47, %v753_v46  ;;  %1421 = vmatpush1.bf16.msra.mxu0 %v4811_v44  ;;  %v710_v28 = vpop.permute.xlu0 %709 }
 0x155   : > { %v650_v53 = vpop.permute.xlu1 %649  ;;  %1422 = vmatprep.subr.bf16.mxu0 %v4819_v45  ;;  %v726_v32 = vmul.f32 %v5940_v60, %v710_v28  ;;  %v4893_v28 = vld [vmem:[#allocation5 + $0x40] ss:$16 sps:$4 sm:$0xff]  }
 0x156   : > { %v672_v58 = vmul.f32 %v5934_v56, %v650_v53  ;;  %4203 = vmatmul.mubr.msk.bf16.gmra.mrb[4].mxu0 %vm823_vm0, %v760_v49  ;;  %v4873_v53 = vld [vmem:[%s6718_s5 + $0x1cc] ss:$16 sps:$4 sm:$0xff]  }
 0x157   : > { %888 = vmatprep.mubr.bf16.mxu0 %v5541_v1 }
 0x158   : > { %1423 = vmatpush1.bf16.msra.mxu0 %v4817_v50  ;;  %v680_v63 = vadd.f32 %v672_v58, %v628_v59  ;;  %v4869_v50 = vld [vmem:[%s6718_s5 + $0x1c4] ss:$16 sps:$4 sm:$0xff]   ;;  %v4879_v59 = vld [vmem:[%s6718_s5 + $0x1ec] ss:$16 sps:$4 sm:$0xff]  }
 0x159   : > { %v654_v2 = vpop.permute.xlu1 %653  ;;  %1424 = vmatprep.subr.bf16.mxu0 %v4825_v54  ;;  %v4874_v54 = vld [vmem:[%s6718_s5 + $0x1c0] ss:$16 sps:$4 sm:$0xff]   ;;  %v4875_v58 = vld [vmem:[%s6718_s5 + $0x1e4] ss:$16 sps:$4 sm:$0xff]  }
 0x15a   : > { %v673_v4 = vmul.f32 %v5934_v56, %v654_v2  ;;  %v732_v7 = vadd.f32 %v724_v0, %v680_v63  ;;  %v4883_v63 = vld [vmem:[#allocation5 + $0x4] ss:$16 sps:$4 sm:$0xff]   ;;  %v4886_v0 = vld [vmem:[#allocation5 + $0xc] ss:$16 sps:$4 sm:$0xff]   ;;  %v771_v2 = vld [vmem:[%s6717_s4] sm:$0x3] }
 0x15c   : > { %1425 = vmatpush1.bf16.msra.mxu0 %v4823_v62  ;;  %v681_v11 = vadd.f32 %v673_v4, %v629_v5  ;;  %v747_v14 = vadd.f32 %v5951_v8, %v732_v7  ;;  %v4880_v62 = vld [vmem:[%s6718_s5 + $0x1e0] ss:$16 sps:$4 sm:$0xff]   ;;  %v6101_v4 = vrot.slane %v771_v2, %v5925_v51 }
 0x15d   : > { %1426 = vmatprep.subr.bf16.mxu0 %v4831_v3  ;;  %v6098_v3 = vrot.slane %v771_v2, %v5928_v52  ;;  %v4923_v2 = vld [vmem:[#allocation5 + $0xe0] ss:$16 sps:$4 sm:$0xff]  }
 0x15e   : > { %v706_v10 = vpop.permute.xlu1 %705  ;;  %v755_v21 = vmax.f32 %v747_v14, 0.0 }
 0x15f   : > { %v725_v12 = vmul.f32 %v5940_v60, %v706_v10 }
 0x160   : > { %1427 = vmatpush1.bf16.msra.mxu0 %v4829_v6 }
 0x161   : > { %v733_v15 = vadd.f32 %v725_v12, %v681_v11  ;;  %1428 = vmatprep.subr.bf16.mxu0 %v4837_v9 }
 0x163   : > { %v748_v17 = vadd.f32 %v5951_v8, %v733_v15  ;;  %v613_v18 = vpop.permute.xlu1 %612 }
 0x164   : > { %1429 = vmatpush1.bf16.msra.mxu0 %v4835_v13  ;;  %v630_v30 = vmul.f32 %v5937_v57, %v613_v18  ;;  %v4865_v57 = vld [vmem:[%s6718_s5 + $0x1a8] ss:$16 sps:$4 sm:$0xff]  }
 0x165   : > { %v756_v22 = vmax.f32 %v748_v17, 0.0  ;;  %1430 = vmatprep.subr.bf16.mxu0 %v4843_v16 }
 0x167   : > { %v761_v24 = vpack.c.bf16 %v756_v22, %v755_v21  ;;  %v4884_v21 = vld [vmem:[#allocation5 + $0x8] ss:$16 sps:$4 sm:$0xff]   ;;  %v4889_v22 = vld [vmem:[#allocation5 + $0x24] ss:$16 sps:$4 sm:$0xff]  }
 0x168   : > { %v658_v25 = vpop.permute.xlu1 %657  ;;  %1431 = vmatpush1.bf16.msra.mxu0 %v4841_v20  ;;  %v4881_v20 = vld [vmem:[#allocation5] ss:$16 sps:$4 sm:$0xff]  }
 0x169   : > { %v674_v27 = vmul.f32 %v5934_v56, %v658_v25  ;;  %4204 = vmatmul.mubr.msk.bf16.gmra.mrb[8].mxu0 %vm823_vm0, %v761_v24  ;;  %1432 = vmatprep.subr.bf16.mxu0 %v4849_v23  ;;  %v4892_v23 = vld [vmem:[#allocation5 + $0x2c] ss:$16 sps:$4 sm:$0xff]   ;;  %v4887_v24 = vld [vmem:[#allocation5 + $0x20] ss:$16 sps:$4 sm:$0xff]   ;;  %v4890_v25 = vld [vmem:[#allocation5 + $0x28] ss:$16 sps:$4 sm:$0xff]  }
 0x16a   : > { %898 = vmatprep.mubr.bf16.mxu0 %v5541_v1 }
 0x16b   : > { %v682_v31 = vadd.f32 %v674_v27, %v630_v30  ;;  %v4898_v27 = vld [vmem:[#allocation5 + $0x4c] ss:$16 sps:$4 sm:$0xff]   ;;  %v4901_v30 = vld [vmem:[#allocation5 + $0x64] ss:$16 sps:$4 sm:$0xff]  }
 0x16c   : > { %v662_v33 = vpop.permute.xlu1 %661  ;;  %1433 = vmatpush1.bf16.msra.mxu0 %v4847_v26  ;;  %v4895_v26 = vld [vmem:[#allocation5 + $0x44] ss:$16 sps:$4 sm:$0xff]  }
 0x16d   : > { %1434 = vmatprep.subr.bf16.mxu0 %v4855_v29  ;;  %v675_v36 = vmul.f32 %v5934_v56, %v662_v33  ;;  %v734_v38 = vadd.f32 %v726_v32, %v682_v31  ;;  %v4896_v29 = vld [vmem:[#allocation5 + $0x48] ss:$16 sps:$4 sm:$0xff]   ;;  %v4904_v31 = vld [vmem:[#allocation5 + $0x6c] ss:$16 sps:$4 sm:$0xff]  }
 0x16f   : > { %v683_v43 = vadd.f32 %v675_v36, %v631_v37  ;;  %v749_v45 = vadd.f32 %v5951_v8, %v734_v38  ;;  %v4902_v36 = vld [vmem:[#allocation5 + $0x68] ss:$16 sps:$4 sm:$0xff]  }
 0x170   : > { %1435 = vmatpush1.bf16.msra.mxu0 %v4853_v34 }
 0x171   : > { %v714_v40 = vpop.permute.xlu1 %713  ;;  %1436 = vmatprep.subr.bf16.mxu0 %v4861_v35  ;;  %v757_v47 = vmax.f32 %v749_v45, 0.0  ;;  %v4899_v35 = vld [vmem:[#allocation5 + $0x60] ss:$16 sps:$4 sm:$0xff]  }
 0x172   : > { %v727_v44 = vmul.f32 %v5940_v60, %v714_v40  ;;  %v4868_v60 = vld [vmem:[%s6718_s5 + $0x1a0] ss:$16 sps:$4 sm:$0xff]   ;;  %v4910_v40 = vld [vmem:[#allocation5 + $0x8c] ss:$16 sps:$4 sm:$0xff]  }
 0x173   : > { %1366 = vmatpush1.bf16.msra.mxu1 %v4868_v60 }
 0x174   : > { %v735_v56 = vadd.f32 %v727_v44, %v683_v43  ;;  %1437 = vmatpush1.bf16.msra.mxu0 %v4859_v39  ;;  %1367 = vmatprep.subr.bf16.mxu1 %v4869_v50  ;;  %v4907_v39 = vld [vmem:[#allocation5 + $0x84] ss:$16 sps:$4 sm:$0xff]  }
 0x175   : > { %1438 = vmatprep.subr.bf16.mxu0 %v4867_v41  ;;  %v4913_v50 = vld [vmem:[#allocation5 + $0xa4] ss:$16 sps:$4 sm:$0xff]  }
 0x176   : > { %v750_v46 = vadd.f32 %v5951_v8, %v735_v56  ;;  %v4871_v8 = vld [vmem:[%s6718_s5 + $0x1c8] ss:$16 sps:$4 sm:$0xff]  }
 0x177   : > { %1368 = vmatpush1.bf16.msra.mxu1 %v4874_v54  ;;  %v4914_v54 = vld [vmem:[#allocation5 + $0xa8] ss:$16 sps:$4 sm:$0xff]  }
 0x178   : > { %v758_v48 = vmax.f32 %v750_v46, 0.0  ;;  %1439 = vmatpush1.bf16.msra.mxu0 %v4865_v57  ;;  %1369 = vmatprep.subr.bf16.mxu1 %v4875_v58  ;;  %v4905_v57 = vld [vmem:[#allocation5 + $0x80] ss:$16 sps:$4 sm:$0xff]   ;;  %v4908_v46 = vld [vmem:[#allocation5 + $0x88] ss:$16 sps:$4 sm:$0xff]  }
 0x179   : > { %1440 = vmatprep.subr.bf16.mxu0 %v4873_v53  ;;  %v4916_v53 = vld [vmem:[#allocation5 + $0xac] ss:$16 sps:$4 sm:$0xff]   ;;  %v4919_v58 = vld [vmem:[#allocation5 + $0xc4] ss:$16 sps:$4 sm:$0xff]  }
 0x17a   : > { %v762_v49 = vpack.c.bf16 %v758_v48, %v757_v47 }
 0x17b   : > { %1370 = vmatpush1.bf16.msra.mxu1 %v4880_v62  ;;  %v4920_v62 = vld [vmem:[#allocation5 + $0xc8] ss:$16 sps:$4 sm:$0xff]  }
 0x17c   : > { %4205 = vmatmul.mubr.msk.bf16.gmra.mrb[12].mxu0 %vm823_vm0, %v762_v49  ;;  %2323 = vmatprep.subr.bf16.mxu1 %v4883_v63  ;;  %v4925_v63 = vld [vmem:[#allocation5 + $0xe4] ss:$16 sps:$4 sm:$0xff]  }
 0x17d   : > { %1441 = vmatpush1.bf16.msra.mxu0 %v4871_v8  ;;  %v4911_v8 = vld [vmem:[#allocation5 + $0xa0] ss:$16 sps:$4 sm:$0xff]  }
 0x17e   : > { %1442 = vmatprep.subr.bf16.mxu0 %v4879_v59  ;;  %v4922_v59 = vld [vmem:[#allocation5 + $0xcc] ss:$16 sps:$4 sm:$0xff]  }
 0x181   : > { %1443 = vmatpush1.bf16.msra.mxu0 %v4877_v61  ;;  %v4917_v61 = vld [vmem:[#allocation5 + $0xc0] ss:$16 sps:$4 sm:$0xff]  }
 0x182   : > { %2469 = vmatprep.subr.bf16.mxu0 %v4886_v0  ;;  %v4928_v0 = vld [vmem:[#allocation5 + $0xec] ss:$16 sps:$4 sm:$0xff]  }
 0x216   : > { %v870_v5 = vpop.f32.mrb[0].mxu0 }
 0x217   : > { %v871_v6 = vadd.f32 %v870_v5, %v6098_v3  ;;  %v872_v7 = vpop.f32.mrb[1].mxu0  ;;  %v4926_v5 = vld [vmem:[#allocation5 + $0xe8] ss:$16 sps:$4 sm:$0xff]  }
 0x218   : > { %v873_v9 = vadd.f32 %v872_v7, %v6101_v4  ;;  %v874_v10 = vpop.f32.mrb[2].mxu0  ;;  %v4934_v7 = vld [vmem:[#allocation5 + $0x10c] ss:$16 sps:$4 sm:$0xff]  }
 0x219   : > { %v875_v11 = vadd.f32 %v874_v10, %v6098_v3  ;;  %v876_v12 = vpop.f32.mrb[3].mxu0  ;;  %v909_v14 = vmax.f32 %v871_v6, 0.0  ;;  %v4931_v6 = vld [vmem:[#allocation5 + $0x104] ss:$16 sps:$4 sm:$0xff]  }
 0x21a   : > { %v877_v13 = vadd.f32 %v876_v12, %v6101_v4  ;;  %v910_v16 = vmax.f32 %v873_v9, 0.0 }
 0x21b   : > { %v911_v15 = vmax.f32 %v875_v11, 0.0 }
 0x21c   : > { %v912_v17 = vmax.f32 %v877_v13, 0.0 }
 0x21d   : > { %v925_v18 = vpack.c.bf16 %v911_v15, %v909_v14  ;;  %v4929_v14 = vld [vmem:[#allocation5 + $0x100] ss:$16 sps:$4 sm:$0xff]   ;;  %v4932_v15 = vld [vmem:[#allocation5 + $0x108] ss:$16 sps:$4 sm:$0xff]  }
 0x21e   : > { %v926_v19 = vpack.c.bf16 %v912_v17, %v910_v16 }
 0x220   : > { %1371 = vmatprep.mubr.bf16.mxu1 %v926_v19  ;;  %1444 = vmatprep.mubr.bf16.mxu0 %v926_v19  ;;  %v4940_v19 = vld [vmem:[#allocation5 + $0x12c] ss:$16 sps:$4 sm:$0xff]  }
 0x221   : > { %1372 = vmatmul.mubr.bf16.vlgmr.msra.gmra.mrb[0].mxu1 %v925_v18  ;;  %1445 = vmatmul.mubr.bf16.vlgmr.msra.gmra.mrb[16].mxu0 %v925_v18  ;;  %v4937_v18 = vld [vmem:[#allocation5 + $0x124] ss:$16 sps:$4 sm:$0xff]  }
 0x222   : > { %2324 = vmatpush1.bf16.msra.mxu1 %v4881_v20  ;;  %2470 = vmatpush1.bf16.msra.mxu0 %v4884_v21 }
 0x223   : > { %2325 = vmatprep.subr.bf16.mxu1 %v4889_v22  ;;  %2471 = vmatprep.subr.bf16.mxu0 %v4892_v23 }
 0x226   : > { %2326 = vmatpush1.bf16.msra.mxu1 %v4887_v24  ;;  %2472 = vmatpush1.bf16.msra.mxu0 %v4890_v25 }
 0x227   : > { %2327 = vmatprep.subr.bf16.mxu1 %v4895_v26  ;;  %2473 = vmatprep.subr.bf16.mxu0 %v4898_v27  ;;  %v4935_v27 = vld [vmem:[#allocation5 + $0x120] ss:$16 sps:$4 sm:$0xff]  }
 0x229   : > { %v880_v32 = vpop.f32.mrb[4].mxu0 }
 0x22a   : > { %v881_v33 = vadd.f32 %v880_v32, %v6098_v3  ;;  %v882_v34 = vpop.f32.mrb[5].mxu0  ;;  %2328 = vmatpush1.bf16.msra.mxu1 %v4893_v28  ;;  %2474 = vmatpush1.bf16.msra.mxu0 %v4896_v29  ;;  %v4938_v28 = vld [vmem:[#allocation5 + $0x128] ss:$16 sps:$4 sm:$0xff]   ;;  %v4943_v29 = vld [vmem:[#allocation5 + $0x144] ss:$16 sps:$4 sm:$0xff]  }
 0x22b   : > { %v883_v37 = vadd.f32 %v882_v34, %v6101_v4  ;;  %v884_v38 = vpop.f32.mrb[6].mxu0  ;;  %2329 = vmatprep.subr.bf16.mxu1 %v4901_v30  ;;  %2475 = vmatprep.subr.bf16.mxu0 %v4904_v31  ;;  %v4946_v30 = vld [vmem:[#allocation5 + $0x14c] ss:$16 sps:$4 sm:$0xff]   ;;  %v4941_v31 = vld [vmem:[#allocation5 + $0x140] ss:$16 sps:$4 sm:$0xff]  }
 0x22c   : > { %v885_v41 = vadd.f32 %v884_v38, %v6098_v3  ;;  %v886_v43 = vpop.f32.mrb[7].mxu0  ;;  %v913_v45 = vmax.f32 %v881_v33, 0.0  ;;  %v4944_v32 = vld [vmem:[#allocation5 + $0x148] ss:$16 sps:$4 sm:$0xff]   ;;  %v4949_v33 = vld [vmem:[#allocation5 + $0x164] ss:$16 sps:$4 sm:$0xff]  }
 0x22d   : > { %v887_v44 = vadd.f32 %v886_v43, %v6101_v4  ;;  %v914_v47 = vmax.f32 %v883_v37, 0.0  ;;  %v4952_v34 = vld [vmem:[#allocation5 + $0x16c] ss:$16 sps:$4 sm:$0xff]   ;;  %v4955_v37 = vld [vmem:[#allocation5 + $0x184] ss:$16 sps:$4 sm:$0xff]  }
 0x22e   : > { %v915_v56 = vmax.f32 %v885_v41, 0.0  ;;  %2330 = vmatpush1.bf16.msra.mxu1 %v4899_v35  ;;  %2476 = vmatpush1.bf16.msra.mxu0 %v4902_v36  ;;  %v4947_v35 = vld [vmem:[#allocation5 + $0x160] ss:$16 sps:$4 sm:$0xff]   ;;  %v4950_v36 = vld [vmem:[#allocation5 + $0x168] ss:$16 sps:$4 sm:$0xff]  }
 0x22f   : > { %v916_v48 = vmax.f32 %v887_v44, 0.0  ;;  %2331 = vmatprep.subr.bf16.mxu1 %v4907_v39  ;;  %2477 = vmatprep.subr.bf16.mxu0 %v4910_v40  ;;  %v4958_v38 = vld [vmem:[#allocation5 + $0x18c] ss:$16 sps:$4 sm:$0xff]   ;;  %v4953_v43 = vld [vmem:[#allocation5 + $0x180] ss:$16 sps:$4 sm:$0xff]  }
 0x230   : > { %v927_v49 = vpack.c.bf16 %v915_v56, %v913_v45  ;;  %v4956_v44 = vld [vmem:[#allocation5 + $0x188] ss:$16 sps:$4 sm:$0xff]  }
 0x231   : > { %v928_v60 = vpack.c.bf16 %v916_v48, %v914_v47 }
 0x232   : > { %2332 = vmatpush1.bf16.msra.mxu1 %v4905_v57  ;;  %2478 = vmatpush1.bf16.msra.mxu0 %v4908_v46  ;;  %v4961_v57 = vld [vmem:[#allocation5 + $0x1a4] ss:$16 sps:$4 sm:$0xff]   ;;  %v4964_v46 = vld [vmem:[#allocation5 + $0x1ac] ss:$16 sps:$4 sm:$0xff]  }
 0x233   : > { %1381 = vmatprep.mubr.bf16.mxu1 %v928_v60  ;;  %1454 = vmatprep.mubr.bf16.mxu0 %v928_v60 }
 0x234   : > { %1382 = vmatmul.mubr.bf16.gmra.mrb[4].mxu1 %v927_v49  ;;  %1455 = vmatmul.mubr.bf16.gmra.mrb[20].mxu0 %v927_v49 }
 0x235   : > { %2333 = vmatprep.subr.bf16.mxu1 %v4913_v50  ;;  %2479 = vmatprep.subr.bf16.mxu0 %v4916_v53  ;;  %v4959_v53 = vld [vmem:[#allocation5 + $0x1a0] ss:$16 sps:$4 sm:$0xff]  }
 0x236   : > { %2334 = vmatpush1.bf16.msra.mxu1 %v4911_v8  ;;  %2480 = vmatpush1.bf16.msra.mxu0 %v4914_v54  ;;  %v4962_v8 = vld [vmem:[#allocation5 + $0x1a8] ss:$16 sps:$4 sm:$0xff]  }
 0x237   : > { %2335 = vmatprep.subr.bf16.mxu1 %v4919_v58  ;;  %2481 = vmatprep.subr.bf16.mxu0 %v4922_v59 }
 0x23a   : > { %2336 = vmatpush1.bf16.msra.mxu1 %v4917_v61  ;;  %2482 = vmatpush1.bf16.msra.mxu0 %v4920_v62  ;;  %v4965_v62 = vld [vmem:[#allocation5 + $0x1c0] ss:$16 sps:$4 sm:$0xff]  }
 0x23b   : > { %2337 = vmatprep.subr.bf16.mxu1 %v4925_v63  ;;  %2483 = vmatprep.subr.bf16.mxu0 %v4928_v0  ;;  %v4968_v63 = vld [vmem:[#allocation5 + $0x1c8] ss:$16 sps:$4 sm:$0xff]   ;;  %v4973_v0 = vld [vmem:[#allocation5 + $0x1e4] ss:$16 sps:$4 sm:$0xff]  }
 0x23c   : > { %v890_v9 = vpop.f32.mrb[8].mxu0 }
 0x23d   : > { %v891_v10 = vadd.f32 %v890_v9, %v6098_v3  ;;  %v892_v11 = vpop.f32.mrb[9].mxu0  ;;  %v4982_v9 = vld [vmem:[#allocation5 + $0x20c] ss:$16 sps:$4 sm:$0xff]  }
 0x23e   : > { %v893_v12 = vadd.f32 %v892_v11, %v6101_v4  ;;  %v894_v13 = vpop.f32.mrb[10].mxu0  ;;  %2338 = vmatpush1.bf16.msra.mxu1 %v4923_v2  ;;  %2484 = vmatpush1.bf16.msra.mxu0 %v4926_v5  ;;  %v4976_v2 = vld [vmem:[#allocation5 + $0x1ec] ss:$16 sps:$4 sm:$0xff]   ;;  %v4971_v5 = vld [vmem:[#allocation5 + $0x1e0] ss:$16 sps:$4 sm:$0xff]   ;;  %v6123_v11 = vsub.s32 3, %v5901_v42 }
 0x23f   : > { %v895_v16 = vadd.f32 %v894_v13, %v6098_v3  ;;  %v896_v17 = vpop.f32.mrb[11].mxu0  ;;  %2339 = vmatprep.subr.bf16.mxu1 %v4931_v6  ;;  %2485 = vmatprep.subr.bf16.mxu0 %v4934_v7  ;;  %v917_v21 = vmax.f32 %v891_v10, 0.0  ;;  %v4974_v6 = vld [vmem:[#allocation5 + $0x1e8] ss:$16 sps:$4 sm:$0xff]   ;;  %v4979_v7 = vld [vmem:[#allocation5 + $0x204] ss:$16 sps:$4 sm:$0xff]  }
 0x240   : > { %v897_v20 = vadd.f32 %v896_v17, %v6101_v4  ;;  %v918_v23 = vmax.f32 %v893_v12, 0.0  ;;  %v997_v10 = vld [vmem:[%s6719_s6] sm:$0xf] }
 0x241   : > { %v919_v22 = vmax.f32 %v895_v16, 0.0  ;;  %v6126_v12 = vrot.slane %v997_v10, %v5928_v52  ;;  %v6129_v13 = vrot.slane %v997_v10, %v5931_v55 }
 0x242   : > { %v920_v24 = vmax.f32 %v897_v20, 0.0  ;;  %2340 = vmatpush1.bf16.msra.mxu1 %v4929_v14  ;;  %2486 = vmatpush1.bf16.msra.mxu0 %v4932_v15  ;;  %v6132_v14 = vrot.slane %v997_v10, %v5925_v51  ;;  %v6135_v15 = vrot.slane %v997_v10, %v6123_v11 }
 0x243   : > { %v929_v25 = vpack.c.bf16 %v919_v22, %v917_v21  ;;  %2341 = vmatprep.subr.bf16.mxu1 %v4937_v18  ;;  %2487 = vmatprep.subr.bf16.mxu0 %v4940_v19 }
 0x244   : > { %v930_v26 = vpack.c.bf16 %v920_v24, %v918_v23 }
 0x246   : > { %1391 = vmatprep.mubr.bf16.mxu1 %v930_v26  ;;  %1464 = vmatprep.mubr.bf16.mxu0 %v930_v26 }
 0x247   : > { %1392 = vmatmul.mubr.bf16.gmra.mrb[8].mxu1 %v929_v25  ;;  %1465 = vmatmul.mubr.bf16.gmra.mrb[24].mxu0 %v929_v25 }
 0x248   : > { %2342 = vmatpush1.bf16.msra.mxu1 %v4935_v27  ;;  %2488 = vmatpush1.bf16.msra.mxu0 %v4938_v28 }
 0x249   : > { %2343 = vmatprep.subr.bf16.mxu1 %v4943_v29  ;;  %2489 = vmatprep.subr.bf16.mxu0 %v4946_v30 }
 0x24c   : > { %2344 = vmatpush1.bf16.msra.mxu1 %v4941_v31  ;;  %2490 = vmatpush1.bf16.msra.mxu0 %v4944_v32 }
 0x24d   : > { %2345 = vmatprep.subr.bf16.mxu1 %v4949_v33  ;;  %2491 = vmatprep.subr.bf16.mxu0 %v4952_v34 }
 0x24f   : > { %v900_v39 = vpop.f32.mrb[12].mxu0 }
 0x250   : > { %v901_v40 = vadd.f32 %v900_v39, %v6098_v3  ;;  %v902_v41 = vpop.f32.mrb[13].mxu0  ;;  %2346 = vmatpush1.bf16.msra.mxu1 %v4947_v35  ;;  %2492 = vmatpush1.bf16.msra.mxu0 %v4950_v36 }
 0x251   : > { %v903_v45 = vadd.f32 %v902_v41, %v6101_v4  ;;  %v904_v56 = vpop.f32.mrb[14].mxu0  ;;  %2347 = vmatprep.subr.bf16.mxu1 %v4955_v37  ;;  %2493 = vmatprep.subr.bf16.mxu0 %v4958_v38 }
 0x252   : > { %v905_v47 = vadd.f32 %v904_v56, %v6098_v3  ;;  %v906_v48 = vpop.f32.mrb[15].mxu0  ;;  %v921_v60 = vmax.f32 %v901_v40, 0.0  ;;  %v4967_v3 = vld [vmem:[#allocation5 + $0x1c4] ss:$16 sps:$4 sm:$0xff]  }
 0x253   : > { %v907_v49 = vadd.f32 %v906_v48, %v6101_v4  ;;  %v922_v54 = vmax.f32 %v903_v45, 0.0  ;;  %v4970_v4 = vld [vmem:[#allocation5 + $0x1cc] ss:$16 sps:$4 sm:$0xff]   ;;  %v4980_v45 = vld [vmem:[#allocation5 + $0x208] ss:$16 sps:$4 sm:$0xff]  }
 0x254   : > { %v923_v50 = vmax.f32 %v905_v47, 0.0  ;;  %2348 = vmatpush1.bf16.msra.mxu1 %v4953_v43  ;;  %2494 = vmatpush1.bf16.msra.mxu0 %v4956_v44  ;;  %v4977_v44 = vld [vmem:[#allocation5 + $0x200] ss:$16 sps:$4 sm:$0xff]   ;;  %v4985_v56 = vld [vmem:[#allocation5 + $0x224] ss:$16 sps:$4 sm:$0xff]  }
 0x255   : > { %v924_v58 = vmax.f32 %v907_v49, 0.0  ;;  %2349 = vmatprep.subr.bf16.mxu1 %v4961_v57  ;;  %2495 = vmatprep.subr.bf16.mxu0 %v4964_v46  ;;  %v4988_v57 = vld [vmem:[#allocation5 + $0x22c] ss:$16 sps:$4 sm:$0xff]   ;;  %v4983_v46 = vld [vmem:[#allocation5 + $0x220] ss:$16 sps:$4 sm:$0xff]  }
 0x256   : > { %v931_v59 = vpack.c.bf16 %v923_v50, %v921_v60  ;;  %v4986_v47 = vld [vmem:[#allocation5 + $0x228] ss:$16 sps:$4 sm:$0xff]   ;;  %v4991_v48 = vld [vmem:[#allocation5 + $0x244] ss:$16 sps:$4 sm:$0xff]   ;;  %v4994_v49 = vld [vmem:[#allocation5 + $0x24c] ss:$16 sps:$4 sm:$0xff]  }
 0x257   : > { %v932_v61 = vpack.c.bf16 %v924_v58, %v922_v54  ;;  %v4989_v60 = vld [vmem:[#allocation5 + $0x240] ss:$16 sps:$4 sm:$0xff]   ;;  %v4992_v50 = vld [vmem:[#allocation5 + $0x248] ss:$16 sps:$4 sm:$0xff]  }
 0x258   : > { %2350 = vmatpush1.bf16.msra.mxu1 %v4959_v53  ;;  %2496 = vmatpush1.bf16.msra.mxu0 %v4962_v8  ;;  %v4997_v53 = vld [vmem:[#allocation5 + $0x264] ss:$16 sps:$4 sm:$0xff]   ;;  %v5000_v8 = vld [vmem:[#allocation5 + $0x26c] ss:$16 sps:$4 sm:$0xff]  }
 0x259   : > { %1401 = vmatprep.mubr.bf16.mxu1 %v932_v61  ;;  %1474 = vmatprep.mubr.bf16.mxu0 %v932_v61 }
 0x25a   : > { %1402 = vmatmul.mubr.bf16.gmra.mrb[12].mxu1 %v931_v59  ;;  %1475 = vmatmul.mubr.bf16.gmra.mrb[28].mxu0 %v931_v59 }
 0x25b   : > { %2351 = vmatprep.subr.bf16.mxu1 %v4967_v3  ;;  %2497 = vmatprep.subr.bf16.mxu0 %v4970_v4 }
 0x25c   : > { %2352 = vmatpush1.bf16.msra.mxu1 %v4965_v62  ;;  %2498 = vmatpush1.bf16.msra.mxu0 %v4968_v63  ;;  %v4995_v62 = vld [vmem:[#allocation5 + $0x260] ss:$16 sps:$4 sm:$0xff]   ;;  %v4998_v63 = vld [vmem:[#allocation5 + $0x268] ss:$16 sps:$4 sm:$0xff]  }
 0x25d   : > { %2353 = vmatprep.subr.bf16.mxu1 %v4973_v0  ;;  %2499 = vmatprep.subr.bf16.mxu0 %v4976_v2 }
 0x260   : > { %2354 = vmatpush1.bf16.msra.mxu1 %v4971_v5  ;;  %2500 = vmatpush1.bf16.msra.mxu0 %v4974_v6 }
 0x261   : > { %2396 = vmatprep.subr.bf16.mxu1 %v4979_v7  ;;  %2542 = vmatprep.subr.bf16.mxu0 %v4982_v9  ;;  %v5003_v7 = vld [vmem:[#allocation5 + $0x284] ss:$16 sps:$4 sm:$0xff]   ;;  %v5006_v9 = vld [vmem:[#allocation5 + $0x28c] ss:$16 sps:$4 sm:$0xff]  }
 0x2f4   : > { %v1373_v16 = vpop.f32.mrb[0].mxu1  ;;  %v1446_v17 = vpop.f32.mrb[16].mxu0 }
 0x2f5   : > { %v1374_v18 = vadd.f32 %v1373_v16, %v6126_v12  ;;  %v1447_v19 = vadd.f32 %v1446_v17, %v6129_v13  ;;  %v1375_v42 = vpop.f32.mrb[1].mxu1  ;;  %v1448_v20 = vpop.f32.mrb[17].mxu0 }
 0x2f6   : > { %v1376_v21 = vadd.f32 %v1375_v42, %v6132_v14  ;;  %v1449_v22 = vadd.f32 %v1448_v20, %v6135_v15  ;;  %v1377_v23 = vpop.f32.mrb[2].mxu1  ;;  %v1450_v24 = vpop.f32.mrb[18].mxu0  ;;  %v5001_v20 = vld [vmem:[#allocation5 + $0x280] ss:$16 sps:$4 sm:$0xff]  }
 0x2f7   : > { %v1378_v25 = vadd.f32 %v1377_v23, %v6126_v12  ;;  %v1451_v26 = vadd.f32 %v1450_v24, %v6129_v13  ;;  %v1379_v27 = vpop.f32.mrb[3].mxu1  ;;  %v1452_v28 = vpop.f32.mrb[19].mxu0  ;;  %v1485_v31 = vmax.f32 %v1374_v18, 0.0  ;;  %v1487_v32 = vmax.f32 %v1447_v19, 0.0 }
 0x2f8   : > { %v1380_v29 = vadd.f32 %v1379_v27, %v6132_v14  ;;  %v1453_v30 = vadd.f32 %v1452_v28, %v6135_v15  ;;  %v1486_v35 = vmax.f32 %v1376_v21, 0.0  ;;  %v1488_v36 = vmax.f32 %v1449_v22, 0.0 }
 0x2f9   : > { %v1489_v33 = vmax.f32 %v1378_v25, 0.0  ;;  %v1491_v34 = vmax.f32 %v1451_v26, 0.0  ;;  %v5004_v25 = vld [vmem:[#allocation5 + $0x288] ss:$16 sps:$4 sm:$0xff]  }
 0x2fa   : > { %v1490_v37 = vmax.f32 %v1380_v29, 0.0  ;;  %v1492_v38 = vmax.f32 %v1453_v30, 0.0 }
 0x2fb   : > { %v1517_v39 = vpack.c.bf16 %v1489_v33, %v1485_v31  ;;  %v6145_v40 = vpack.c.bf16 %v1491_v34, %v1487_v32  ;;  %v5009_v34 = vld [vmem:[#allocation5 + $0x2a4] ss:$16 sps:$4 sm:$0xff]  }
 0x2fc   : > { %v1518_v41 = vpack.c.bf16 %v1490_v37, %v1486_v35  ;;  %v6147_v43 = vpack.c.bf16 %v1492_v38, %v1488_v36  ;;  %v5012_v35 = vld [vmem:[#allocation5 + $0x2ac] ss:$16 sps:$4 sm:$0xff]   ;;  %v5007_v36 = vld [vmem:[#allocation5 + $0x2a0] ss:$16 sps:$4 sm:$0xff]   ;;  %v5010_v37 = vld [vmem:[#allocation5 + $0x2a8] ss:$16 sps:$4 sm:$0xff]  }
 0x2fd   : > { %v5015_v38 = vld [vmem:[#allocation5 + $0x2c4] ss:$16 sps:$4 sm:$0xff]  }
 0x2fe   : > { %2355 = vmatprep.mubr.bf16.mxu1 %v1518_v41  ;;  %2501 = vmatprep.mubr.bf16.mxu0 %v1518_v41  ;;  %v5013_v41 = vld [vmem:[#allocation5 + $0x2c0] ss:$16 sps:$4 sm:$0xff]  }
 0x2ff   : > { %2356 = vmatmul.mubr.bf16.vlgmr.msra.gmra.mrb[16].mxu1 %v1517_v39  ;;  %2502 = vmatmul.mubr.bf16.vlgmr.msra.gmra.mrb[32].mxu0 %v1517_v39  ;;  %v5018_v39 = vld [vmem:[#allocation5 + $0x2cc] ss:$16 sps:$4 sm:$0xff]  }
 0x300   : > { %2397 = vmatpush1.bf16.msra.mxu1 %v4977_v44  ;;  %2543 = vmatpush1.bf16.msra.mxu0 %v4980_v45  ;;  %v5016_v44 = vld [vmem:[#allocation5 + $0x2c8] ss:$16 sps:$4 sm:$0xff]   ;;  %v5021_v45 = vld [vmem:[#allocation5 + $0x2e4] ss:$16 sps:$4 sm:$0xff]  }
 0x301   : > { %2398 = vmatprep.subr.bf16.mxu1 %v4985_v56  ;;  %2544 = vmatprep.subr.bf16.mxu0 %v4988_v57  ;;  %v5024_v56 = vld [vmem:[#allocation5 + $0x2ec] ss:$16 sps:$4 sm:$0xff]   ;;  %v5019_v57 = vld [vmem:[#allocation5 + $0x2e0] ss:$16 sps:$4 sm:$0xff]  }
 0x304   : > { %2399 = vmatpush1.bf16.msra.mxu1 %v4983_v46  ;;  %2545 = vmatpush1.bf16.msra.mxu0 %v4986_v47  ;;  %v5022_v46 = vld [vmem:[#allocation5 + $0x2e8] ss:$16 sps:$4 sm:$0xff]   ;;  %v5027_v47 = vld [vmem:[#allocation5 + $0x304] ss:$16 sps:$4 sm:$0xff]  }
 0x305   : > { %2400 = vmatprep.subr.bf16.mxu1 %v4991_v48  ;;  %2546 = vmatprep.subr.bf16.mxu0 %v4994_v49  ;;  %v5030_v48 = vld [vmem:[#allocation5 + $0x30c] ss:$16 sps:$4 sm:$0xff]  }
 0x307   : > { %v1383_v54 = vpop.f32.mrb[4].mxu1  ;;  %v1456_v58 = vpop.f32.mrb[20].mxu0 }
 0x308   : > { %v1384_v59 = vadd.f32 %v1383_v54, %v6126_v12  ;;  %v1457_v61 = vadd.f32 %v1456_v58, %v6129_v13  ;;  %v1385_v3 = vpop.f32.mrb[5].mxu1  ;;  %v1458_v4 = vpop.f32.mrb[21].mxu0  ;;  %2401 = vmatpush1.bf16.msra.mxu1 %v4989_v60  ;;  %2547 = vmatpush1.bf16.msra.mxu0 %v4992_v50 }
 0x309   : > { %v1386_v0 = vadd.f32 %v1385_v3, %v6132_v14  ;;  %v1459_v2 = vadd.f32 %v1458_v4, %v6135_v15  ;;  %v1387_v5 = vpop.f32.mrb[6].mxu1  ;;  %v1460_v6 = vpop.f32.mrb[22].mxu0  ;;  %2402 = vmatprep.subr.bf16.mxu1 %v4997_v53  ;;  %2548 = vmatprep.subr.bf16.mxu0 %v5000_v8  ;;  %v5025_v4 = vld [vmem:[#allocation5 + $0x300] ss:$16 sps:$4 sm:$0xff]  }
 0x30a   : > { %v1388_v10 = vadd.f32 %v1387_v5, %v6126_v12  ;;  %v1461_v16 = vadd.f32 %v1460_v6, %v6129_v13  ;;  %v1389_v17 = vpop.f32.mrb[7].mxu1  ;;  %v1462_v18 = vpop.f32.mrb[23].mxu0  ;;  %v1493_v21 = vmax.f32 %v1384_v59, 0.0  ;;  %v1495_v22 = vmax.f32 %v1457_v61, 0.0  ;;  %v5033_v6 = vld [vmem:[#allocation5 + $0x324] ss:$16 sps:$4 sm:$0xff]  }
 0x30b   : > { %v1390_v19 = vadd.f32 %v1389_v17, %v6132_v14  ;;  %v1463_v42 = vadd.f32 %v1462_v18, %v6135_v15  ;;  %v1494_v26 = vmax.f32 %v1386_v0, 0.0  ;;  %v1496_v27 = vmax.f32 %v1459_v2, 0.0 }
 0x30c   : > { %v1497_v23 = vmax.f32 %v1388_v10, 0.0  ;;  %v1499_v24 = vmax.f32 %v1461_v16, 0.0  ;;  %2403 = vmatpush1.bf16.msra.mxu1 %v4995_v62  ;;  %2549 = vmatpush1.bf16.msra.mxu0 %v4998_v63  ;;  %v5028_v62 = vld [vmem:[#allocation5 + $0x308] ss:$16 sps:$4 sm:$0xff]  }
 0x30d   : > { %v1498_v28 = vmax.f32 %v1390_v19, 0.0  ;;  %v1500_v29 = vmax.f32 %v1463_v42, 0.0  ;;  %2404 = vmatprep.subr.bf16.mxu1 %v5003_v7  ;;  %2550 = vmatprep.subr.bf16.mxu0 %v5006_v9  ;;  %v5036_v7 = vld [vmem:[#allocation5 + $0x32c] ss:$16 sps:$4 sm:$0xff]  }
 0x30e   : > { %v1521_v30 = vpack.c.bf16 %v1497_v23, %v1493_v21  ;;  %v6157_v31 = vpack.c.bf16 %v1499_v24, %v1495_v22 }
 0x30f   : > { %v1522_v32 = vpack.c.bf16 %v1498_v28, %v1494_v26  ;;  %v6159_v33 = vpack.c.bf16 %v1500_v29, %v1496_v27  ;;  %v5031_v27 = vld [vmem:[#allocation5 + $0x320] ss:$16 sps:$4 sm:$0xff]   ;;  %v5034_v28 = vld [vmem:[#allocation5 + $0x328] ss:$16 sps:$4 sm:$0xff]   ;;  %v5039_v29 = vld [vmem:[#allocation5 + $0x344] ss:$16 sps:$4 sm:$0xff]  }
 0x310   : > { %2405 = vmatpush1.bf16.msra.mxu1 %v5001_v20  ;;  %2551 = vmatpush1.bf16.msra.mxu0 %v5004_v25 }
 0x311   : > { %2365 = vmatprep.mubr.bf16.mxu1 %v1522_v32  ;;  %2511 = vmatprep.mubr.bf16.mxu0 %v1522_v32  ;;  %v5037_v32 = vld [vmem:[#allocation5 + $0x340] ss:$16 sps:$4 sm:$0xff]  }
 0x312   : > { %2366 = vmatmul.mubr.bf16.gmra.mrb[20].mxu1 %v1521_v30  ;;  %2512 = vmatmul.mubr.bf16.gmra.mrb[36].mxu0 %v1521_v30  ;;  %v5042_v30 = vld [vmem:[#allocation5 + $0x34c] ss:$16 sps:$4 sm:$0xff]  }
 0x313   : > { %2406 = vmatprep.subr.bf16.mxu1 %v5009_v34  ;;  %2552 = vmatprep.subr.bf16.mxu0 %v5012_v35  ;;  %v5040_v34 = vld [vmem:[#allocation5 + $0x348] ss:$16 sps:$4 sm:$0xff]   ;;  %v5045_v35 = vld [vmem:[#allocation5 + $0x364] ss:$16 sps:$4 sm:$0xff]  }
 0x314   : > { %2407 = vmatpush1.bf16.msra.mxu1 %v5007_v36  ;;  %2553 = vmatpush1.bf16.msra.mxu0 %v5010_v37  ;;  %v5048_v36 = vld [vmem:[#allocation5 + $0x36c] ss:$16 sps:$4 sm:$0xff]   ;;  %v5043_v37 = vld [vmem:[#allocation5 + $0x360] ss:$16 sps:$4 sm:$0xff]  }
 0x315   : > { %2408 = vmatprep.subr.bf16.mxu1 %v5015_v38  ;;  %2554 = vmatprep.subr.bf16.mxu0 %v5018_v39  ;;  %v5046_v38 = vld [vmem:[#allocation5 + $0x368] ss:$16 sps:$4 sm:$0xff]   ;;  %v5051_v39 = vld [vmem:[#allocation5 + $0x384] ss:$16 sps:$4 sm:$0xff]  }
 0x318   : > { %2409 = vmatpush1.bf16.msra.mxu1 %v5013_v41  ;;  %2555 = vmatpush1.bf16.msra.mxu0 %v5016_v44  ;;  %v5054_v41 = vld [vmem:[#allocation5 + $0x38c] ss:$16 sps:$4 sm:$0xff]  }
 0x319   : > { %2410 = vmatprep.subr.bf16.mxu1 %v5021_v45  ;;  %2556 = vmatprep.subr.bf16.mxu0 %v5024_v56 }
 0x31a   : > { %v1393_v49 = vpop.f32.mrb[8].mxu1  ;;  %v1466_v60 = vpop.f32.mrb[24].mxu0 }
 0x31b   : > { %v1394_v50 = vadd.f32 %v1393_v49, %v6126_v12  ;;  %v1467_v53 = vadd.f32 %v1466_v60, %v6129_v13  ;;  %v1395_v8 = vpop.f32.mrb[9].mxu1  ;;  %v1468_v54 = vpop.f32.mrb[25].mxu0  ;;  %v5052_v49 = vld [vmem:[#allocation5 + $0x388] ss:$16 sps:$4 sm:$0xff]  }
 0x31c   : > { %v1396_v58 = vadd.f32 %v1395_v8, %v6132_v14  ;;  %v1469_v59 = vadd.f32 %v1468_v54, %v6135_v15  ;;  %v1397_v61 = vpop.f32.mrb[10].mxu1  ;;  %v1470_v3 = vpop.f32.mrb[26].mxu0  ;;  %2411 = vmatpush1.bf16.msra.mxu1 %v5019_v57  ;;  %2557 = vmatpush1.bf16.msra.mxu0 %v5022_v46  ;;  %v5057_v54 = vld [vmem:[#allocation5 + $0x3a4] ss:$16 sps:$4 sm:$0xff]  }
 0x31d   : > { %v1398_v63 = vadd.f32 %v1397_v61, %v6126_v12  ;;  %v1471_v0 = vadd.f32 %v1470_v3, %v6129_v13  ;;  %v1399_v2 = vpop.f32.mrb[11].mxu1  ;;  %v1472_v5 = vpop.f32.mrb[27].mxu0  ;;  %2412 = vmatprep.subr.bf16.mxu1 %v5027_v47  ;;  %2558 = vmatprep.subr.bf16.mxu0 %v5030_v48  ;;  %v1501_v16 = vmax.f32 %v1394_v50, 0.0  ;;  %v1503_v17 = vmax.f32 %v1467_v53, 0.0  ;;  %v5049_v48 = vld [vmem:[#allocation5 + $0x380] ss:$16 sps:$4 sm:$0xff]  }
 0x31e   : > { %v1400_v9 = vadd.f32 %v1399_v2, %v6132_v14  ;;  %v1473_v10 = vadd.f32 %v1472_v5, %v6135_v15  ;;  %v1502_v42 = vmax.f32 %v1396_v58, 0.0  ;;  %v1504_v20 = vmax.f32 %v1469_v59, 0.0  ;;  %v5060_v58 = vld [vmem:[#allocation5 + $0x3ac] ss:$16 sps:$4 sm:$0xff]  }
 0x31f   : > { %v1505_v18 = vmax.f32 %v1398_v63, 0.0  ;;  %v1507_v19 = vmax.f32 %v1471_v0, 0.0  ;;  %v5055_v0 = vld [vmem:[#allocation5 + $0x3a0] ss:$16 sps:$4 sm:$0xff]  }
 0x320   : > { %v1506_v21 = vmax.f32 %v1400_v9, 0.0  ;;  %v1508_v22 = vmax.f32 %v1473_v10, 0.0  ;;  %2413 = vmatpush1.bf16.msra.mxu1 %v5025_v4  ;;  %2559 = vmatpush1.bf16.msra.mxu0 %v5028_v62  ;;  %v5058_v9 = vld [vmem:[#allocation5 + $0x3a8] ss:$16 sps:$4 sm:$0xff]  }
 0x321   : > { %v1525_v23 = vpack.c.bf16 %v1505_v18, %v1501_v16  ;;  %v6169_v24 = vpack.c.bf16 %v1507_v19, %v1503_v17  ;;  %2414 = vmatprep.subr.bf16.mxu1 %v5033_v6  ;;  %2560 = vmatprep.subr.bf16.mxu0 %v5036_v7 }
 0x322   : > { %v1526_v25 = vpack.c.bf16 %v1506_v21, %v1502_v42  ;;  %v6171_v26 = vpack.c.bf16 %v1508_v22, %v1504_v20  ;;  %v5066_v42 = vld [vmem:[#allocation5 + $0x3cc] ss:$16 sps:$4 sm:$0xff]   ;;  %v5061_v20 = vld [vmem:[#allocation5 + $0x3c0] ss:$16 sps:$4 sm:$0xff]   ;;  %v5064_v21 = vld [vmem:[#allocation5 + $0x3c8] ss:$16 sps:$4 sm:$0xff]  }
 0x323   : > { %v5069_v22 = vld [vmem:[#allocation5 + $0x3e4] ss:$16 sps:$4 sm:$0xff]  }
 0x324   : > { %2375 = vmatprep.mubr.bf16.mxu1 %v1526_v25  ;;  %2521 = vmatprep.mubr.bf16.mxu0 %v1526_v25  ;;  %v5067_v25 = vld [vmem:[#allocation5 + $0x3e0] ss:$16 sps:$4 sm:$0xff]  }
 0x325   : > { %2376 = vmatmul.mubr.bf16.gmra.mrb[24].mxu1 %v1525_v23  ;;  %2522 = vmatmul.mubr.bf16.gmra.mrb[40].mxu0 %v1525_v23  ;;  %v5072_v23 = vld [vmem:[#allocation5 + $0x3ec] ss:$16 sps:$4 sm:$0xff]  }
 0x326   : > { %2415 = vmatpush1.bf16.msra.mxu1 %v5031_v27  ;;  %2561 = vmatpush1.bf16.msra.mxu0 %v5034_v28  ;;  %v5070_v27 = vld [vmem:[#allocation5 + $0x3e8] ss:$16 sps:$4 sm:$0xff]   ;;  %v5075_v28 = vld [vmem:[#allocation7 + $0x4] ss:$8 sps:$4 sm:$0xff]  }
 0x327   : > { %2416 = vmatprep.subr.bf16.mxu1 %v5039_v29  ;;  %2562 = vmatprep.subr.bf16.mxu0 %v5042_v30  ;;  %v5073_v29 = vld [vmem:[#allocation7] ss:$8 sps:$4 sm:$0xff]   ;;  %v5078_v30 = vld [vmem:[#allocation7 + $0x14] ss:$8 sps:$4 sm:$0xff]  }
 0x32a   : > { %2417 = vmatpush1.bf16.msra.mxu1 %v5037_v32  ;;  %2563 = vmatpush1.bf16.msra.mxu0 %v5040_v34  ;;  %v5076_v32 = vld [vmem:[#allocation7 + $0x10] ss:$8 sps:$4 sm:$0xff]   ;;  %v5079_v34 = vld [vmem:[#allocation7 + $0x20] ss:$8 sps:$4 sm:$0xff]  }
 0x32b   : > { %2418 = vmatprep.subr.bf16.mxu1 %v5045_v35  ;;  %2564 = vmatprep.subr.bf16.mxu0 %v5048_v36  ;;  %v5084_v35 = vld [vmem:[#allocation7 + $0x34] ss:$8 sps:$4 sm:$0xff]   ;;  %v5085_v36 = vld [vmem:[#allocation7 + $0x40] ss:$8 sps:$4 sm:$0xff]  }
 0x32d   : > { %v1403_v44 = vpop.f32.mrb[12].mxu1  ;;  %v1476_v45 = vpop.f32.mrb[28].mxu0 }
 0x32e   : > { %v1404_v56 = vadd.f32 %v1403_v44, %v6126_v12  ;;  %v1477_v57 = vadd.f32 %v1476_v45, %v6129_v13  ;;  %2419 = vmatpush1.bf16.msra.mxu1 %v5043_v37  ;;  %2565 = vmatpush1.bf16.msra.mxu0 %v5046_v38  ;;  %v1405_v46 = vpop.f32.mrb[13].mxu1  ;;  %v1478_v47 = vpop.f32.mrb[29].mxu0  ;;  %v5090_v37 = vld [vmem:[#allocation7 + $0x54] ss:$8 sps:$4 sm:$0xff]   ;;  %v5093_v38 = vld [vmem:[#allocation7 + $0x64] ss:$8 sps:$4 sm:$0xff]  }
 0x32f   : > { %v1406_v60 = vadd.f32 %v1405_v46, %v6132_v14  ;;  %v1479_v50 = vadd.f32 %v1478_v47, %v6135_v15  ;;  %v1407_v53 = vpop.f32.mrb[14].mxu1  ;;  %v1480_v8 = vpop.f32.mrb[30].mxu0  ;;  %2420 = vmatprep.subr.bf16.mxu1 %v5051_v39  ;;  %2566 = vmatprep.subr.bf16.mxu0 %v5054_v41  ;;  %v5096_v39 = vld [vmem:[#allocation7 + $0x74] ss:$8 sps:$4 sm:$0xff]   ;;  %v5094_v41 = vld [vmem:[#allocation7 + $0x70] ss:$8 sps:$4 sm:$0xff]  }
 0x330   : > { %v1408_v59 = vadd.f32 %v1407_v53, %v6126_v12  ;;  %v1481_v61 = vadd.f32 %v1480_v8, %v6129_v13  ;;  %v1409_v3 = vpop.f32.mrb[15].mxu1  ;;  %v1482_v4 = vpop.f32.mrb[31].mxu0  ;;  %v1509_v2 = vmax.f32 %v1404_v56, 0.0  ;;  %v1511_v5 = vmax.f32 %v1477_v57, 0.0  ;;  %v5099_v44 = vld [vmem:[#allocation7 + $0x84] ss:$8 sps:$4 sm:$0xff]  }
 0x331   : > { %v1410_v62 = vadd.f32 %v1409_v3, %v6132_v14  ;;  %v1483_v63 = vadd.f32 %v1482_v4, %v6135_v15  ;;  %v1510_v10 = vmax.f32 %v1406_v60, 0.0  ;;  %v1512_v16 = vmax.f32 %v1479_v50, 0.0  ;;  %v5063_v14 = vld [vmem:[#allocation5 + $0x3c4] ss:$16 sps:$4 sm:$0xff]   ;;  %v5100_v56 = vld [vmem:[#allocation7 + $0x90] ss:$8 sps:$4 sm:$0xff]  }
 0x332   : > { %v1513_v6 = vmax.f32 %v1408_v59, 0.0  ;;  %v1515_v7 = vmax.f32 %v1481_v61, 0.0  ;;  %2421 = vmatpush1.bf16.msra.mxu1 %v5049_v48  ;;  %2567 = vmatpush1.bf16.msra.mxu0 %v5052_v49  ;;  %v5102_v45 = vld [vmem:[#allocation7 + $0x94] ss:$8 sps:$4 sm:$0xff]   ;;  %v5105_v57 = vld [vmem:[#allocation7 + $0xa4] ss:$8 sps:$4 sm:$0xff]  }
 0x333   : > { %v1514_v17 = vmax.f32 %v1410_v62, 0.0  ;;  %v1516_v12 = vmax.f32 %v1483_v63, 0.0  ;;  %2422 = vmatprep.subr.bf16.mxu1 %v5057_v54  ;;  %2568 = vmatprep.subr.bf16.mxu0 %v5060_v58  ;;  %v5103_v46 = vld [vmem:[#allocation7 + $0xa0] ss:$8 sps:$4 sm:$0xff]   ;;  %v5108_v47 = vld [vmem:[#allocation7 + $0xb4] ss:$8 sps:$4 sm:$0xff]  }
 0x334   : > { %v1529_v13 = vpack.c.bf16 %v1513_v6, %v1509_v2  ;;  %v6181_v18 = vpack.c.bf16 %v1515_v7, %v1511_v5  ;;  %v5106_v48 = vld [vmem:[#allocation7 + $0xb0] ss:$8 sps:$4 sm:$0xff]   ;;  %v5111_v49 = vld [vmem:[#allocation7 + $0xc4] ss:$8 sps:$4 sm:$0xff]   ;;  %v5109_v60 = vld [vmem:[#allocation7 + $0xc0] ss:$8 sps:$4 sm:$0xff]  }
 0x335   : > { %v1530_v19 = vpack.c.bf16 %v1514_v17, %v1510_v10  ;;  %v1532_v15 = vpack.c.bf16 %v1516_v12, %v1512_v16  ;;  %v5114_v50 = vld [vmem:[#allocation7 + $0xd4] ss:$8 sps:$4 sm:$0xff]   ;;  %v5112_v53 = vld [vmem:[#allocation7 + $0xd0] ss:$8 sps:$4 sm:$0xff]   ;;  %v5117_v8 = vld [vmem:[#allocation7 + $0xe4] ss:$8 sps:$4 sm:$0xff]  }
 0x336   : > { %2423 = vmatpush1.bf16.msra.mxu1 %v5055_v0  ;;  %2569 = vmatpush1.bf16.msra.mxu0 %v5058_v9  ;;  %v5115_v54 = vld [vmem:[#allocation7 + $0xe0] ss:$8 sps:$4 sm:$0xff]   ;;  %v5120_v58 = vld [vmem:[#allocation7 + $0xf4] ss:$8 sps:$4 sm:$0xff]   ;;  %v5118_v59 = vld [vmem:[#allocation7 + $0xf0] ss:$8 sps:$4 sm:$0xff]  }
 0x337   : > { %2385 = vmatprep.mubr.bf16.mxu1 %v1530_v19  ;;  %2531 = vmatprep.mubr.bf16.mxu0 %v1530_v19  ;;  %v5123_v61 = vld [vmem:[#allocation7 + $0x104] ss:$8 sps:$4 sm:$0xff]   ;;  %v5173_v0 = vld [vmem:[#allocation8 + $0x50] sm:$0xff]   ;;  %v5175_v5 = vld [vmem:[#allocation8 + $0x58] sm:$0xff]  }
 0x338   : > { %2386 = vmatmul.mubr.bf16.gmra.mrb[28].mxu1 %v1529_v13  ;;  %2424 = vmatprep.subr.bf16.mxu1 %v5063_v14  ;;  %v5169_v3 = vld [vmem:[#allocation8 + $0x40] sm:$0xff]   ;;  %v5171_v62 = vld [vmem:[#allocation8 + $0x48] sm:$0xff]   ;;  %v5174_v2 = vld [vmem:[#allocation8 + $0x10] sm:$0xff]  }
 0x339   : > { %2532 = vmatmul.mubr.bf16.gmra.mrb[44].mxu0 %v1529_v13  ;;  %2570 = vmatprep.subr.bf16.mxu0 %v5066_v42  ;;  %v5170_v4 = vld [vmem:[#allocation8] sm:$0xff]   ;;  %v5172_v63 = vld [vmem:[#allocation8 + $0x8] sm:$0xff]   ;;  %v5176_v6 = vld [vmem:[#allocation8 + $0x18] sm:$0xff]  }
 0x33a   : > { %2425 = vmatpush1.bf16.msra.mxu1 %v5061_v20  ;;  %2428 = vmatprep.mubr.bf16.mxu1 %v6147_v43  ;;  %v5177_v7 = vld [vmem:[#allocation8 + $0x60] sm:$0xff]   ;;  %v5179_v10 = vld [vmem:[#allocation8 + $0x68] sm:$0xff]  }
 0x33b   : > { %2571 = vmatpush1.bf16.msra.mxu0 %v5064_v21  ;;  %2574 = vmatprep.mubr.bf16.mxu0 %v6147_v43  ;;  %v5081_v43 = vld [vmem:[#allocation7 + $0x24] ss:$8 sps:$4 sm:$0xff]   ;;  %v1661_v17 = vld [vmem:[%s6721_s8] sm:$0xf] }
 0x33c   : > { %2426 = vmatprep.subr.bf16.mxu1 %v5069_v22  ;;  %2572 = vmatprep.subr.bf16.mxu0 %v5072_v23  ;;  %v5178_v9 = vld [vmem:[#allocation8 + $0x20] sm:$0xff]   ;;  %v5180_v16 = vld [vmem:[#allocation8 + $0x28] sm:$0xff]   ;;  %v6201_v12 = vrot.slane %v1661_v17, %v5928_v52  ;;  %v6204_v13 = vrot.slane %v1661_v17, %v5931_v55  ;;  %v6210_v14 = vrot.slane %v1661_v17, %v6123_v11 }
 0x33e   : > { %2427 = vmatpush1.bf16.msra.mxu1 %v5067_v25 }
 0x33f   : > { %2573 = vmatpush1.bf16.msra.mxu0 %v5070_v27  ;;  %3059 = vmatprep.subr.bf16.mxu1 %v5075_v28 }
 0x340   : > { %4519 = vmatprep.subr.bf16.mxu0 %v5169_v3 }
 0x341   : > { %2429 = vmatmul.mubr.bf16.vlgmr.msra.gmra.mrb[16].mxu1 %v6145_v40 }
 0x342   : > { %2575 = vmatmul.mubr.bf16.vlgmr.msra.gmra.mrb[32].mxu0 %v6145_v40  ;;  %2438 = vmatprep.mubr.bf16.mxu1 %v6159_v33  ;;  %v5082_v40 = vld [vmem:[#allocation7 + $0x30] ss:$8 sps:$4 sm:$0xff]  }
 0x343   : > { %2584 = vmatprep.mubr.bf16.mxu0 %v6159_v33  ;;  %3060 = vmatpush1.bf16.msra.mxu1 %v5073_v29  ;;  %v5087_v33 = vld [vmem:[#allocation7 + $0x44] ss:$8 sps:$4 sm:$0xff]  }
 0x344   : > { %3061 = vmatprep.subr.bf16.mxu1 %v5078_v30  ;;  %4520 = vmatpush3.bf16.msra.mxu0 %v5170_v4 }
 0x345   : > { %4521 = vmatprep.subr.bf16.mxu0 %v5171_v62 }
 0x347   : > { %3062 = vmatpush1.bf16.msra.mxu1 %v5076_v32 }
 0x348   : > { %3063 = vmatprep.subr.bf16.mxu1 %v5081_v43  ;;  %4522 = vmatpush3.bf16.msra.mxu0 %v5172_v63  ;;  %v5124_v63 = vld [vmem:[#allocation7 + $0x110] ss:$8 sps:$4 sm:$0xff]  }
 0x349   : > { %2439 = vmatmul.mubr.bf16.gmra.mrb[20].mxu1 %v6157_v31  ;;  %4523 = vmatprep.subr.bf16.mxu0 %v5173_v0 }
 0x34a   : > { %2585 = vmatmul.mubr.bf16.gmra.mrb[36].mxu0 %v6157_v31  ;;  %2448 = vmatprep.mubr.bf16.mxu1 %v6171_v26  ;;  %v5088_v31 = vld [vmem:[#allocation7 + $0x50] ss:$8 sps:$4 sm:$0xff]  }
 0x34b   : > { %2594 = vmatprep.mubr.bf16.mxu0 %v6171_v26  ;;  %3064 = vmatpush1.bf16.msra.mxu1 %v5079_v34  ;;  %v5091_v26 = vld [vmem:[#allocation7 + $0x60] ss:$8 sps:$4 sm:$0xff]  }
 0x34c   : > { %3065 = vmatprep.subr.bf16.mxu1 %v5084_v35  ;;  %4524 = vmatpush3.bf16.msra.mxu0 %v5174_v2 }
 0x34d   : > { %4525 = vmatprep.subr.bf16.mxu0 %v5175_v5 }
 0x34f   : > { %3066 = vmatpush1.bf16.msra.mxu1 %v5082_v40 }
 0x350   : > { %3067 = vmatprep.subr.bf16.mxu1 %v5087_v33  ;;  %4526 = vmatpush3.bf16.msra.mxu0 %v5176_v6  ;;  %v5129_v6 = vld [vmem:[#allocation7 + $0x124] ss:$8 sps:$4 sm:$0xff]  }
 0x351   : > { %2449 = vmatmul.mubr.bf16.gmra.mrb[24].mxu1 %v6169_v24  ;;  %4527 = vmatprep.subr.bf16.mxu0 %v5177_v7 }
 0x352   : > { %2595 = vmatmul.mubr.bf16.gmra.mrb[40].mxu0 %v6169_v24  ;;  %2458 = vmatprep.mubr.bf16.mxu1 %v1532_v15  ;;  %v5097_v24 = vld [vmem:[#allocation7 + $0x80] ss:$8 sps:$4 sm:$0xff]  }
 0x353   : > { %2604 = vmatprep.mubr.bf16.mxu0 %v1532_v15  ;;  %3068 = vmatpush1.bf16.msra.mxu1 %v5085_v36 }
 0x354   : > { %3069 = vmatprep.subr.bf16.mxu1 %v5090_v37  ;;  %4528 = vmatpush3.bf16.msra.mxu0 %v5178_v9 }
 0x355   : > { %4529 = vmatprep.subr.bf16.mxu0 %v5179_v10 }
 0x357   : > { %3070 = vmatpush1.bf16.msra.mxu1 %v5088_v31 }
 0x358   : > { %3071 = vmatprep.subr.bf16.mxu1 %v5093_v38  ;;  %4530 = vmatpush3.bf16.msra.mxu0 %v5180_v16 }
 0x359   : > { %2459 = vmatmul.mubr.bf16.gmra.mrb[28].mxu1 %v6181_v18 }
 0x35a   : > { %2605 = vmatmul.mubr.bf16.gmra.mrb[44].mxu0 %v6181_v18  ;;  %v6207_v18 = vrot.slane %v1661_v17, %v5925_v51 }
 0x35b   : > { %3072 = vmatpush1.bf16.msra.mxu1 %v5091_v26 }
 0x35c   : > { %3073 = vmatprep.subr.bf16.mxu1 %v5096_v39 }
 0x35f   : > { %3074 = vmatpush1.bf16.msra.mxu1 %v5094_v41 }
 0x360   : > { %3075 = vmatprep.subr.bf16.mxu1 %v5099_v44 }
 0x363   : > { %3076 = vmatpush1.bf16.msra.mxu1 %v5097_v24 }
 0x364   : > { %3077 = vmatprep.subr.bf16.mxu1 %v5102_v45 }
 0x367   : > { %3078 = vmatpush1.bf16.msra.mxu1 %v5100_v56  ;;  %v5121_v56 = vld [vmem:[#allocation7 + $0x100] ss:$8 sps:$4 sm:$0xff]  }
 0x368   : > { %3079 = vmatprep.subr.bf16.mxu1 %v5105_v57 }
 0x36b   : > { %3080 = vmatpush1.bf16.msra.mxu1 %v5103_v46 }
 0x36c   : > { %3081 = vmatprep.subr.bf16.mxu1 %v5108_v47 }
 0x36f   : > { %3082 = vmatpush1.bf16.msra.mxu1 %v5106_v48 }
 0x370   : > { %3083 = vmatprep.subr.bf16.mxu1 %v5111_v49  ;;  %v5126_v49 = vld [vmem:[#allocation7 + $0x114] ss:$8 sps:$4 sm:$0xff]  }
 0x373   : > { %3084 = vmatpush1.bf16.msra.mxu1 %v5109_v60 }
 0x374   : > { %3085 = vmatprep.subr.bf16.mxu1 %v5114_v50 }
 0x377   : > { %3086 = vmatpush1.bf16.msra.mxu1 %v5112_v53 }
 0x378   : > { %3087 = vmatprep.subr.bf16.mxu1 %v5117_v8 }
 0x37b   : > { %3088 = vmatpush1.bf16.msra.mxu1 %v5115_v54 }
 0x37c   : > { %3089 = vmatprep.subr.bf16.mxu1 %v5120_v58 }
 0x37f   : > { %3090 = vmatpush1.bf16.msra.mxu1 %v5118_v59 }
 0x380   : > { %3132 = vmatprep.subr.bf16.mxu1 %v5123_v61 }
 0x414   : > { %v2430_v19 = vpop.f32.mrb[16].mxu1 }
 0x415   : > { %v4559_v15 = vadd.f32 %v2430_v19, %v6201_v12  ;;  %v2576_v42 = vpop.f32.mrb[32].mxu0  ;;  %v2432_v20 = vpop.f32.mrb[17].mxu1 }
 0x416   : > { %v4575_v21 = vadd.f32 %v2576_v42, %v6204_v13  ;;  %v4560_v22 = vadd.f32 %v2432_v20, %v6207_v18  ;;  %v2578_v23 = vpop.f32.mrb[33].mxu0  ;;  %v2434_v25 = vpop.f32.mrb[18].mxu1 }
 0x417   : > { %v4576_v27 = vadd.f32 %v2578_v23, %v6210_v14  ;;  %v4561_v28 = vadd.f32 %v2434_v25, %v6201_v12  ;;  %v2580_v29 = vpop.f32.mrb[34].mxu0  ;;  %v2436_v30 = vpop.f32.mrb[19].mxu1  ;;  %v2615_v35 = vmax.f32 %v4559_v15, 0.0 }
 0x418   : > { %v4577_v32 = vadd.f32 %v2580_v29, %v6204_v13  ;;  %v4562_v43 = vadd.f32 %v2436_v30, %v6207_v18  ;;  %v2582_v34 = vpop.f32.mrb[35].mxu0  ;;  %v2617_v36 = vmax.f32 %v4575_v21, 0.0  ;;  %v2616_v37 = vmax.f32 %v4560_v22, 0.0  ;;  %v5127_v22 = vld [vmem:[#allocation7 + $0x120] ss:$8 sps:$4 sm:$0xff]  }
 0x419   : > { %v2619_v40 = vmax.f32 %v4561_v28, 0.0  ;;  %v4578_v33 = vadd.f32 %v2582_v34, %v6210_v14  ;;  %v2618_v26 = vmax.f32 %v4576_v27, 0.0  ;;  %v5132_v29 = vld [vmem:[#allocation7 + $0x134] ss:$8 sps:$4 sm:$0xff]  }
 0x41a   : > { %v2621_v31 = vmax.f32 %v4577_v32, 0.0  ;;  %v2620_v38 = vmax.f32 %v4562_v43, 0.0 }
 0x41b   : > { %v2647_v39 = vpack.c.bf16 %v2619_v40, %v2615_v35  ;;  %v2622_v41 = vmax.f32 %v4578_v33, 0.0 }
 0x41c   : > { %v6220_v44 = vpack.c.bf16 %v2621_v31, %v2617_v36  ;;  %v2648_v24 = vpack.c.bf16 %v2620_v38, %v2616_v37  ;;  %v2440_v45 = vpop.f32.mrb[20].mxu1 }
 0x41d   : > { %v6222_v57 = vpack.c.bf16 %v2622_v41, %v2618_v26  ;;  %v4563_v46 = vadd.f32 %v2440_v45, %v6201_v12  ;;  %v2586_v47 = vpop.f32.mrb[36].mxu0  ;;  %v2442_v48 = vpop.f32.mrb[21].mxu1  ;;  %v5130_v26 = vld [vmem:[#allocation7 + $0x130] ss:$8 sps:$4 sm:$0xff]   ;;  %v5135_v45 = vld [vmem:[#allocation7 + $0x144] ss:$8 sps:$4 sm:$0xff]  }
 0x41e   : > { %v4579_v60 = vadd.f32 %v2586_v47, %v6204_v13  ;;  %v4564_v50 = vadd.f32 %v2442_v48, %v6207_v18  ;;  %v2588_v53 = vpop.f32.mrb[37].mxu0  ;;  %v2444_v8 = vpop.f32.mrb[22].mxu1  ;;  %3091 = vmatprep.mubr.bf16.mxu1 %v2648_v24 }
 0x41f   : > { %v4580_v54 = vadd.f32 %v2588_v53, %v6210_v14  ;;  %v4565_v58 = vadd.f32 %v2444_v8, %v6201_v12  ;;  %v2590_v59 = vpop.f32.mrb[38].mxu0  ;;  %v2446_v61 = vpop.f32.mrb[23].mxu1  ;;  %3092 = vmatmul.mubr.bf16.vlgmr.msra.gmra.mrb[32].mxu1 %v2647_v39  ;;  %v2623_v0 = vmax.f32 %v4563_v46, 0.0 }
 0x420   : > { %v4581_v3 = vadd.f32 %v2590_v59, %v6204_v13  ;;  %v4566_v4 = vadd.f32 %v2446_v61, %v6207_v18  ;;  %v2592_v62 = vpop.f32.mrb[39].mxu0  ;;  %3133 = vmatpush1.bf16.msra.mxu1 %v5121_v56  ;;  %v2625_v7 = vmax.f32 %v4579_v60, 0.0  ;;  %v2624_v9 = vmax.f32 %v4564_v50, 0.0 }
 0x421   : > { %v2627_v2 = vmax.f32 %v4565_v58, 0.0  ;;  %v4582_v5 = vadd.f32 %v2592_v62, %v6210_v14  ;;  %3134 = vmatprep.subr.bf16.mxu1 %v5126_v49  ;;  %v2626_v17 = vmax.f32 %v4580_v54, 0.0  ;;  %v5133_v58 = vld [vmem:[#allocation7 + $0x140] ss:$8 sps:$4 sm:$0xff]   ;;  %v5138_v62 = vld [vmem:[#allocation7 + $0x154] ss:$8 sps:$4 sm:$0xff]  }
 0x422   : > { %v2629_v10 = vmax.f32 %v4581_v3, 0.0  ;;  %v2628_v16 = vmax.f32 %v4566_v4, 0.0 }
 0x423   : > { %v2651_v19 = vpack.c.bf16 %v2627_v2, %v2623_v0  ;;  %v2630_v15 = vmax.f32 %v4582_v5, 0.0 }
 0x424   : > { %v6232_v42 = vpack.c.bf16 %v2629_v10, %v2625_v7  ;;  %v2652_v20 = vpack.c.bf16 %v2628_v16, %v2624_v9  ;;  %3135 = vmatpush1.bf16.msra.mxu1 %v5124_v63  ;;  %v2450_v21 = vpop.f32.mrb[24].mxu1 }
 0x425   : > { %v6234_v23 = vpack.c.bf16 %v2630_v15, %v2626_v17  ;;  %v4567_v25 = vadd.f32 %v2450_v21, %v6201_v12  ;;  %v2596_v27 = vpop.f32.mrb[40].mxu0  ;;  %v2452_v28 = vpop.f32.mrb[25].mxu1  ;;  %3136 = vmatprep.subr.bf16.mxu1 %v5129_v6  ;;  %v5136_v15 = vld [vmem:[#allocation7 + $0x150] ss:$8 sps:$4 sm:$0xff]  }
 0x426   : > { %v4583_v30 = vadd.f32 %v2596_v27, %v6204_v13  ;;  %v4568_v32 = vadd.f32 %v2452_v28, %v6207_v18  ;;  %v2598_v43 = vpop.f32.mrb[41].mxu0  ;;  %v2454_v34 = vpop.f32.mrb[26].mxu1  ;;  %3101 = vmatprep.mubr.bf16.mxu1 %v2652_v20 }
 0x427   : > { %v4584_v35 = vadd.f32 %v2598_v43, %v6210_v14  ;;  %v4569_v40 = vadd.f32 %v2454_v34, %v6201_v12  ;;  %v2600_v33 = vpop.f32.mrb[42].mxu0  ;;  %v2456_v36 = vpop.f32.mrb[27].mxu1  ;;  %3102 = vmatmul.mubr.bf16.gmra.mrb[36].mxu1 %v2651_v19  ;;  %v2631_v39 = vmax.f32 %v4567_v25, 0.0  ;;  %v5141_v25 = vld [vmem:[#allocation7 + $0x164] ss:$8 sps:$4 sm:$0xff]  }
 0x428   : > { %v4585_v37 = vadd.f32 %v2600_v33, %v6204_v13  ;;  %v4570_v31 = vadd.f32 %v2456_v36, %v6207_v18  ;;  %v2602_v38 = vpop.f32.mrb[43].mxu0  ;;  %3137 = vmatpush1.bf16.msra.mxu1 %v5127_v22  ;;  %v2633_v56 = vmax.f32 %v4583_v30, 0.0  ;;  %v2632_v46 = vmax.f32 %v4568_v32, 0.0  ;;  %v5147_v33 = vld [vmem:[#allocation7 + $0x184] ss:$8 sps:$4 sm:$0xff]  }
 0x429   : > { %v2635_v41 = vmax.f32 %v4569_v40, 0.0  ;;  %v4586_v24 = vadd.f32 %v2602_v38, %v6210_v14  ;;  %3138 = vmatprep.subr.bf16.mxu1 %v5132_v29  ;;  %v2634_v49 = vmax.f32 %v4584_v35, 0.0  ;;  %v5144_v40 = vld [vmem:[#allocation7 + $0x174] ss:$8 sps:$4 sm:$0xff]   ;;  %v5145_v36 = vld [vmem:[#allocation7 + $0x180] ss:$8 sps:$4 sm:$0xff]  }
 0x42a   : > { %v2637_v47 = vmax.f32 %v4585_v37, 0.0  ;;  %v2636_v48 = vmax.f32 %v4570_v31, 0.0  ;;  %v5150_v37 = vld [vmem:[#allocation7 + $0x194] ss:$8 sps:$4 sm:$0xff]   ;;  %v5148_v31 = vld [vmem:[#allocation7 + $0x190] ss:$8 sps:$4 sm:$0xff]  }
 0x42b   : > { %v2655_v60 = vpack.c.bf16 %v2635_v41, %v2631_v39  ;;  %v2638_v50 = vmax.f32 %v4586_v24, 0.0  ;;  %v5153_v38 = vld [vmem:[#allocation7 + $0x1a4] ss:$8 sps:$4 sm:$0xff]   ;;  %v5156_v39 = vld [vmem:[#allocation7 + $0x1b4] ss:$8 sps:$4 sm:$0xff]  }
 0x42c   : > { %v6244_v53 = vpack.c.bf16 %v2637_v47, %v2633_v56  ;;  %v2656_v8 = vpack.c.bf16 %v2636_v48, %v2632_v46  ;;  %3139 = vmatpush1.bf16.msra.mxu1 %v5130_v26  ;;  %v2460_v54 = vpop.f32.mrb[28].mxu1  ;;  %v5151_v26 = vld [vmem:[#allocation7 + $0x1a0] ss:$8 sps:$4 sm:$0xff]   ;;  %v5154_v41 = vld [vmem:[#allocation7 + $0x1b0] ss:$8 sps:$4 sm:$0xff]  }
 0x42d   : > { %v6246_v59 = vpack.c.bf16 %v2638_v50, %v2634_v49  ;;  %v4571_v61 = vadd.f32 %v2460_v54, %v6201_v12  ;;  %v2606_v3 = vpop.f32.mrb[44].mxu0  ;;  %v2462_v4 = vpop.f32.mrb[29].mxu1  ;;  %3140 = vmatprep.subr.bf16.mxu1 %v5135_v45  ;;  %v5159_v24 = vld [vmem:[#allocation7 + $0x1c4] ss:$8 sps:$4 sm:$0xff]   ;;  %v5162_v45 = vld [vmem:[#allocation7 + $0x1d4] ss:$8 sps:$4 sm:$0xff]  }
 0x42e   : > { %v4587_v63 = vadd.f32 %v2606_v3, %v6204_v13  ;;  %v4572_v0 = vadd.f32 %v2462_v4, %v6207_v18  ;;  %v2608_v2 = vpop.f32.mrb[45].mxu0  ;;  %v2464_v5 = vpop.f32.mrb[30].mxu1  ;;  %3111 = vmatprep.mubr.bf16.mxu1 %v2656_v8  ;;  %v5160_v56 = vld [vmem:[#allocation7 + $0x1d0] ss:$8 sps:$4 sm:$0xff]   ;;  %v5165_v46 = vld [vmem:[#allocation7 + $0x1e4] ss:$8 sps:$4 sm:$0xff]  }
 0x42f   : > { %v4588_v6 = vadd.f32 %v2608_v2, %v6210_v14  ;;  %v4573_v7 = vadd.f32 %v2464_v5, %v6201_v12  ;;  %v2610_v9 = vpop.f32.mrb[46].mxu0  ;;  %v2466_v10 = vpop.f32.mrb[31].mxu1  ;;  %3112 = vmatmul.mubr.bf16.gmra.mrb[40].mxu1 %v2655_v60  ;;  %v2639_v20 = vmax.f32 %v4571_v61, 0.0  ;;  %v5163_v47 = vld [vmem:[#allocation7 + $0x1e0] ss:$8 sps:$4 sm:$0xff]   ;;  %v5181_v60 = vld [vmem:[#allocation8 + $0x70] sm:$0xff]  }
 0x430   : > { %v4589_v16 = vadd.f32 %v2610_v9, %v6204_v13  ;;  %v4574_v17 = vadd.f32 %v2466_v10, %v6207_v18  ;;  %v2612_v19 = vpop.f32.mrb[47].mxu0  ;;  %3141 = vmatpush1.bf16.msra.mxu1 %v5133_v58  ;;  %v2641_v27 = vmax.f32 %v4587_v63, 0.0  ;;  %v2640_v28 = vmax.f32 %v4572_v0, 0.0  ;;  %v5139_v18 = vld [vmem:[#allocation7 + $0x160] ss:$8 sps:$4 sm:$0xff]   ;;  %v5182_v50 = vld [vmem:[#allocation8 + $0x30] sm:$0xff]   ;;  %4531 = vmatprep.subr.bf16.mxu0 %v5181_v60 }
 0x431   : > { %v2643_v21 = vmax.f32 %v4573_v7, 0.0  ;;  %v4590_v22 = vadd.f32 %v2612_v19, %v6210_v14  ;;  %3142 = vmatprep.subr.bf16.mxu1 %v5138_v62  ;;  %v2642_v30 = vmax.f32 %v4588_v6, 0.0  ;;  %v5142_v14 = vld [vmem:[#allocation7 + $0x170] ss:$8 sps:$4 sm:$0xff]   ;;  %v5168_v48 = vld [vmem:[#allocation7 + $0x1f4] ss:$8 sps:$4 sm:$0xff]   ;;  %4532 = vmatpush3.bf16.msra.mxu0 %v5182_v50 }
 0x432   : > { %v2645_v29 = vmax.f32 %v4589_v16, 0.0  ;;  %v2644_v12 = vmax.f32 %v4574_v17, 0.0  ;;  %v5166_v49 = vld [vmem:[#allocation7 + $0x1f0] ss:$8 sps:$4 sm:$0xff]   ;;  %v5187_v58 = vld [vmem:[#allocation10 + $0x4] ss:$16 sps:$4 sm:$0xff]  }
 0x433   : > { %v2659_v32 = vpack.c.bf16 %v2643_v21, %v2639_v20  ;;  %v2646_v43 = vmax.f32 %v4590_v22, 0.0  ;;  %v5183_v8 = vld [vmem:[#allocation8 + $0x78] sm:$0xff]   ;;  %v5185_v17 = vld [vmem:[#allocation10] ss:$16 sps:$4 sm:$0xff]   ;;  %v5190_v20 = vld [vmem:[#allocation10 + $0x24] ss:$16 sps:$4 sm:$0xff]  }
 0x434   : > { %v2661_v34 = vpack.c.bf16 %v2645_v29, %v2641_v27  ;;  %v2660_v13 = vpack.c.bf16 %v2644_v12, %v2640_v28  ;;  %3143 = vmatpush1.bf16.msra.mxu1 %v5136_v15  ;;  %v5184_v54 = vld [vmem:[#allocation8 + $0x38] sm:$0xff]   ;;  %4533 = vmatprep.subr.bf16.mxu0 %v5183_v8  ;;  %v5188_v29 = vld [vmem:[#allocation10 + $0x20] ss:$16 sps:$4 sm:$0xff]  }
 0x435   : > { %v2662_v35 = vpack.c.bf16 %v2646_v43, %v2642_v30  ;;  %3144 = vmatprep.subr.bf16.mxu1 %v5141_v25  ;;  %4534 = vmatpush3.bf16.msra.mxu0 %v5184_v54  ;;  %v5197_v60 = vld [vmem:[#allocation10 + $0x80] ss:$16 sps:$4 sm:$0xff]   ;;  %v5202_v54 = vld [vmem:[#allocation10 + $0xa4] ss:$16 sps:$4 sm:$0xff]  }
 0x436   : > { %3121 = vmatprep.mubr.bf16.mxu1 %v2660_v13  ;;  %3655 = vmatprep.subr.bf16.mxu0 %v5187_v58 }
 0x437   : > { %3122 = vmatmul.mubr.bf16.gmra.mrb[44].mxu1 %v2659_v32  ;;  %v5193_v32 = vld [vmem:[#allocation10 + $0x44] ss:$16 sps:$4 sm:$0xff]  }
 0x438   : > { %3145 = vmatpush1.bf16.msra.mxu1 %v5139_v18  ;;  %3164 = vmatprep.mubr.bf16.mxu1 %v6222_v57  ;;  %v5157_v57 = vld [vmem:[#allocation7 + $0x1c0] ss:$8 sps:$4 sm:$0xff]  }
 0x439   : > { %3146 = vmatprep.subr.bf16.mxu1 %v5144_v40  ;;  %v5191_v40 = vld [vmem:[#allocation10 + $0x40] ss:$16 sps:$4 sm:$0xff]  }
 0x43c   : > { %3147 = vmatpush1.bf16.msra.mxu1 %v5142_v14 }
 0x43d   : > { %3148 = vmatprep.subr.bf16.mxu1 %v5147_v33 }
 0x440   : > { %3149 = vmatpush1.bf16.msra.mxu1 %v5145_v36  ;;  %v5196_v36 = vld [vmem:[#allocation10 + $0x64] ss:$16 sps:$4 sm:$0xff]  }
 0x441   : > { %3150 = vmatprep.subr.bf16.mxu1 %v5150_v37 }
 0x444   : > { %3151 = vmatpush1.bf16.msra.mxu1 %v5148_v31 }
 0x445   : > { %3152 = vmatprep.subr.bf16.mxu1 %v5153_v38 }
 0x448   : > { %3153 = vmatpush1.bf16.msra.mxu1 %v5151_v26 }
 0x449   : > { %3154 = vmatprep.subr.bf16.mxu1 %v5156_v39 }
 0x44c   : > { %3155 = vmatpush1.bf16.msra.mxu1 %v5154_v41  ;;  %v5194_v41 = vld [vmem:[#allocation10 + $0x60] ss:$16 sps:$4 sm:$0xff]  }
 0x44d   : > { %3156 = vmatprep.subr.bf16.mxu1 %v5159_v24 }
 0x450   : > { %3157 = vmatpush1.bf16.msra.mxu1 %v5157_v57 }
 0x451   : > { %3158 = vmatprep.subr.bf16.mxu1 %v5162_v45  ;;  %v5199_v45 = vld [vmem:[#allocation10 + $0x84] ss:$16 sps:$4 sm:$0xff]  }
 0x454   : > { %3159 = vmatpush1.bf16.msra.mxu1 %v5160_v56 }
 0x455   : > { %3160 = vmatprep.subr.bf16.mxu1 %v5165_v46 }
 0x458   : > { %3161 = vmatpush1.bf16.msra.mxu1 %v5163_v47 }
 0x459   : > { %3162 = vmatprep.subr.bf16.mxu1 %v5168_v48 }
 0x45c   : > { %3163 = vmatpush1.bf16.msra.mxu1 %v5166_v49 }
 0x45f   : > { %3165 = vmatmul.mubr.bf16.vlgmr.msra.gmra.mrb[32].mxu1 %v6220_v44  ;;  %v2727_v44 = vld [vmem:[%s6723_s10] sm:$0x3] }
 0x460   : > { %3174 = vmatprep.mubr.bf16.mxu1 %v6234_v23  ;;  %v6269_v23 = vrot.slane %v2727_v44, %v5925_v51 }
 0x467   : > { %3175 = vmatmul.mubr.bf16.gmra.mrb[36].mxu1 %v6232_v42  ;;  %v6266_v42 = vrot.slane %v2727_v44, %v5928_v52 }
 0x468   : > { %3184 = vmatprep.mubr.bf16.mxu1 %v6246_v59 }
 0x46f   : > { %3185 = vmatmul.mubr.bf16.gmra.mrb[40].mxu1 %v6244_v53 }
 0x470   : > { %3194 = vmatprep.mubr.bf16.mxu1 %v2662_v35 }
 0x477   : > { %3195 = vmatmul.mubr.bf16.gmra.mrb[44].mxu1 %v2661_v34 }
 0x532   : > { %v3166_v53 = vpop.f32.mrb[32].mxu1 }
 0x533   : > { %v4591_v59 = vadd.f32 %v3166_v53, %v6266_v42  ;;  %v3168_v61 = vpop.f32.mrb[33].mxu1 }
 0x534   : > { %v4592_v3 = vadd.f32 %v3168_v61, %v6269_v23  ;;  %v3170_v4 = vpop.f32.mrb[34].mxu1 }
 0x535   : > { %v4593_v62 = vadd.f32 %v3170_v4, %v6266_v42  ;;  %v3172_v63 = vpop.f32.mrb[35].mxu1  ;;  %v3205_v2 = vmax.f32 %v4591_v59, 0.0 }
 0x536   : > { %v4594_v0 = vadd.f32 %v3172_v63, %v6269_v23  ;;  %v3206_v6 = vmax.f32 %v4592_v3, 0.0  ;;  %v5200_v3 = vld [vmem:[#allocation10 + $0xa0] ss:$16 sps:$4 sm:$0xff]  }
 0x537   : > { %v3207_v5 = vmax.f32 %v4593_v62, 0.0 }
 0x538   : > { %v3208_v7 = vmax.f32 %v4594_v0, 0.0 }
 0x539   : > { %v3221_v9 = vpack.c.bf16 %v3207_v5, %v3205_v2 }
 0x53a   : > { %v3222_v10 = vpack.c.bf16 %v3208_v7, %v3206_v6  ;;  %v3176_v16 = vpop.f32.mrb[36].mxu1  ;;  %v5205_v6 = vld [vmem:[#allocation10 + $0xc4] ss:$16 sps:$4 sm:$0xff]  }
 0x53b   : > { %v4595_v19 = vadd.f32 %v3176_v16, %v6266_v42  ;;  %v3178_v15 = vpop.f32.mrb[37].mxu1  ;;  %v5208_v7 = vld [vmem:[#allocation10 + $0xe4] ss:$16 sps:$4 sm:$0xff]   ;;  %v6291_v16 = vld [vmem:[%s6774_s17] ss:$0 sm:$0xff] }
 0x53c   : > { %v4596_v21 = vadd.f32 %v3178_v15, %v6269_v23  ;;  %v3180_v22 = vpop.f32.mrb[38].mxu1  ;;  %3396 = vmatprep.mubr.bf16.mxu0 %v3222_v10 }
 0x53d   : > { %v4597_v25 = vadd.f32 %v3180_v22, %v6266_v42  ;;  %v3182_v27 = vpop.f32.mrb[39].mxu1  ;;  %3397 = vmatmul.mubr.bf16.vlgmr.msra.gmra.mrb[48].mxu0 %v3221_v9  ;;  %v3209_v12 = vmax.f32 %v4595_v19, 0.0  ;;  %v5211_v9 = vld [vmem:[#allocation10 + $0xc] ss:$16 sps:$4 sm:$0xff]  }
 0x53e   : > { %v4598_v28 = vadd.f32 %v3182_v27, %v6269_v23  ;;  %3656 = vmatpush1.bf16.msra.mxu0 %v5185_v17  ;;  %v3210_v43 = vmax.f32 %v4596_v21, 0.0 }
 0x53f   : > { %v3211_v30 = vmax.f32 %v4597_v25, 0.0  ;;  %3657 = vmatprep.subr.bf16.mxu0 %v5190_v20 }
 0x540   : > { %v3212_v34 = vmax.f32 %v4598_v28, 0.0 }
 0x541   : > { %v3223_v13 = vpack.c.bf16 %v3211_v30, %v3209_v12  ;;  %v5209_v30 = vld [vmem:[#allocation10 + $0x8] ss:$16 sps:$4 sm:$0xff]  }
 0x542   : > { %v3224_v18 = vpack.c.bf16 %v3212_v34, %v3210_v43  ;;  %v3186_v35 = vpop.f32.mrb[40].mxu1  ;;  %3658 = vmatpush1.bf16.msra.mxu0 %v5188_v29 }
 0x543   : > { %v4599_v14 = vadd.f32 %v3186_v35, %v6266_v42  ;;  %v3188_v33 = vpop.f32.mrb[41].mxu1  ;;  %3659 = vmatprep.subr.bf16.mxu0 %v5193_v32 }
 0x544   : > { %v4600_v37 = vadd.f32 %v3188_v33, %v6269_v23  ;;  %v3190_v31 = vpop.f32.mrb[42].mxu1  ;;  %3404 = vmatprep.mubr.bf16.mxu0 %v3224_v18 }
 0x545   : > { %v4601_v38 = vadd.f32 %v3190_v31, %v6266_v42  ;;  %v3192_v26 = vpop.f32.mrb[43].mxu1  ;;  %3405 = vmatmul.mubr.bf16.gmra.mrb[52].mxu0 %v3223_v13  ;;  %v3213_v24 = vmax.f32 %v4599_v14, 0.0  ;;  %v5214_v13 = vld [vmem:[#allocation10 + $0x2c] ss:$16 sps:$4 sm:$0xff]   ;;  %v5212_v14 = vld [vmem:[#allocation10 + $0x28] ss:$16 sps:$4 sm:$0xff]  }
 0x546   : > { %v4602_v39 = vadd.f32 %v3192_v26, %v6269_v23  ;;  %3660 = vmatpush1.bf16.msra.mxu0 %v5191_v40  ;;  %v3214_v56 = vmax.f32 %v4600_v37, 0.0 }
 0x547   : > { %v3215_v57 = vmax.f32 %v4601_v38, 0.0  ;;  %3661 = vmatprep.subr.bf16.mxu0 %v5196_v36  ;;  %v5217_v36 = vld [vmem:[#allocation10 + $0x4c] ss:$16 sps:$4 sm:$0xff]  }
 0x548   : > { %v3216_v46 = vmax.f32 %v4602_v39, 0.0  ;;  %v5215_v39 = vld [vmem:[#allocation10 + $0x48] ss:$16 sps:$4 sm:$0xff]  }
 0x549   : > { %v3225_v47 = vpack.c.bf16 %v3215_v57, %v3213_v24 }
 0x54a   : > { %v3226_v48 = vpack.c.bf16 %v3216_v46, %v3214_v56  ;;  %v3196_v49 = vpop.f32.mrb[44].mxu1  ;;  %3662 = vmatpush1.bf16.msra.mxu0 %v5194_v41 }
 0x54b   : > { %v4603_v50 = vadd.f32 %v3196_v49, %v6266_v42  ;;  %v3198_v8 = vpop.f32.mrb[45].mxu1  ;;  %3663 = vmatprep.subr.bf16.mxu0 %v5199_v45  ;;  %v5220_v45 = vld [vmem:[#allocation10 + $0x6c] ss:$16 sps:$4 sm:$0xff]  }
 0x54c   : > { %v4604_v58 = vadd.f32 %v3198_v8, %v6269_v23  ;;  %v3200_v44 = vpop.f32.mrb[46].mxu1  ;;  %3412 = vmatprep.mubr.bf16.mxu0 %v3226_v48  ;;  %v5218_v48 = vld [vmem:[#allocation10 + $0x68] ss:$16 sps:$4 sm:$0xff]  }
 0x54d   : > { %v4605_v53 = vadd.f32 %v3200_v44, %v6266_v42  ;;  %v3202_v59 = vpop.f32.mrb[47].mxu1  ;;  %3413 = vmatmul.mubr.bf16.gmra.mrb[56].mxu0 %v3225_v47  ;;  %v3217_v4 = vmax.f32 %v4603_v50, 0.0  ;;  %v5203_v42 = vld [vmem:[#allocation10 + $0xc0] ss:$16 sps:$4 sm:$0xff]   ;;  %v5221_v44 = vld [vmem:[#allocation10 + $0x88] ss:$16 sps:$4 sm:$0xff]  }
 0x54e   : > { %v4606_v61 = vadd.f32 %v3202_v59, %v6269_v23  ;;  %3664 = vmatpush1.bf16.msra.mxu0 %v5197_v60  ;;  %v3218_v63 = vmax.f32 %v4604_v58, 0.0  ;;  %v5206_v23 = vld [vmem:[#allocation10 + $0xe0] ss:$16 sps:$4 sm:$0xff]   ;;  %v5223_v60 = vld [vmem:[#allocation10 + $0x8c] ss:$16 sps:$4 sm:$0xff]  }
 0x54f   : > { %v3219_v62 = vmax.f32 %v4605_v53, 0.0  ;;  %3665 = vmatprep.subr.bf16.mxu0 %v5202_v54 }
 0x550   : > { %v3220_v0 = vmax.f32 %v4606_v61, 0.0 }
 0x551   : > { %v3227_v2 = vpack.c.bf16 %v3219_v62, %v3217_v4 }
 0x552   : > { %v3228_v5 = vpack.c.bf16 %v3220_v0, %v3218_v63  ;;  %3666 = vmatpush1.bf16.msra.mxu0 %v5200_v3  ;;  %v5226_v3 = vld [vmem:[#allocation10 + $0xac] ss:$16 sps:$4 sm:$0xff]   ;;  %v5224_v0 = vld [vmem:[#allocation10 + $0xa8] ss:$16 sps:$4 sm:$0xff]  }
 0x553   : > { %3667 = vmatprep.subr.bf16.mxu0 %v5205_v6 }
 0x554   : > { %3420 = vmatprep.mubr.bf16.mxu0 %v3228_v5  ;;  %v5229_v5 = vld [vmem:[#allocation10 + $0xcc] ss:$16 sps:$4 sm:$0xff]  }
 0x555   : > { %3421 = vmatmul.mubr.bf16.gmra.mrb[60].mxu0 %v3227_v2 }
 0x556   : > { %3687 = vmatprep.mubr.bf16.mxu0 %v5541_v1  ;;  %3668 = vmatpush1.bf16.msra.mxu0 %v5203_v42 }
 0x557   : > { %3669 = vmatprep.subr.bf16.mxu0 %v5208_v7  ;;  %v5227_v7 = vld [vmem:[#allocation10 + $0xc8] ss:$16 sps:$4 sm:$0xff]  }
 0x55a   : > { %3670 = vmatpush1.bf16.msra.mxu0 %v5206_v23 }
 0x55b   : > { %3728 = vmatprep.subr.bf16.mxu0 %v5211_v9  ;;  %v5232_v9 = vld [vmem:[#allocation10 + $0xec] ss:$16 sps:$4 sm:$0xff]  }
 0x610   : > { %v4535_v10 = vpop.f32.mrb[48].mxu0 }
 0x611   : > { %v4536_v17 = vpop.f32.mrb[49].mxu0 }
 0x612   : > { %v4537_v19 = vadd.f32 %v4536_v17, %v4535_v10  ;;  %v4538_v15 = vpop.f32.mrb[50].mxu0  ;;  %v5230_v10 = vld [vmem:[#allocation10 + $0xe8] ss:$16 sps:$4 sm:$0xff]  }
 0x613   : > { %v4539_v20 = vpop.f32.mrb[51].mxu0 }
 0x614   : > { %v3399_v21 = vadd.f32 %v4537_v19, %v6291_v16  ;;  %v4540_v22 = vadd.f32 %v4539_v20, %v4538_v15 }
 0x616   : > { %v3402_v25 = vadd.f32 %v4540_v22, %v6291_v16  ;;  %v3429_v27 = vmax.f32 %v3399_v21, 0.0 }
 0x618   : > { %v3430_v28 = vmax.f32 %v3402_v25, 0.0  ;;  %v4541_v29 = vpop.f32.mrb[52].mxu0 }
 0x619   : > { %v4542_v12 = vpop.f32.mrb[53].mxu0 }
 0x61a   : > { %v6295_v32 = vpack.c.bf16 %v3430_v28, %v3429_v27  ;;  %v4543_v43 = vadd.f32 %v4542_v12, %v4541_v29  ;;  %v4544_v34 = vpop.f32.mrb[54].mxu0 }
 0x61b   : > { %v4545_v18 = vpop.f32.mrb[55].mxu0 }
 0x61c   : > { %v3407_v35 = vadd.f32 %v4543_v43, %v6291_v16  ;;  %v4546_v40 = vadd.f32 %v4545_v18, %v4544_v34  ;;  %3688 = vmatmul.mubr.bf16.vlgmr.msra.gmra.mrb[64].mxu0 %v6295_v32 }
 0x61d   : > { %3729 = vmatpush1.bf16.msra.mxu0 %v5209_v30  ;;  %3697 = vmatprep.mubr.bf16.mxu0 %v5541_v1  ;;  %v3473_v30 = vld [vmem:[%s6775_s15] sm:$0xf] }
 0x61e   : > { %v3410_v33 = vadd.f32 %v4546_v40, %v6291_v16  ;;  %3730 = vmatprep.subr.bf16.mxu0 %v5214_v13  ;;  %v3431_v37 = vmax.f32 %v3407_v35, 0.0  ;;  %v6321_v43 = vrot.slane %v3473_v30, %v5925_v51 }
 0x620   : > { %v3432_v31 = vmax.f32 %v3410_v33, 0.0  ;;  %v4547_v38 = vpop.f32.mrb[56].mxu0 }
 0x621   : > { %3731 = vmatpush1.bf16.msra.mxu0 %v5212_v14  ;;  %v4548_v26 = vpop.f32.mrb[57].mxu0  ;;  %v6334_v14 = vrot.slane %v3473_v30, %v5931_v55 }
 0x622   : > { %v4549_v41 = vadd.f32 %v4548_v26, %v4547_v38  ;;  %v4550_v24 = vpop.f32.mrb[58].mxu0  ;;  %3732 = vmatprep.subr.bf16.mxu0 %v5217_v36  ;;  %v3438_v57 = vpack.c.bf16 %v3432_v31, %v3431_v37 }
 0x623   : > { %v4551_v56 = vpop.f32.mrb[59].mxu0 }
 0x624   : > { %v3415_v46 = vadd.f32 %v4549_v41, %v6291_v16  ;;  %v4552_v47 = vadd.f32 %v4551_v56, %v4550_v24  ;;  %3698 = vmatmul.mubr.bf16.gmra.mrb[68].mxu0 %v3438_v57 }
 0x625   : > { %3733 = vmatpush1.bf16.msra.mxu0 %v5215_v39  ;;  %3707 = vmatprep.mubr.bf16.mxu0 %v5541_v1 }
 0x626   : > { %v3418_v49 = vadd.f32 %v4552_v47, %v6291_v16  ;;  %3734 = vmatprep.subr.bf16.mxu0 %v5220_v45  ;;  %v3433_v50 = vmax.f32 %v3415_v46, 0.0 }
 0x628   : > { %v3434_v8 = vmax.f32 %v3418_v49, 0.0  ;;  %v4553_v54 = vpop.f32.mrb[60].mxu0 }
 0x629   : > { %3735 = vmatpush1.bf16.msra.mxu0 %v5218_v48  ;;  %v4554_v58 = vpop.f32.mrb[61].mxu0 }
 0x62a   : > { %v4555_v53 = vadd.f32 %v4554_v58, %v4553_v54  ;;  %v4556_v59 = vpop.f32.mrb[62].mxu0  ;;  %3736 = vmatprep.subr.bf16.mxu0 %v5223_v60  ;;  %v3439_v61 = vpack.c.bf16 %v3434_v8, %v3433_v50 }
 0x62b   : > { %v4557_v4 = vpop.f32.mrb[63].mxu0 }
 0x62c   : > { %v3423_v62 = vadd.f32 %v4555_v53, %v6291_v16  ;;  %v4558_v63 = vadd.f32 %v4557_v4, %v4556_v59  ;;  %3708 = vmatmul.mubr.bf16.gmra.mrb[72].mxu0 %v3439_v61 }
 0x62d   : > { %3737 = vmatpush1.bf16.msra.mxu0 %v5221_v44  ;;  %3717 = vmatprep.mubr.bf16.mxu0 %v5541_v1 }
 0x62e   : > { %v3426_v2 = vadd.f32 %v4558_v63, %v6291_v16  ;;  %3738 = vmatprep.subr.bf16.mxu0 %v5226_v3  ;;  %v3435_v6 = vmax.f32 %v3423_v62, 0.0 }
 0x630   : > { %v3436_v42 = vmax.f32 %v3426_v2, 0.0 }
 0x631   : > { %3739 = vmatpush1.bf16.msra.mxu0 %v5224_v0 }
 0x632   : > { %3740 = vmatprep.subr.bf16.mxu0 %v5229_v5  ;;  %v3440_v23 = vpack.c.bf16 %v3436_v42, %v3435_v6 }
 0x634   : > { %3718 = vmatmul.mubr.bf16.gmra.mrb[76].mxu0 %v3440_v23 }
 0x635   : > { %3741 = vmatpush1.bf16.msra.mxu0 %v5227_v7  ;;  %3760 = vmatprep.mubr.bf16.mxu0 %v5541_v1 }
 0x636   : > { %3742 = vmatprep.subr.bf16.mxu0 %v5232_v9 }
 0x639   : > { %3743 = vmatpush1.bf16.msra.mxu0 %v5230_v10 }
 0x63c   : > { %3761 = vmatmul.mubr.bf16.vlgmr.msra.gmra.mrb[80].mxu0 %v6295_v32 }
 0x63d   : > { %3770 = vmatprep.mubr.bf16.mxu0 %v5541_v1 }
 0x644   : > { %3771 = vmatmul.mubr.bf16.gmra.mrb[84].mxu0 %v3438_v57 }
 0x645   : > { %3780 = vmatprep.mubr.bf16.mxu0 %v5541_v1 }
 0x64c   : > { %3781 = vmatmul.mubr.bf16.gmra.mrb[88].mxu0 %v3439_v61 }
 0x64d   : > { %3790 = vmatprep.mubr.bf16.mxu0 %v5541_v1  ;;  %v6318_v1 = vrot.slane %v3473_v30, %v5928_v52  ;;  %v6337_v52 = vrot.slane %v3473_v30, %v6123_v11 }
 0x654   : > { %3791 = vmatmul.mubr.bf16.gmra.mrb[92].mxu0 %v3440_v23 }
 0x6ef   : > { %v3689_v16 = vpop.f32.mrb[64].mxu0 }
 0x6f0   : > { %v3691_v17 = vpop.f32.mrb[65].mxu0  ;;  %v6328_v35 = vadd.f32 %v3689_v16, %v6318_v1 }
 0x6f1   : > { %v3693_v19 = vpop.f32.mrb[66].mxu0  ;;  %v6331_v40 = vadd.f32 %v3691_v17, %v6321_v43 }
 0x6f2   : > { %v3695_v15 = vpop.f32.mrb[67].mxu0  ;;  %v6340_v51 = vadd.f32 %v3693_v19, %v6318_v1 }
 0x6f3   : > { %v6343_v33 = vadd.f32 %v3695_v15, %v6321_v43  ;;  %v3801_v37 = vmax.f32 %v6328_v35, %v6331_v40 }
 0x6f5   : > { %v3806_v11 = vmax.f32 %v6340_v51, %v6343_v33 }
 0x6f7   : > { %v3699_v20 = vpop.f32.mrb[68].mxu0 }
 0x6f8   : > { %v3701_v21 = vpop.f32.mrb[69].mxu0  ;;  %v6363_v45 = vadd.f32 %v3699_v20, %v6318_v1 }
 0x6f9   : > { %v3703_v22 = vpop.f32.mrb[70].mxu0  ;;  %v6366_v56 = vadd.f32 %v3701_v21, %v6321_v43 }
 0x6fa   : > { %v3705_v25 = vpop.f32.mrb[71].mxu0  ;;  %v6371_v48 = vadd.f32 %v3703_v22, %v6318_v1 }
 0x6fb   : > { %v6374_v49 = vadd.f32 %v3705_v25, %v6321_v43  ;;  %v3811_v8 = vmax.f32 %v6363_v45, %v6366_v56 }
 0x6fd   : > { %v3816_v59 = vmax.f32 %v6371_v48, %v6374_v49 }
 0x6ff   : > { %v3709_v27 = vpop.f32.mrb[72].mxu0 }
 0x700   : > { %v3711_v28 = vpop.f32.mrb[73].mxu0  ;;  %v6395_v63 = vadd.f32 %v3709_v27, %v6318_v1 }
 0x701   : > { %v3713_v29 = vpop.f32.mrb[74].mxu0  ;;  %v6398_v0 = vadd.f32 %v3711_v28, %v6321_v43 }
 0x702   : > { %v3715_v12 = vpop.f32.mrb[75].mxu0  ;;  %v6403_v6 = vadd.f32 %v3713_v29, %v6318_v1 }
 0x703   : > { %v6406_v42 = vadd.f32 %v3715_v12, %v6321_v43  ;;  %v3821_v9 = vmax.f32 %v6395_v63, %v6398_v0 }
 0x705   : > { %v3826_v15 = vmax.f32 %v6403_v6, %v6406_v42 }
 0x707   : > { %v6315_v32 = vpop.f32.mrb[76].mxu0 }
 0x708   : > { %v3721_v34 = vpop.f32.mrb[77].mxu0  ;;  %v6428_v27 = vadd.f32 %v6315_v32, %v6318_v1 }
 0x709   : > { %v6323_v13 = vpop.f32.mrb[78].mxu0  ;;  %v6431_v28 = vadd.f32 %v3721_v34, %v6321_v43 }
 0x70a   : > { %v6325_v18 = vpop.f32.mrb[79].mxu0  ;;  %v6437_v30 = vadd.f32 %v6323_v13, %v6318_v1 }
 0x70b   : > { %v3831_v34 = vmax.f32 %v6428_v27, %v6431_v28 }
 0x70f   : > { %v3762_v36 = vpop.f32.mrb[80].mxu0 }
 0x710   : > { %v6348_v31 = vadd.f32 %v3762_v36, %v6334_v14  ;;  %v3764_v38 = vpop.f32.mrb[81].mxu0  ;;  %v6441_v36 = vadd.f32 %v6325_v18, %v6321_v43 }
 0x711   : > { %v6351_v55 = vadd.f32 %v3764_v38, %v6337_v52  ;;  %v3766_v26 = vpop.f32.mrb[82].mxu0 }
 0x712   : > { %v3802_v39 = vmax.f32 %v3801_v37, %v6348_v31  ;;  %v6357_v41 = vadd.f32 %v3766_v26, %v6334_v14  ;;  %v3768_v24 = vpop.f32.mrb[83].mxu0  ;;  %v3836_v43 = vmax.f32 %v6437_v30, %v6441_v36 }
 0x713   : > { %v6360_v57 = vadd.f32 %v3768_v24, %v6337_v52 }
 0x714   : > { %v3807_v46 = vmax.f32 %v3806_v11, %v6357_v41  ;;  %v3803_v47 = vmax.f32 %v3802_v39, %v6351_v55 }
 0x716   : > { %3804 = vmax.xlane.f32.xlu1 %v3803_v47  ;;  %v3808_v60 = vmax.f32 %v3807_v46, %v6360_v57 }
 0x717   : > { %v3772_v50 = vpop.f32.mrb[84].mxu0 }
 0x718   : > { %v6380_v54 = vadd.f32 %v3772_v50, %v6334_v14  ;;  %v3774_v58 = vpop.f32.mrb[85].mxu0  ;;  %3809 = vmax.xlane.f32.xlu0 %v3808_v60 }
 0x719   : > { %v6383_v44 = vadd.f32 %v3774_v58, %v6337_v52  ;;  %v3776_v53 = vpop.f32.mrb[86].mxu0 }
 0x71a   : > { %v3812_v61 = vmax.f32 %v3811_v8, %v6380_v54  ;;  %v6389_v3 = vadd.f32 %v3776_v53, %v6334_v14  ;;  %v3778_v4 = vpop.f32.mrb[87].mxu0 }
 0x71b   : > { %v6392_v62 = vadd.f32 %v3778_v4, %v6337_v52 }
 0x71c   : > { %v3817_v2 = vmax.f32 %v3816_v59, %v6389_v3  ;;  %v3813_v5 = vmax.f32 %v3812_v61, %v6383_v44 }
 0x71e   : > { %3814 = vmax.xlane.f32.xlu0 %v3813_v5  ;;  %v3818_v7 = vmax.f32 %v3817_v2, %v6392_v62 }
 0x71f   : > { %v3782_v23 = vpop.f32.mrb[88].mxu0 }
 0x720   : > { %v6412_v10 = vadd.f32 %v3782_v23, %v6334_v14  ;;  %v3784_v16 = vpop.f32.mrb[89].mxu0  ;;  %3819 = vmax.xlane.f32.xlu1 %v3818_v7 }
 0x721   : > { %v6415_v17 = vadd.f32 %v3784_v16, %v6337_v52  ;;  %v3786_v19 = vpop.f32.mrb[90].mxu0 }
 0x722   : > { %v3822_v20 = vmax.f32 %v3821_v9, %v6412_v10  ;;  %v6421_v21 = vadd.f32 %v3786_v19, %v6334_v14  ;;  %v3788_v22 = vpop.f32.mrb[91].mxu0 }
 0x723   : > { %v6424_v25 = vadd.f32 %v3788_v22, %v6337_v52 }
 0x724   : > { %v3827_v29 = vmax.f32 %v3826_v15, %v6421_v21  ;;  %v3823_v12 = vmax.f32 %v3822_v20, %v6415_v17 }
 0x726   : > { %3824 = vmax.xlane.f32.xlu0 %v3823_v12  ;;  %v3828_v37 = vmax.f32 %v3827_v29, %v6424_v25 }
 0x727   : > { %v3792_v32 = vpop.f32.mrb[92].mxu0 }
 0x728   : > { %v6447_v38 = vadd.f32 %v3792_v32, %v6334_v14  ;;  %v3794_v26 = vpop.f32.mrb[93].mxu0  ;;  %3829 = vmax.xlane.f32.xlu1 %v3828_v37 }
 0x729   : > { %v6450_v11 = vadd.f32 %v3794_v26, %v6337_v52  ;;  %v3796_v1 = vpop.f32.mrb[94].mxu0 }
 0x72a   : > { %v3832_v13 = vmax.f32 %v3831_v34, %v6447_v38  ;;  %v6456_v18 = vadd.f32 %v3796_v1, %v6334_v14  ;;  %v3798_v39 = vpop.f32.mrb[95].mxu0 }
 0x72b   : > { %v6459_v24 = vadd.f32 %v3798_v39, %v6337_v52 }
 0x72c   : > { %v3837_v46 = vmax.f32 %v3836_v43, %v6456_v18  ;;  %v3833_v47 = vmax.f32 %v3832_v13, %v6450_v11 }
 0x72e   : > { %3834 = vmax.xlane.f32.xlu0 %v3833_v47  ;;  %v3838_v60 = vmax.f32 %v3837_v46, %v6459_v24 }
 0x730   : > { %3839 = vmax.xlane.f32.xlu1 %v3838_v60 }
 0x7a3   : > { %v3805_v50 = vpop.xlane.xlu1 %3804 }
 0x7a4   : > { %v3841_v8 = vsub.f32 %v6328_v35, %v3805_v50  ;;  %v3842_v58 = vsub.f32 %v6331_v40, %v3805_v50  ;;  %v3843_v14 = vsub.f32 %v6348_v31, %v3805_v50  ;;  %v3844_v53 = vsub.f32 %v6351_v55, %v3805_v50 }
 0x7a5   : > { %v3810_v59 = vpop.xlane.xlu0 %3809 }
 0x7a6   : > { %v3873_v52 = vmul.f32 1.442695, %v3841_v8  ;;  %v3875_v61 = vmul.f32 1.442695, %v3842_v58  ;;  %v3877_v4 = vmul.f32 1.442695, %v3843_v14  ;;  %v3845_v2 = vsub.f32 %v6340_v51, %v3810_v59 }
 0x7a7   : > { %v3879_v5 = vmul.f32 1.442695, %v3844_v53  ;;  %v3846_v7 = vsub.f32 %v6343_v33, %v3810_v59  ;;  %v3847_v23 = vsub.f32 %v6357_v41, %v3810_v59  ;;  %v3848_v9 = vsub.f32 %v6360_v57, %v3810_v59 }
 0x7a8   : > { %5233 = vpow2.f32 %v3873_v52  ;;  %v3881_v35 = vmul.f32 1.442695, %v3845_v2 }
 0x7a9   : > { %5235 = vpow2.f32 %v3875_v61  ;;  %v3883_v40 = vmul.f32 1.442695, %v3846_v7  ;;  %v3885_v31 = vmul.f32 1.442695, %v3847_v23  ;;  %v3887_v55 = vmul.f32 1.442695, %v3848_v9 }
 0x7aa   : > { %5237 = vpow2.f32 %v3877_v4 }
 0x7ab   : > { %5239 = vpow2.f32 %v3879_v5  ;;  %v3815_v16 = vpop.xlane.xlu0 %3814 }
 0x7ac   : > { %5241 = vpow2.f32 %v3881_v35  ;;  %v3849_v19 = vsub.f32 %v6363_v45, %v3815_v16  ;;  %v3850_v51 = vsub.f32 %v6366_v56, %v3815_v16  ;;  %v3851_v33 = vsub.f32 %v6380_v54, %v3815_v16 }
 0x7ad   : > { %5243 = vpow2.f32 %v3883_v40  ;;  %v3852_v41 = vsub.f32 %v6383_v44, %v3815_v16  ;;  %v3820_v57 = vpop.xlane.xlu1 %3819 }
 0x7ae   : > { %5245 = vpow2.f32 %v3885_v31  ;;  %v3889_v15 = vmul.f32 1.442695, %v3849_v19  ;;  %v3891_v20 = vmul.f32 1.442695, %v3850_v51  ;;  %v3893_v22 = vmul.f32 1.442695, %v3851_v33 }
 0x7af   : > { %5247 = vpow2.f32 %v3887_v55  ;;  %v3895_v29 = vmul.f32 1.442695, %v3852_v41  ;;  %v3853_v12 = vsub.f32 %v6371_v48, %v3820_v57  ;;  %v3854_v37 = vsub.f32 %v6374_v49, %v3820_v57 }
 0x7b0   : > { %5249 = vpow2.f32 %v3889_v15  ;;  %v3855_v45 = vsub.f32 %v6389_v3, %v3820_v57  ;;  %v3856_v56 = vsub.f32 %v6392_v62, %v3820_v57 }
 0x7b1   : > { %5251 = vpow2.f32 %v3891_v20  ;;  %v3897_v54 = vmul.f32 1.442695, %v3853_v12  ;;  %v3899_v32 = vmul.f32 1.442695, %v3854_v37 }
 0x7b2   : > { %v6480_v44 = vpop.eup %5233  ;;  %5253 = vpow2.f32 %v3893_v22  ;;  %v3901_v34 = vmul.f32 1.442695, %v3855_v45  ;;  %v3903_v1 = vmul.f32 1.442695, %v3856_v56 }
 0x7b3   : > { %v6482_v26 = vpop.eup %5235  ;;  %5255 = vpow2.f32 %v3895_v29  ;;  %v3825_v43 = vpop.xlane.xlu0 %3824 }
 0x7b4   : > { %v6484_v48 = vpop.eup %5237  ;;  %5257 = vpow2.f32 %v3897_v54  ;;  %v3857_v49 = vsub.f32 %v6395_v63, %v3825_v43  ;;  %v3858_v3 = vsub.f32 %v6398_v0, %v3825_v43  ;;  %v3859_v62 = vsub.f32 %v6412_v10, %v3825_v43 }
 0x7b5   : > { %v6489_v13 = vpop.eup %5239  ;;  %5259 = vpow2.f32 %v3899_v32  ;;  %v3860_v39 = vsub.f32 %v6415_v17, %v3825_v43  ;;  %v3830_v46 = vpop.xlane.xlu1 %3829  ;;  %v3937_v47 = vadd.f32 %v6482_v26, %v6480_v44 }
 0x7b6   : > { %v6494_v60 = vpop.eup %5241  ;;  %5261 = vpow2.f32 %v3901_v34  ;;  %v3905_v50 = vmul.f32 1.442695, %v3857_v49  ;;  %v3907_v8 = vmul.f32 1.442695, %v3858_v3  ;;  %v3909_v58 = vmul.f32 1.442695, %v3859_v62 }
 0x7b7   : > { %v6496_v63 = vpop.eup %5243  ;;  %5263 = vpow2.f32 %v3903_v1  ;;  %v3911_v0 = vmul.f32 1.442695, %v3860_v39  ;;  %v3861_v10 = vsub.f32 %v6403_v6, %v3830_v46  ;;  %v3862_v14 = vsub.f32 %v6406_v42, %v3830_v46 }
 0x7b8   : > { %v6500_v53 = vpop.eup %5245  ;;  %5265 = vpow2.f32 %v3905_v50  ;;  %v3863_v17 = vsub.f32 %v6421_v21, %v3830_v46  ;;  %v3864_v59 = vsub.f32 %v6424_v25, %v3830_v46  ;;  %v3938_v52 = vadd.f32 %v6484_v48, %v3937_v47 }
 0x7b9   : > { %v6505_v61 = vpop.eup %5247  ;;  %5267 = vpow2.f32 %v3907_v8  ;;  %v3913_v4 = vmul.f32 1.442695, %v3861_v10  ;;  %v3915_v2 = vmul.f32 1.442695, %v3862_v14  ;;  %v3942_v5 = vadd.f32 %v6496_v63, %v6494_v60 }
 0x7ba   : > { %v6509_v6 = vpop.eup %5249  ;;  %5269 = vpow2.f32 %v3909_v58  ;;  %v3917_v42 = vmul.f32 1.442695, %v3863_v17  ;;  %v3939_v7 = vadd.f32 %v6489_v13, %v3938_v52  ;;  %v3919_v21 = vmul.f32 1.442695, %v3864_v59 }
 0x7bb   : > { %v6512_v23 = vpop.eup %5251  ;;  %5271 = vpow2.f32 %v3911_v0  ;;  %v3835_v25 = vpop.xlane.xlu0 %3834  ;;  %v3943_v9 = vadd.f32 %v6500_v53, %v3942_v5 }
 0x7bc   : > { %v6515_v35 = vpop.eup %5253  ;;  %5273 = vpow2.f32 %v3913_v4  ;;  %3940 = vadd.xlane.f32.xlu0 %v3939_v7  ;;  %v3865_v40 = vsub.f32 %v6428_v27, %v3835_v25  ;;  %v3866_v31 = vsub.f32 %v6431_v28, %v3835_v25  ;;  %v3867_v55 = vsub.f32 %v6447_v38, %v3835_v25 }
 0x7bd   : > { %v6520_v16 = vpop.eup %5255  ;;  %5275 = vpow2.f32 %v3915_v2  ;;  %v3868_v19 = vsub.f32 %v6450_v11, %v3835_v25  ;;  %v3944_v51 = vadd.f32 %v6505_v61, %v3943_v9  ;;  %v3840_v33 = vpop.xlane.xlu1 %3839  ;;  %v3947_v41 = vadd.f32 %v6512_v23, %v6509_v6 }
 0x7be   : > { %v6526_v57 = vpop.eup %5257  ;;  %5277 = vpow2.f32 %v3917_v42  ;;  %v3921_v15 = vmul.f32 1.442695, %v3865_v40  ;;  %v3923_v27 = vmul.f32 1.442695, %v3866_v31  ;;  %v3925_v20 = vmul.f32 1.442695, %v3867_v55 }
 0x7bf   : > { %v6528_v28 = vpop.eup %5259  ;;  %5279 = vpow2.f32 %v3919_v21  ;;  %v3927_v38 = vmul.f32 1.442695, %v3868_v19  ;;  %3945 = vadd.xlane.f32.xlu1 %v3944_v51  ;;  %v3869_v22 = vsub.f32 %v6437_v30, %v3840_v33  ;;  %v3870_v11 = vsub.f32 %v6441_v36, %v3840_v33 }
 0x7c0   : > { %v6532_v29 = vpop.eup %5261  ;;  %5281 = vpow2.f32 %v3921_v15  ;;  %v3871_v12 = vsub.f32 %v6456_v18, %v3840_v33  ;;  %v3872_v37 = vsub.f32 %v6459_v24, %v3840_v33  ;;  %v3948_v45 = vadd.f32 %v6515_v35, %v3947_v41 }
 0x7c1   : > { %v6537_v56 = vpop.eup %5263  ;;  %5283 = vpow2.f32 %v3923_v27  ;;  %v3929_v54 = vmul.f32 1.442695, %v3869_v22  ;;  %v3931_v32 = vmul.f32 1.442695, %v3870_v11  ;;  %v3952_v34 = vadd.f32 %v6528_v28, %v6526_v57 }
 0x7c2   : > { %v6541_v30 = vpop.eup %5265  ;;  %5285 = vpow2.f32 %v3925_v20  ;;  %v3949_v36 = vadd.f32 %v6520_v16, %v3948_v45  ;;  %v3933_v18 = vmul.f32 1.442695, %v3871_v12  ;;  %v3935_v62 = vmul.f32 1.442695, %v3872_v37 }
 0x7c3   : > { %v6544_v1 = vpop.eup %5267  ;;  %5287 = vpow2.f32 %v3927_v38  ;;  %v3953_v24 = vadd.f32 %v6532_v29, %v3952_v34 }
 0x7c4   : > { %v6547_v43 = vpop.eup %5269  ;;  %5289 = vpow2.f32 %v3929_v54  ;;  %3950 = vadd.xlane.f32.xlu0 %v3949_v36  ;;  %v3957_v49 = vadd.f32 %v6544_v1, %v6541_v30 }
 0x7c5   : > { %v6551_v3 = vpop.eup %5271  ;;  %5291 = vpow2.f32 %v3931_v32  ;;  %v3954_v39 = vadd.f32 %v6537_v56, %v3953_v24 }
 0x7c6   : > { %v6554_v46 = vpop.eup %5273  ;;  %v3958_v47 = vadd.f32 %v6547_v43, %v3957_v49  ;;  %5293 = vpow2.f32 %v3933_v18 }
 0x7c7   : > { %v6557_v50 = vpop.eup %5275  ;;  %3955 = vadd.xlane.f32.xlu1 %v3954_v39  ;;  %5295 = vpow2.f32 %v3935_v62 }
 0x7c8   : > { %v6559_v8 = vpop.eup %5277  ;;  %v3959_v58 = vadd.f32 %v6551_v3, %v3958_v47  ;;  %v3962_v0 = vadd.f32 %v6557_v50, %v6554_v46 }
 0x7c9   : > { %v6564_v10 = vpop.eup %5279 }
 0x7ca   : > { %v6566_v14 = vpop.eup %5281  ;;  %3960 = vadd.xlane.f32.xlu0 %v3959_v58  ;;  %v3963_v17 = vadd.f32 %v6559_v8, %v3962_v0 }
 0x7cb   : > { %v6569_v59 = vpop.eup %5283 }
 0x7cc   : > { %v6571_v52 = vpop.eup %5285  ;;  %v3964_v4 = vadd.f32 %v6564_v10, %v3963_v17  ;;  %v3967_v2 = vadd.f32 %v6569_v59, %v6566_v14 }
 0x7cd   : > { %v6576_v5 = vpop.eup %5287 }
 0x7ce   : > { %v6578_v42 = vpop.eup %5289  ;;  %3965 = vadd.xlane.f32.xlu1 %v3964_v4  ;;  %v3968_v7 = vadd.f32 %v6571_v52, %v3967_v2 }
 0x7cf   : > { %v6581_v21 = vpop.eup %5291 }
 0x7d0   : > { %v3969_v25 = vadd.f32 %v6576_v5, %v3968_v7  ;;  %v3972_v9 = vadd.f32 %v6581_v21, %v6578_v42  ;;  %v6586_v40 = vpop.eup %5293 }
 0x7d1   : > { %v6589_v55 = vpop.eup %5295 }
 0x7d2   : > { %3970 = vadd.xlane.f32.xlu0 %v3969_v25  ;;  %v3973_v31 = vadd.f32 %v6586_v40, %v3972_v9 }
 0x7d4   : > { %v3974_v19 = vadd.f32 %v6589_v55, %v3973_v31 }
 0x7d6   : > { %3975 = vadd.xlane.f32.xlu1 %v3974_v19 }
 0x849   : > { %v3941_v51 = vpop.xlane.xlu0 %3940 }
 0x84a   : > { %5297 = vrcp.f32 %v3941_v51 }
 0x84c   : > { %v3946_v33 = vpop.xlane.xlu1 %3945 }
 0x84d   : > { %5299 = vrcp.f32 %v3946_v33 }
 0x851   : > { %v3951_v41 = vpop.xlane.xlu0 %3950 }
 0x852   : > { %5301 = vrcp.f32 %v3951_v41 }
 0x854   : > { %v5298_v15 = vpop.eup %5297  ;;  %v3956_v27 = vpop.xlane.xlu1 %3955 }
 0x855   : > { %v3985_v20 = vmul.f32 %v5298_v15, %v6480_v44  ;;  %v3986_v38 = vmul.f32 %v5298_v15, %v6482_v26  ;;  %v3987_v22 = vmul.f32 %v5298_v15, %v6484_v48  ;;  %v3988_v11 = vmul.f32 %v5298_v15, %v6489_v13 }
 0x856   : > { %5303 = vrcp.f32 %v3956_v27 }
 0x857   : > { %v5300_v12 = vpop.eup %5299  ;;  %4017 = vst [vmem:[%s6599_s16] sm:$0xff] %v3985_v20  ;;  %4018 = vst [vmem:[%s6599_s16 + $0x8] sm:$0xff] %v3986_v38  ;;  %v3961_v44 = vpop.xlane.xlu0 %3960 }
 0x858   : > { %4019 = vst [vmem:[%s6599_s16 + $0x10] sm:$0xff] %v3987_v22  ;;  %4020 = vst [vmem:[%s6599_s16 + $0x18] sm:$0xff] %v3988_v11  ;;  %v3989_v26 = vmul.f32 %v5300_v12, %v6494_v60  ;;  %v3990_v48 = vmul.f32 %v5300_v12, %v6496_v63  ;;  %v3991_v13 = vmul.f32 %v5300_v12, %v6500_v53  ;;  %5305 = vrcp.f32 %v3961_v44 }
 0x859   : > { %v3992_v37 = vmul.f32 %v5300_v12, %v6505_v61 }
 0x85a   : > { %4021 = vst [vmem:[%s6599_s16 + $0x20] sm:$0xff] %v3989_v26  ;;  %4022 = vst [vmem:[%s6599_s16 + $0x28] sm:$0xff] %v3990_v48 }
 0x85b   : > { %4023 = vst [vmem:[%s6599_s16 + $0x30] sm:$0xff] %v3991_v13  ;;  %4024 = vst [vmem:[%s6599_s16 + $0x38] sm:$0xff] %v3992_v37  ;;  %v3966_v45 = vpop.xlane.xlu1 %3965 }
 0x85c   : > { %v5302_v54 = vpop.eup %5301  ;;  %5307 = vrcp.f32 %v3966_v45 }
 0x85d   : > { %v3993_v60 = vmul.f32 %v5302_v54, %v6509_v6  ;;  %v3994_v63 = vmul.f32 %v5302_v54, %v6512_v23  ;;  %v3995_v53 = vmul.f32 %v5302_v54, %v6515_v35  ;;  %v3996_v61 = vmul.f32 %v5302_v54, %v6520_v16 }
 0x85f   : > { %4025 = vst [vmem:[%s6599_s16 + $0x40] sm:$0xff] %v3993_v60  ;;  %4026 = vst [vmem:[%s6599_s16 + $0x48] sm:$0xff] %v3994_v63  ;;  %v3971_v32 = vpop.xlane.xlu0 %3970 }
 0x860   : > { %4027 = vst [vmem:[%s6599_s16 + $0x50] sm:$0xff] %v3995_v53  ;;  %4028 = vst [vmem:[%s6599_s16 + $0x58] sm:$0xff] %v3996_v61  ;;  %v5304_v34 = vpop.eup %5303  ;;  %5309 = vrcp.f32 %v3971_v32 }
 0x861   : > { %v3997_v36 = vmul.f32 %v5304_v34, %v6526_v57  ;;  %v3998_v6 = vmul.f32 %v5304_v34, %v6528_v28  ;;  %v3999_v23 = vmul.f32 %v5304_v34, %v6532_v29  ;;  %v4000_v35 = vmul.f32 %v5304_v34, %v6537_v56 }
 0x862   : > { %v5306_v16 = vpop.eup %5305 }
 0x863   : > { %4029 = vst [vmem:[%s6599_s16 + $0x60] sm:$0xff] %v3997_v36  ;;  %4030 = vst [vmem:[%s6599_s16 + $0x68] sm:$0xff] %v3998_v6  ;;  %v3976_v18 = vpop.xlane.xlu1 %3975  ;;  %v4001_v57 = vmul.f32 %v5306_v16, %v6541_v30  ;;  %v4002_v28 = vmul.f32 %v5306_v16, %v6544_v1  ;;  %v4003_v29 = vmul.f32 %v5306_v16, %v6547_v43 }
 0x864   : > { %4031 = vst [vmem:[%s6599_s16 + $0x70] sm:$0xff] %v3999_v23  ;;  %4032 = vst [vmem:[%s6599_s16 + $0x78] sm:$0xff] %v4000_v35  ;;  %v4004_v24 = vmul.f32 %v5306_v16, %v6551_v3  ;;  %5311 = vrcp.f32 %v3976_v18 }
 0x865   : > { %4033 = vst [vmem:[%s6599_s16 + $0x80] sm:$0xff] %v4001_v57  ;;  %4034 = vst [vmem:[%s6599_s16 + $0x88] sm:$0xff] %v4002_v28 }
 0x866   : > { %v5308_v56 = vpop.eup %5307  ;;  %4035 = vst [vmem:[%s6599_s16 + $0x90] sm:$0xff] %v4003_v29  ;;  %4036 = vst [vmem:[%s6599_s16 + $0x98] sm:$0xff] %v4004_v24 }
 0x867   : > { %v4005_v49 = vmul.f32 %v5308_v56, %v6554_v46  ;;  %v4006_v30 = vmul.f32 %v5308_v56, %v6557_v50  ;;  %v4007_v1 = vmul.f32 %v5308_v56, %v6559_v8  ;;  %v4008_v43 = vmul.f32 %v5308_v56, %v6564_v10 }
 0x869   : > { %4037 = vst [vmem:[%s6599_s16 + $0xa0] sm:$0xff] %v4005_v49  ;;  %4038 = vst [vmem:[%s6599_s16 + $0xa8] sm:$0xff] %v4006_v30 }
 0x86a   : > { %4039 = vst [vmem:[%s6599_s16 + $0xb0] sm:$0xff] %v4007_v1  ;;  %4040 = vst [vmem:[%s6599_s16 + $0xb8] sm:$0xff] %v4008_v43  ;;  %v5310_v3 = vpop.eup %5309 }
 0x86b   : > { %v4009_v62 = vmul.f32 %v5310_v3, %v6566_v14  ;;  %v4010_v39 = vmul.f32 %v5310_v3, %v6569_v59  ;;  %v4011_v46 = vmul.f32 %v5310_v3, %v6571_v52  ;;  %v4012_v47 = vmul.f32 %v5310_v3, %v6576_v5 }
 0x86d   : > { %4041 = vst [vmem:[%s6599_s16 + $0xc0] sm:$0xff] %v4009_v62  ;;  %4042 = vst [vmem:[%s6599_s16 + $0xc8] sm:$0xff] %v4010_v39 }
 0x86e   : > { %4043 = vst [vmem:[%s6599_s16 + $0xd0] sm:$0xff] %v4011_v46  ;;  %4044 = vst [vmem:[%s6599_s16 + $0xd8] sm:$0xff] %v4012_v47  ;;  %v5312_v50 = vpop.eup %5311 }
 0x86f   : > { %v4013_v8 = vmul.f32 %v5312_v50, %v6578_v42  ;;  %v4014_v58 = vmul.f32 %v5312_v50, %v6581_v21  ;;  %v4015_v0 = vmul.f32 %v5312_v50, %v6586_v40  ;;  %v4016_v10 = vmul.f32 %v5312_v50, %v6589_v55 }
 0x871   : > { %4045 = vst [vmem:[%s6599_s16 + $0xe0] sm:$0xff] %v4013_v8  ;;  %4046 = vst [vmem:[%s6599_s16 + $0xe8] sm:$0xff] %v4014_v58 }
 0x872   : > { %4047 = vst [vmem:[%s6599_s16 + $0xf0] sm:$0xff] %v4015_v0  ;;  %4048 = vst [vmem:[%s6599_s16 + $0xf8] sm:$0xff] %v4016_v10 }
 0x873   : > { %5466 = shalt.err (!%p5463_p0)
}
 0x874   : > { %s5467_s17 = scalar_lea.hbm %s6658_s14, 4096  ;;  %s5471_s15 = scalar_lea.hbm %s6778_s12, 32768 }
 0x875   : > { %p5468_p6 = scmp.ne.s32.totalorder %s6658_s14, %s5467_s17  ;;  %p5472_p13 = scmp.lt.u32.totalorder %s6658_s14, %s6778_s12 }
 0x876   : > { %p5473_p12 = scmp.lt.u32.totalorder %s5471_s15, %s5467_s17  ;;  %p5475_p2 = scmp.lt.u32.totalorder %s5467_s17, %s6658_s14 }
 0x877   : > { %p5469_p9 = pnand %p5468_p6, %p6779_p3 }
 0x878   : > { %p5474_p1 = por %p5473_p12, %p5472_p13 }
 0x879   : > { %p5470_p10 = pneg %p5469_p9 }
 0x87a   : > { %p5476_p4 = por %p5475_p2, %p5474_p1 }
 0x87c   : > { %p5477_p7 = pnand %p5476_p4, %p5470_p10 }
 0x87e   : > { %5480 = shalt.err (!%p5477_p7)
}
 0x87f   : > { %s5544_s23 = smov 512   ;;  %s5545_s16 = smov 32  }
 0x880   : > { %4675 = dma.vmem_to_hbm [thread:$0]  (%p6779_p3), %s6660_s24, 4096, %s6658_s14, %s6672_s22, %s5544_s23, %s5544_s23, %s5545_s16  }
 0x881 PF: > { %s6780_s21 = sld [smem:[#allocation19_spill]]  ;;  %s6781_s27 = sld [smem:[#allocation16_spill]] }
 0x882   : > { %s6782_s11 = sld [smem:[#allocation23_spill]] }
 0x887   : > { %p4707_p8 = scmp.ge.s32.totalorder %s6780_s21, 2  ;;  %s4079_s19 = sand.u32 1, %s6781_s27  }
 0x888   : > { %p6783_p11 = scmp.ne.s32.totalorder %s6782_s11, 0  ;;  %s4080_s29 = scalar_lea.sflag [#allocation4], %s4079_s19 }
 0x88a   : > { %p4694_p5 = pnand %p4707_p8, %p6783_p11 }
 0x88c   : > { %5510 = dma.done.wait (!%p4694_p5), %s4080_s29, 4096  }
 0x88d   : > { %5512 = vsyncadd (!%p4694_p5), %s4080_s29, 4294963200  ;;  %s6784_s21 = sld [smem:[#allocation20_spill]]  ;;  %s6785_s18 = sld [smem:[#allocation17_spill]] }
 0x88e   : > { %s6786_s19 = sld [smem:[#allocation18_spill]]  ;;  %s6787_s20 = sld [smem:[#allocation21_spill]] }
 0x893   : > { %p28_p0 = scmp.ge.s32.totalorder %s6784_s21, 10  }
 0x895   :  { %30 = sbr.rel (!%p28_p0) target bundleno = 12 (0xc), region = 136 }
 0x89c   :  { %4085 = vsyncpa [#allocation3], 1 }
 0x89d   :  { %4087 = vsyncpa [#allocation3 + $0x1], 1 }
 0x89e   :  { %4088 = vsyncpa [#allocation6], 1 }
 0x89f   :  { %4089 = vsyncpa [#allocation9], 1 }
 0x8a0   :  { %4090 = vsyncpa [#allocation4], 1 }
 0x8a1   :  { %4092 = vsyncpa [#allocation4 + $0x1], 1 }

</bundles_post_ra>
